<compile_context>
chip_gen: v6e
topology: v6e:2x2x1
jax: 0.10.0
libtpu: 0.0.40
codegen_flags: <defaults>
</compile_context>

<pallas_src>
import functools

import jax
import jax.numpy as jnp
from jax import lax
from jax.experimental import pallas as pl
from jax.experimental.pallas import tpu as pltpu

EPS = 1e-5
LANE = 128
MXU_DTYPE = jnp.bfloat16          # matmul operand dtype (f32 accumulation)
ACT_DTYPE = jnp.bfloat16          # inter-stage activation storage dtype


def _round_up(x, m):
    return (x + m - 1) // m * m


def _vmem_limit_bytes():
    """Generation-aware scoped-VMEM limit (leave headroom for compiler scratch)."""
    cap = 64 * 1024 * 1024        # conservative fallback = smallest physical (v7x)
    try:
        info = pltpu.get_tpu_info()
        cap = int(getattr(info, "vmem_capacity_bytes", cap) or cap)
    except Exception:
        pass
    return int(min(cap * 3 // 4, 100 * 1024 * 1024))


def _pick_tile_rows(H, W, cin_p, cout_p, vmem_budget):
    """Largest even divisor of H whose per-tile working set fits the budget."""
    best = 2
    wgt = 9 * cin_p * cout_p * 2
    for th in range(2, min(H, 256) + 1, 2):
        if H % th:
            continue
        win = 2 * (th + 2) * W * cin_p * 4        # double-buffered input window(s)
        out = 2 * th * W * cout_p * 2             # double-buffered bf16 output
        tmp = th * W * 3 * cin_p * (4 + 2)        # per-dy f32 concat + bf16 copy
        acc = th * W * cout_p * 4                 # f32 conv result / accumulator
        if win + out + tmp + acc + wgt <= vmem_budget:
            best = th
    return best


# ---------------------------------------------------------------------------
# in-kernel helpers
# ---------------------------------------------------------------------------
def _conv3x3_rows(h, w_ref, t_out, W):
    """3x3 'same' conv on a row-haloed window.

    h:     (t_out + 2, W, C) f32  -- window rows r..r+2 feed output row r.
    w_ref: (3, 3*C, Cout_p) bf16  -- K-fused weights, K order = (kx, cin).
    Returns (t_out, W, Cout_p) f32.  Zero padding along W is emulated with
    pltpu.roll + a column mask (no padded scratch, no sublane-offset slices).
    """
    cout = w_ref.shape[-1]
    col = lax.broadcasted_iota(jnp.int32, (1, W, 1), 1)
    acc = None
    for dy in range(3):
        rows = h[dy:dy + t_out]                                    # (t_out, W, C)
        left = jnp.where(col >= 1, pltpu.roll(rows, 1, axis=1), 0.0)
        right = jnp.where(col < W - 1, pltpu.roll(rows, W - 1, axis=1), 0.0)
        k = jnp.concatenate([left, rows, right], axis=-1)          # (t_out, W, 3C)
        d = jnp.dot(k.reshape(t_out * W, -1).astype(MXU_DTYPE), w_ref[dy],
                    preferred_element_type=jnp.float32)
        acc = d if acc is None else acc + d
    return acc.reshape(t_out, W, cout)


def _write_stats(st_ref, y_flat):
    st_ref[0:1, :] = jnp.sum(y_flat, axis=0, keepdims=True)
    st_ref[1:2, :] = jnp.sum(y_flat * y_flat, axis=0, keepdims=True)


# ---------------------------------------------------------------------------
# stage A kernels: conv1 + BN1 partial stats
# ---------------------------------------------------------------------------
def _conv1_im2col_kernel(x_ref, w_ref, y_ref, st_ref, *, th, W):
    # Small-Cin path: x_ref is (th, W, Kp) bf16 pre-fused im2col rows (all 9
    # taps in K with the real Cin, padded once to Kp); w_ref is (Kp, Cout_p).
    y = jnp.dot(x_ref[...].reshape(th * W, -1), w_ref[...],
                preferred_element_type=jnp.float32)
    _write_stats(st_ref, y)
    y_ref[...] = y.reshape(th, W, -1).astype(y_ref.dtype)


def _conv1_halo_kernel(xm_ref, xt_ref, xb_ref, w_ref, y_ref, st_ref, *,
                       th, W, n_t):
    # General path: th owned rows + 1-row top/bottom halos read separately;
    # halo rows are zeroed (conv1 zero padding) only for the boundary tiles.
    j = pl.program_id(1)
    top = xt_ref[...] * (j > 0).astype(xt_ref.dtype)
    bot = xb_ref[...] * (j < n_t - 1).astype(xb_ref.dtype)
    h = jnp.concatenate([top, xm_ref[...], bot], axis=0)       # (th+2, W, Cin_p)
    y = _conv3x3_rows(h, w_ref, th, W)
    _write_stats(st_ref, y.reshape(th * W, -1))
    y_ref[...] = y.astype(y_ref.dtype)


# ---------------------------------------------------------------------------
# stage B: BN1 + ReLU + conv2 + BN2 partial stats
# ---------------------------------------------------------------------------
def _bn1_conv2_kernel(ym_ref, yt_ref, yb_ref, sc_ref, sh_ref, w_ref,
                      y2_ref, st_ref, *, th, W, n_t):
    j = pl.program_id(1)
    sc = sc_ref[...]
    sh = sh_ref[...]

    def bn_relu(v):                                           # bf16 -> f32
        return jnp.maximum(v.astype(jnp.float32) * sc + sh, 0.0)

    # halo rows represent conv2's zero padding on the boundary tiles
    top = bn_relu(yt_ref[...]) * (j > 0).astype(jnp.float32)
    bot = bn_relu(yb_ref[...]) * (j < n_t - 1).astype(jnp.float32)
    h = jnp.concatenate([top, bn_relu(ym_ref[...]), bot], axis=0)  # (th+2, W, Cp)
    y2 = _conv3x3_rows(h, w_ref, th, W)
    _write_stats(st_ref, y2.reshape(th * W, -1))
    y2_ref[...] = y2.astype(y2_ref.dtype)


# ---------------------------------------------------------------------------
# stage C: BN2 + ReLU + 2x2 maxpool
# ---------------------------------------------------------------------------
def _bn2_pool_kernel(y2_ref, sc_ref, sh_ref, x_ref, p_ref, *, th, W):
    x = jnp.maximum(y2_ref[...].astype(jnp.float32) * sc_ref[...] + sh_ref[...],
                    0.0)
    x_ref[...] = x
    c = x.shape[-1]
    rmax = jnp.max(x.reshape(th // 2, 2, W, c), axis=1)        # pool rows (cheap axis)
    # TODO(synk): a strided sublane max (rmax[:, 0::2] vs rmax[:, 1::2]) would
    # avoid a possible W-split relayout here; keeping the proven reshape form.
    p_ref[...] = jnp.max(rmax.reshape(th // 2, W // 2, 2, c), axis=2)


# ---------------------------------------------------------------------------
# host-side parameter preparation
# ---------------------------------------------------------------------------
def _prep_conv_weight(w, cin_p, cout_p):
    """(Cout, Cin, 3, 3) torch layout -> (3, 3*Cin_p, Cout_p) K-fused bf16."""
    cout, cin = w.shape[0], w.shape[1]
    wt = jnp.transpose(w, (2, 3, 1, 0))                         # (ky, kx, Cin, Cout)
    wt = jnp.pad(wt, ((0, 0), (0, 0), (0, cin_p - cin), (0, cout_p - cout)))
    return wt.reshape(3, 3 * cin_p, cout_p).astype(MXU_DTYPE)


def _prep_conv_weight_im2col(w, k_p, cout_p):
    """(Cout, Cin, 3, 3) -> (Kp, Cout_p) bf16 with K order (ky, kx, cin)."""
    cout, cin = w.shape[0], w.shape[1]
    wt = jnp.transpose(w, (2, 3, 1, 0)).reshape(9 * cin, cout)
    wt = jnp.pad(wt, ((0, k_p - 9 * cin), (0, cout_p - cout)))
    return wt.astype(MXU_DTYPE)


def _prep_channel_vec(v, cp):
    v = jnp.asarray(v, jnp.float32).reshape(1, -1)
    return jnp.pad(v, ((0, 0), (0, cp - v.shape[-1])))


def _scale_shift(stats, gamma, beta, count):
    """Fold batch-stat BatchNorm into per-channel scale/shift, each (1, Cp)."""
    s = jnp.sum(stats[:, :, 0, :], axis=(0, 1))
    q = jnp.sum(stats[:, :, 1, :], axis=(0, 1))
    mu = s / count
    # NOTE: E[x^2]-E[x]^2 in f32 with a clamp; fine here, but a two-pass/Welford
    # reduction would be needed for tight BN parity when |mean| >> std.
    var = jnp.maximum(q / count - mu * mu, 0.0)
    scale = gamma.reshape(-1) * lax.rsqrt(var + EPS)
    shift = beta.reshape(-1) - mu * scale
    return scale.reshape(1, -1), shift.reshape(1, -1)


# ---------------------------------------------------------------------------
# wrapper
# ---------------------------------------------------------------------------
@jax.jit
def encoder_block_forward(x_nchw, params):
    """x_nchw: (B, Cin, H, W) float32.  Returns (x, p) in NCHW like PyTorch."""
    B, Cin, H, W = x_nchw.shape
    Cout = params["w1"].shape[0]
    assert H % 2 == 0 and W % 2 == 0, "MaxPool2d(2) path requires even H and W"
    # TODO(synk): odd H/W (PyTorch floors the pooled size) not supported.

    cout_p = _round_up(Cout, LANE)
    vmem_limit = _vmem_limit_bytes()
    budget = vmem_limit // 2
    cparams = pltpu.CompilerParams(
        dimension_semantics=("parallel", "parallel"),
        vmem_limit_bytes=vmem_limit)

    x_nhwc = jnp.transpose(x_nchw, (0, 2, 3, 1)).astype(jnp.float32)
    gamma1 = _prep_channel_vec(params["g1"], cout_p)
    beta1 = _prep_channel_vec(params["be1"], cout_p)
    gamma2 = _prep_channel_vec(params["g2"], cout_p)
    beta2 = _prep_channel_vec(params["be2"], cout_p)
    # params["b1"] / params["b2"] (conv biases) are intentionally unused: a bias
    # followed by batch-statistics BatchNorm cancels exactly.
    count = float(B * H * W)

    # ------------------------------------------------------------- stage A
    small_cin = 9 * Cin <= 2 * LANE
    if small_cin:
        # Fuse all 9 taps into K with the real Cin; pad the fused K once.
        ka_p = _round_up(9 * Cin, LANE)
        th_a = _pick_tile_rows(H, W, ka_p, cout_p, budget)
        n_ta = H // th_a
        xp = jnp.pad(x_nhwc, ((0, 0), (1, 1), (1, 1), (0, 0)))
        cols = jnp.concatenate(
            [xp[:, dy:dy + H, dx:dx + W, :] for dy in range(3) for dx in range(3)],
            axis=-1).astype(MXU_DTYPE)
        cols = jnp.pad(cols, ((0, 0), (0, 0), (0, 0), (0, ka_p - 9 * Cin)))
        w1 = _prep_conv_weight_im2col(params["w1"], ka_p, cout_p)

        flops_a = 2 * B * H * W * ka_p * cout_p
        bytes_a = cols.size * 2 + w1.size * 2 + B * H * W * cout_p * 2
        y1, st1 = pl.pallas_call(
            functools.partial(_conv1_im2col_kernel, th=th_a, W=W),
            out_shape=(jax.ShapeDtypeStruct((B, H, W, cout_p), ACT_DTYPE),
                       jax.ShapeDtypeStruct((B, n_ta, 2, cout_p), jnp.float32)),
            grid=(B, n_ta),
            in_specs=[
                pl.BlockSpec((None, th_a, W, ka_p), lambda b, j: (b, j, 0, 0)),
                pl.BlockSpec((ka_p, cout_p), lambda b, j: (0, 0)),
            ],
            out_specs=(
                pl.BlockSpec((None, th_a, W, cout_p), lambda b, j: (b, j, 0, 0)),
                pl.BlockSpec((None, None, 2, cout_p), lambda b, j: (b, j, 0, 0)),
            ),
            compiler_params=cparams,
            cost_estimate=pl.CostEstimate(flops=int(flops_a), transcendentals=0,
                                          bytes_accessed=int(bytes_a)),
        )(cols, w1)
    else:
        cin_p = _round_up(Cin, LANE)
        th_a = _pick_tile_rows(H, W, cin_p, cout_p, budget)
        n_ta = H // th_a
        xpad = jnp.pad(x_nhwc, ((0, 0), (0, 0), (0, 0), (0, cin_p - Cin)))
        w1 = _prep_conv_weight(params["w1"], cin_p, cout_p)

        flops_a = 2 * B * H * W * 9 * cin_p * cout_p
        bytes_a = xpad.size * 4 + w1.size * 2 + B * H * W * cout_p * 2
        y1, st1 = pl.pallas_call(
            functools.partial(_conv1_halo_kernel, th=th_a, W=W, n_t=n_ta),
            out_shape=(jax.ShapeDtypeStruct((B, H, W, cout_p), ACT_DTYPE),
                       jax.ShapeDtypeStruct((B, n_ta, 2, cout_p), jnp.float32)),
            grid=(B, n_ta),
            in_specs=[
                pl.BlockSpec((None, th_a, W, cin_p), lambda b, j: (b, j, 0, 0)),
                pl.BlockSpec((None, 1, W, cin_p),
                             lambda b, j: (b, jnp.maximum(j * th_a - 1, 0), 0, 0)),
                pl.BlockSpec((None, 1, W, cin_p),
                             lambda b, j: (b, jnp.minimum(j * th_a + th_a, H - 1),
                                           0, 0)),
                pl.BlockSpec((3, 3 * cin_p, cout_p), lambda b, j: (0, 0, 0)),
            ],
            out_specs=(
                pl.BlockSpec((None, th_a, W, cout_p), lambda b, j: (b, j, 0, 0)),
                pl.BlockSpec((None, None, 2, cout_p), lambda b, j: (b, j, 0, 0)),
            ),
            compiler_params=cparams,
            cost_estimate=pl.CostEstimate(flops=int(flops_a), transcendentals=0,
                                          bytes_accessed=int(bytes_a)),
        )(xpad, xpad, xpad, w1)

    scale1, shift1 = _scale_shift(st1, gamma1, beta1, count)

    # ------------------------------------------------------------- stage B
    th_b = _pick_tile_rows(H, W, cout_p, cout_p, budget)
    n_tb = H // th_b
    w2 = _prep_conv_weight(params["w2"], cout_p, cout_p)

    flops_b = 2 * B * H * W * 9 * cout_p * cout_p
    bytes_b = 2 * B * H * W * cout_p * 2 + w2.size * 2
    y2, st2 = pl.pallas_call(
        functools.partial(_bn1_conv2_kernel, th=th_b, W=W, n_t=n_tb),
        out_shape=(jax.ShapeDtypeStruct((B, H, W, cout_p), ACT_DTYPE),
                   jax.ShapeDtypeStruct((B, n_tb, 2, cout_p), jnp.float32)),
        grid=(B, n_tb),
        in_specs=[
            pl.BlockSpec((None, th_b, W, cout_p), lambda b, j: (b, j, 0, 0)),
            pl.BlockSpec((None, 1, W, cout_p),
                         lambda b, j: (b, jnp.maximum(j * th_b - 1, 0), 0, 0)),
            pl.BlockSpec((None, 1, W, cout_p),
                         lambda b, j: (b, jnp.minimum(j * th_b + th_b, H - 1), 0, 0)),
            pl.BlockSpec((1, cout_p), lambda b, j: (0, 0)),
            pl.BlockSpec((1, cout_p), lambda b, j: (0, 0)),
            pl.BlockSpec((3, 3 * cout_p, cout_p), lambda b, j: (0, 0, 0)),
        ],
        out_specs=(
            pl.BlockSpec((None, th_b, W, cout_p), lambda b, j: (b, j, 0, 0)),
            pl.BlockSpec((None, None, 2, cout_p), lambda b, j: (b, j, 0, 0)),
        ),
        compiler_params=cparams,
        cost_estimate=pl.CostEstimate(flops=int(flops_b), transcendentals=0,
                                      bytes_accessed=int(bytes_b)),
    )(y1, y1, y1, scale1, shift1, w2)

    scale2, shift2 = _scale_shift(st2, gamma2, beta2, count)

    # ------------------------------------------------------------- stage C
    th_c = th_b
    n_tc = H // th_c
    bytes_c = B * H * W * cout_p * (2 + 4) + B * (H // 2) * (W // 2) * cout_p * 4
    x_full, p_full = pl.pallas_call(
        functools.partial(_bn2_pool_kernel, th=th_c, W=W),
        out_shape=(jax.ShapeDtypeStruct((B, H, W, cout_p), jnp.float32),
                   jax.ShapeDtypeStruct((B, H // 2, W // 2, cout_p), jnp.float32)),
        grid=(B, n_tc),
        in_specs=[
            pl.BlockSpec((None, th_c, W, cout_p), lambda b, j: (b, j, 0, 0)),
            pl.BlockSpec((1, cout_p), lambda b, j: (0, 0)),
            pl.BlockSpec((1, cout_p), lambda b, j: (0, 0)),
        ],
        out_specs=(
            pl.BlockSpec((None, th_c, W, cout_p), lambda b, j: (b, j, 0, 0)),
            pl.BlockSpec((None, th_c // 2, W // 2, cout_p),
                         lambda b, j: (b, j, 0, 0)),
        ),
        compiler_params=cparams,
        cost_estimate=pl.CostEstimate(flops=int(B * H * W * cout_p * 3),
                                      transcendentals=0,
                                      bytes_accessed=int(bytes_c)),
    )(y2, scale2, shift2)

    x_out = x_full[..., :Cout]
    p_out = p_full[..., :Cout]
    # TODO(synk): keep NHWC channel-padded activations end-to-end when the
    # consumer is the next encoder stage; these NCHW transposes exist only to
    # match the PyTorch module boundary.
    return (jnp.transpose(x_out, (0, 3, 1, 2)),
            jnp.transpose(p_out, (0, 3, 1, 2)))


# ---------------------------------------------------------------------------
# parameters + pure-JAX reference (sanity check only)
# ---------------------------------------------------------------------------
def make_params(key, in_c, out_c):
    ks = jax.random.split(key, 8)
    return dict(
        w1=0.1 * jax.random.normal(ks[0], (out_c, in_c, 3, 3), jnp.float32),
        b1=0.1 * jax.random.normal(ks[1], (out_c,), jnp.float32),
        g1=1.0 + 0.1 * jax.random.normal(ks[2], (out_c,), jnp.float32),
        be1=0.1 * jax.random.normal(ks[3], (out_c,), jnp.float32),
        w2=0.1 * jax.random.normal(ks[4], (out_c, out_c, 3, 3), jnp.float32),
        b2=0.1 * jax.random.normal(ks[5], (out_c,), jnp.float32),
        g2=1.0 + 0.1 * jax.random.normal(ks[6], (out_c,), jnp.float32),
        be2=0.1 * jax.random.normal(ks[7], (out_c,), jnp.float32),
    )


def reference_forward(x, params):
    def conv(z, w, b):
        y = lax.conv_general_dilated(z, w, (1, 1), ((1, 1), (1, 1)),
                                     dimension_numbers=("NCHW", "OIHW", "NCHW"))
        return y + b.reshape(1, -1, 1, 1)

    def bn_relu(y, g, be):
        mu = jnp.mean(y, axis=(0, 2, 3), keepdims=True)
        var = jnp.mean((y - mu) ** 2, axis=(0, 2, 3), keepdims=True)
        yhat = (y - mu) * lax.rsqrt(var + EPS)
        return jnp.maximum(yhat * g.reshape(1, -1, 1, 1) + be.reshape(1, -1, 1, 1),
                           0.0)

    h = bn_relu(conv(x, params["w1"], params["b1"]), params["g1"], params["be1"])
    xo = bn_relu(conv(h, params["w2"], params["b2"]), params["g2"], params["be2"])
    po = lax.reduce_window(xo, -jnp.inf, lax.max, (1, 1, 2, 2), (1, 1, 2, 2),
                           "VALID")
    return xo, po


if __name__ == "__main__":
    B, Cin, Cout, H, W = 2, 4, 8, 16, 16
    key = jax.random.PRNGKey(0)
    kx, kp = jax.random.split(key)
    x = jax.random.normal(kx, (B, Cin, H, W), jnp.float32)
    params = make_params(kp, Cin, Cout)

    x_out, p_out = encoder_block_forward(x, params)
    jax.block_until_ready((x_out, p_out))

    assert x_out.shape == (B, Cout, H, W)
    assert p_out.shape == (B, Cout, H // 2, W // 2)

    # loose-tolerance sanity check vs pure-JAX f32 reference
    # (bf16 MXU operands + bf16 inter-stage activations)
    x_ref, p_ref = reference_forward(x, params)
    err_x = float(jnp.max(jnp.abs(x_out - x_ref)))
    err_p = float(jnp.max(jnp.abs(p_out - p_ref)))
    assert err_x < 0.25 and err_p < 0.25, (err_x, err_p)

    print("KERNEL_OK")
</pallas_src>

<mosaic_0001>
module attributes {stable_mosaic.version = 11 : i64} {
  func.func @_conv1_im2col_kernel(%arg0: i32, %arg1: i32, %arg2: memref<1x16x16x128xbf16, #tpu.memory_space<vmem>>, %arg3: memref<128x128xbf16, #tpu.memory_space<vmem>>, %arg4: memref<1x16x16x128xbf16, #tpu.memory_space<vmem>>, %arg5: memref<1x1x2x128xf32, #tpu.memory_space<vmem>>) attributes {dimension_semantics = [#tpu.dimension_semantics<parallel>, #tpu.dimension_semantics<parallel>], iteration_bounds = array<i64: 2, 1>, scalar_prefetch = 0 : i64, scratch_operands = 0 : i64, tpu.core_type = #tpu.core_type<tc>, window_params = [{transform_indices = @transform_0, window_bounds = array<i64: 1, 16, 16, 128>}, {pipeline_mode = #tpu.pipeline_mode<synchronous>, transform_indices = @transform_1, window_bounds = array<i64: 128, 128>}, {transform_indices = @transform_2, window_bounds = array<i64: 1, 16, 16, 128>}, {transform_indices = @transform_3, window_bounds = array<i64: 1, 1, 2, 128>}]} {
    %c0 = arith.constant 0 : index
    %c0_0 = arith.constant 0 : index
    %c0_1 = arith.constant 0 : index
    %c0_2 = arith.constant 0 : index
    %0 = vector.load %arg2[%c0, %c0_0, %c0_1, %c0_2] : memref<1x16x16x128xbf16, #tpu.memory_space<vmem>>, vector<1x16x16x128xbf16>
    %1 = vector.shape_cast %0 : vector<1x16x16x128xbf16> to vector<16x16x128xbf16>
    %2 = vector.shape_cast %1 : vector<16x16x128xbf16> to vector<256x128xbf16>
    %c0_3 = arith.constant 0 : index
    %c0_4 = arith.constant 0 : index
    %3 = vector.load %arg3[%c0_3, %c0_4] : memref<128x128xbf16, #tpu.memory_space<vmem>>, vector<128x128xbf16>
    %cst = arith.constant dense<0.000000e+00> : vector<256x128xf32>
    %4 = tpu.matmul %2, %3, %cst {dimension_numbers = #tpu.dot_dimension_numbers<[1], [0], [0], [1], [0, 0, 1, 1], [], []>} : vector<256x128xbf16>, vector<128x128xbf16>, vector<256x128xf32> -> vector<256x128xf32>
    %cst_5 = arith.constant dense<0.000000e+00> : vector<128xf32>
    %5 = vector.multi_reduction <add>, %4, %cst_5 [0] : vector<256x128xf32> to vector<128xf32>
    %6 = vector.shape_cast %5 : vector<128xf32> to vector<1x128xf32>
    %c0_6 = arith.constant 0 : index
    %c0_7 = arith.constant 0 : index
    %c0_8 = arith.constant 0 : index
    %c0_9 = arith.constant 0 : index
    %7 = vector.load %arg5[%c0_6, %c0_7, %c0_8, %c0_9] : memref<1x1x2x128xf32, #tpu.memory_space<vmem>>, vector<1x1x1x128xf32>
    %8 = vector.shape_cast %7 : vector<1x1x1x128xf32> to vector<1x128xf32>
    %9 = vector.shape_cast %6 : vector<1x128xf32> to vector<1x1x1x128xf32>
    tpu.vector_store %arg5[%c0_6, %c0_7, %c0_8, %c0_9], %9 {strides = array<i32>} : memref<1x1x2x128xf32, #tpu.memory_space<vmem>>, vector<1x1x1x128xf32>,
    %10 = arith.mulf %4, %4 : vector<256x128xf32>
    %cst_10 = arith.constant dense<0.000000e+00> : vector<128xf32>
    %11 = vector.multi_reduction <add>, %10, %cst_10 [0] : vector<256x128xf32> to vector<128xf32>
    %12 = vector.shape_cast %11 : vector<128xf32> to vector<1x128xf32>
    %c0_11 = arith.constant 0 : index
    %c0_12 = arith.constant 0 : index
    %c1 = arith.constant 1 : index
    %c0_13 = arith.constant 0 : index
    %13 = vector.load %arg5[%c0_11, %c0_12, %c1, %c0_13] : memref<1x1x2x128xf32, #tpu.memory_space<vmem>>, vector<1x1x1x128xf32>
    %14 = vector.shape_cast %13 : vector<1x1x1x128xf32> to vector<1x128xf32>
    %15 = vector.shape_cast %12 : vector<1x128xf32> to vector<1x1x1x128xf32>
    tpu.vector_store %arg5[%c0_11, %c0_12, %c1, %c0_13], %15 {strides = array<i32>} : memref<1x1x2x128xf32, #tpu.memory_space<vmem>>, vector<1x1x1x128xf32>,
    %16 = vector.shape_cast %4 : vector<256x128xf32> to vector<16x16x128xf32>
    %17 = arith.truncf %16 : vector<16x16x128xf32> to vector<16x16x128xbf16>
    %c0_14 = arith.constant 0 : index
    %c0_15 = arith.constant 0 : index
    %c0_16 = arith.constant 0 : index
    %c0_17 = arith.constant 0 : index
    %18 = vector.load %arg4[%c0_14, %c0_15, %c0_16, %c0_17] : memref<1x16x16x128xbf16, #tpu.memory_space<vmem>>, vector<1x16x16x128xbf16>
    %19 = vector.shape_cast %18 : vector<1x16x16x128xbf16> to vector<16x16x128xbf16>
    %20 = vector.shape_cast %17 : vector<16x16x128xbf16> to vector<1x16x16x128xbf16>
    tpu.vector_store %arg4[%c0_14, %c0_15, %c0_16, %c0_17], %20 {strides = array<i32>} : memref<1x16x16x128xbf16, #tpu.memory_space<vmem>>, vector<1x16x16x128xbf16>,
    return
  }
  func.func @transform_0(%arg0: i32, %arg1: i32) -> (i32, i32, i32, i32) {
    %c0_i32 = arith.constant 0 : i32
    %c0_i32_0 = arith.constant 0 : i32
    %c0_i32_1 = arith.constant 0 : i32
    return %arg0, %arg1, %c0_i32, %c0_i32_0 : i32, i32, i32, i32
  }
  func.func @transform_1(%arg0: i32, %arg1: i32) -> (i32, i32) {
    %c0_i32 = arith.constant 0 : i32
    %c0_i32_0 = arith.constant 0 : i32
    %c0_i32_1 = arith.constant 0 : i32
    return %c0_i32, %c0_i32_0 : i32, i32
  }
  func.func @transform_2(%arg0: i32, %arg1: i32) -> (i32, i32, i32, i32) {
    %c0_i32 = arith.constant 0 : i32
    %c0_i32_0 = arith.constant 0 : i32
    %c0_i32_1 = arith.constant 0 : i32
    return %arg0, %arg1, %c0_i32, %c0_i32_0 : i32, i32, i32, i32
  }
  func.func @transform_3(%arg0: i32, %arg1: i32) -> (i32, i32, i32, i32) {
    %c0_i32 = arith.constant 0 : i32
    %c0_i32_0 = arith.constant 0 : i32
    %c0_i32_1 = arith.constant 0 : i32
    return %arg0, %arg1, %c0_i32, %c0_i32_0 : i32, i32, i32, i32
  }
}

module attributes {stable_mosaic.version = 11 : i64} {
  func.func @_bn1_conv2_kernel(%arg0: i32, %arg1: i32, %arg2: memref<1x16x16x128xbf16, #tpu.memory_space<vmem>>, %arg3: memref<1x1x16x128xbf16, #tpu.memory_space<vmem>>, %arg4: memref<1x1x16x128xbf16, #tpu.memory_space<vmem>>, %arg5: memref<1x128xf32, #tpu.memory_space<vmem>>, %arg6: memref<1x128xf32, #tpu.memory_space<vmem>>, %arg7: memref<3x384x128xbf16, #tpu.memory_space<vmem>>, %arg8: memref<1x16x16x128xbf16, #tpu.memory_space<vmem>>, %arg9: memref<1x1x2x128xf32, #tpu.memory_space<vmem>>) attributes {dimension_semantics = [#tpu.dimension_semantics<parallel>, #tpu.dimension_semantics<parallel>], iteration_bounds = array<i64: 2, 1>, scalar_prefetch = 0 : i64, scratch_operands = 0 : i64, tpu.core_type = #tpu.core_type<tc>, window_params = [{transform_indices = @transform_0, window_bounds = array<i64: 1, 16, 16, 128>}, {transform_indices = @transform_1, window_bounds = array<i64: 1, 1, 16, 128>}, {transform_indices = @transform_2, window_bounds = array<i64: 1, 1, 16, 128>}, {pipeline_mode = #tpu.pipeline_mode<synchronous>, transform_indices = @transform_3, window_bounds = array<i64: 1, 128>}, {pipeline_mode = #tpu.pipeline_mode<synchronous>, transform_indices = @transform_4, window_bounds = array<i64: 1, 128>}, {pipeline_mode = #tpu.pipeline_mode<synchronous>, transform_indices = @transform_5, window_bounds = array<i64: 3, 384, 128>}, {transform_indices = @transform_6, window_bounds = array<i64: 1, 16, 16, 128>}, {transform_indices = @transform_7, window_bounds = array<i64: 1, 1, 2, 128>}]} {
    %c0 = arith.constant 0 : index
    %c0_0 = arith.constant 0 : index
    %0 = vector.load %arg5[%c0, %c0_0] : memref<1x128xf32, #tpu.memory_space<vmem>>, vector<1x128xf32>
    %c0_1 = arith.constant 0 : index
    %c0_2 = arith.constant 0 : index
    %1 = vector.load %arg6[%c0_1, %c0_2] : memref<1x128xf32, #tpu.memory_space<vmem>>, vector<1x128xf32>
    %c0_3 = arith.constant 0 : index
    %c0_4 = arith.constant 0 : index
    %c0_5 = arith.constant 0 : index
    %c0_6 = arith.constant 0 : index
    %2 = vector.load %arg3[%c0_3, %c0_4, %c0_5, %c0_6] : memref<1x1x16x128xbf16, #tpu.memory_space<vmem>>, vector<1x1x16x128xbf16>
    %3 = vector.shape_cast %2 : vector<1x1x16x128xbf16> to vector<1x16x128xbf16>
    %4 = arith.extf %3 : vector<1x16x128xbf16> to vector<1x16x128xf32>
    %5 = vector.shape_cast %0 : vector<1x128xf32> to vector<1x1x128xf32>
    %6 = vector.broadcast %5 : vector<1x1x128xf32> to vector<1x16x128xf32>
    %7 = arith.mulf %4, %6 : vector<1x16x128xf32>
    %8 = vector.shape_cast %1 : vector<1x128xf32> to vector<1x1x128xf32>
    %9 = vector.broadcast %8 : vector<1x1x128xf32> to vector<1x16x128xf32>
    %10 = arith.addf %7, %9 : vector<1x16x128xf32>
    %cst = arith.constant 0.000000e+00 : f32
    %11 = vector.broadcast %cst : f32 to vector<1x16x128xf32>
    %12 = arith.maximumf %10, %11 : vector<1x16x128xf32>
    %c0_i32 = arith.constant 0 : i32
    %13 = arith.cmpi sgt, %arg1, %c0_i32 : i32
    %14 = arith.extui %13 : i1 to i32
    %15 = arith.sitofp %14 : i32 to f32
    %16 = vector.broadcast %15 : f32 to vector<1x16x128xf32>
    %17 = arith.mulf %12, %16 : vector<1x16x128xf32>
    %c0_7 = arith.constant 0 : index
    %c0_8 = arith.constant 0 : index
    %c0_9 = arith.constant 0 : index
    %c0_10 = arith.constant 0 : index
    %18 = vector.load %arg4[%c0_7, %c0_8, %c0_9, %c0_10] : memref<1x1x16x128xbf16, #tpu.memory_space<vmem>>, vector<1x1x16x128xbf16>
    %19 = vector.shape_cast %18 : vector<1x1x16x128xbf16> to vector<1x16x128xbf16>
    %20 = arith.extf %19 : vector<1x16x128xbf16> to vector<1x16x128xf32>
    %21 = vector.shape_cast %0 : vector<1x128xf32> to vector<1x1x128xf32>
    %22 = vector.broadcast %21 : vector<1x1x128xf32> to vector<1x16x128xf32>
    %23 = arith.mulf %20, %22 : vector<1x16x128xf32>
    %24 = vector.shape_cast %1 : vector<1x128xf32> to vector<1x1x128xf32>
    %25 = vector.broadcast %24 : vector<1x1x128xf32> to vector<1x16x128xf32>
    %26 = arith.addf %23, %25 : vector<1x16x128xf32>
    %cst_11 = arith.constant 0.000000e+00 : f32
    %27 = vector.broadcast %cst_11 : f32 to vector<1x16x128xf32>
    %28 = arith.maximumf %26, %27 : vector<1x16x128xf32>
    %c0_i32_12 = arith.constant 0 : i32
    %29 = arith.cmpi slt, %arg1, %c0_i32_12 : i32
    %30 = arith.extui %29 : i1 to i32
    %31 = arith.sitofp %30 : i32 to f32
    %32 = vector.broadcast %31 : f32 to vector<1x16x128xf32>
    %33 = arith.mulf %28, %32 : vector<1x16x128xf32>
    %c0_13 = arith.constant 0 : index
    %c0_14 = arith.constant 0 : index
    %c0_15 = arith.constant 0 : index
    %c0_16 = arith.constant 0 : index
    %34 = vector.load %arg2[%c0_13, %c0_14, %c0_15, %c0_16] : memref<1x16x16x128xbf16, #tpu.memory_space<vmem>>, vector<1x16x16x128xbf16>
    %35 = vector.shape_cast %34 : vector<1x16x16x128xbf16> to vector<16x16x128xbf16>
    %36 = arith.extf %35 : vector<16x16x128xbf16> to vector<16x16x128xf32>
    %37 = vector.shape_cast %0 : vector<1x128xf32> to vector<1x1x128xf32>
    %38 = vector.broadcast %37 : vector<1x1x128xf32> to vector<16x16x128xf32>
    %39 = arith.mulf %36, %38 : vector<16x16x128xf32>
    %40 = vector.shape_cast %1 : vector<1x128xf32> to vector<1x1x128xf32>
    %41 = vector.broadcast %40 : vector<1x1x128xf32> to vector<16x16x128xf32>
    %42 = arith.addf %39, %41 : vector<16x16x128xf32>
    %cst_17 = arith.constant 0.000000e+00 : f32
    %43 = vector.broadcast %cst_17 : f32 to vector<16x16x128xf32>
    %44 = arith.maximumf %42, %43 : vector<16x16x128xf32>
    %45 = tpu.concatenate %17, %44, %33 in 0 : vector<1x16x128xf32>, vector<16x16x128xf32>, vector<1x16x128xf32> -> vector<18x16x128xf32>
    %46 = tpu.iota {dimensions = array<i32: 1>} : vector<1x16x1xi32>
    %47 = vector.extract_strided_slice %45 {offsets = [0, 0, 0], sizes = [16, 16, 128], strides = [1, 1, 1]} : vector<18x16x128xf32> to vector<16x16x128xf32>
    %c1_i32 = arith.constant 1 : i32
    %48 = vector.broadcast %c1_i32 : i32 to vector<1x16x1xi32>
    %49 = arith.cmpi sge, %46, %48 : vector<1x16x1xi32>
    %c1_i32_18 = arith.constant 1 : i32
    %50 = tpu.dynamic_rotate %47 by %c1_i32_18 dim 1 : vector<16x16x128xf32>, i32 -> vector<16x16x128xf32>
    %cst_19 = arith.constant 0.000000e+00 : f32
    %51 = vector.shape_cast %49 : vector<1x16x1xi1> to vector<1x16x1xi1>
    %52 = vector.broadcast %51 : vector<1x16x1xi1> to vector<16x16x128xi1>
    %53 = vector.broadcast %cst_19 : f32 to vector<16x16x128xf32>
    %54 = arith.select %52, %50, %53 : vector<16x16x128xi1>, vector<16x16x128xf32>
    %c15_i32 = arith.constant 15 : i32
    %55 = vector.broadcast %c15_i32 : i32 to vector<1x16x1xi32>
    %56 = arith.cmpi slt, %46, %55 : vector<1x16x1xi32>
    %c15_i32_20 = arith.constant 15 : i32
    %57 = tpu.dynamic_rotate %47 by %c15_i32_20 dim 1 : vector<16x16x128xf32>, i32 -> vector<16x16x128xf32>
    %cst_21 = arith.constant 0.000000e+00 : f32
    %58 = vector.shape_cast %56 : vector<1x16x1xi1> to vector<1x16x1xi1>
    %59 = vector.broadcast %58 : vector<1x16x1xi1> to vector<16x16x128xi1>
    %60 = vector.broadcast %cst_21 : f32 to vector<16x16x128xf32>
    %61 = arith.select %59, %57, %60 : vector<16x16x128xi1>, vector<16x16x128xf32>
    %62 = tpu.concatenate %54, %47, %61 in 2 : vector<16x16x128xf32>, vector<16x16x128xf32>, vector<16x16x128xf32> -> vector<16x16x384xf32>
    %63 = vector.shape_cast %62 : vector<16x16x384xf32> to vector<256x384xf32>
    %64 = arith.truncf %63 : vector<256x384xf32> to vector<256x384xbf16>
    %c0_22 = arith.constant 0 : index
    %c0_23 = arith.constant 0 : index
    %c0_24 = arith.constant 0 : index
    %65 = vector.load %arg7[%c0_22, %c0_23, %c0_24] : memref<3x384x128xbf16, #tpu.memory_space<vmem>>, vector<1x384x128xbf16>
    %66 = vector.shape_cast %65 : vector<1x384x128xbf16> to vector<384x128xbf16>
    %cst_25 = arith.constant dense<0.000000e+00> : vector<256x128xf32>
    %67 = tpu.matmul %64, %66, %cst_25 {dimension_numbers = #tpu.dot_dimension_numbers<[1], [0], [0], [1], [0, 0, 1, 1], [], []>} : vector<256x384xbf16>, vector<384x128xbf16>, vector<256x128xf32> -> vector<256x128xf32>
    %68 = vector.extract_strided_slice %45 {offsets = [1, 0, 0], sizes = [16, 16, 128], strides = [1, 1, 1]} : vector<18x16x128xf32> to vector<16x16x128xf32>
    %c1_i32_26 = arith.constant 1 : i32
    %69 = vector.broadcast %c1_i32_26 : i32 to vector<1x16x1xi32>
    %70 = arith.cmpi sge, %46, %69 : vector<1x16x1xi32>
    %c1_i32_27 = arith.constant 1 : i32
    %71 = tpu.dynamic_rotate %68 by %c1_i32_27 dim 1 : vector<16x16x128xf32>, i32 -> vector<16x16x128xf32>
    %cst_28 = arith.constant 0.000000e+00 : f32
    %72 = vector.shape_cast %70 : vector<1x16x1xi1> to vector<1x16x1xi1>
    %73 = vector.broadcast %72 : vector<1x16x1xi1> to vector<16x16x128xi1>
    %74 = vector.broadcast %cst_28 : f32 to vector<16x16x128xf32>
    %75 = arith.select %73, %71, %74 : vector<16x16x128xi1>, vector<16x16x128xf32>
    %c15_i32_29 = arith.constant 15 : i32
    %76 = vector.broadcast %c15_i32_29 : i32 to vector<1x16x1xi32>
    %77 = arith.cmpi slt, %46, %76 : vector<1x16x1xi32>
    %c15_i32_30 = arith.constant 15 : i32
    %78 = tpu.dynamic_rotate %68 by %c15_i32_30 dim 1 : vector<16x16x128xf32>, i32 -> vector<16x16x128xf32>
    %cst_31 = arith.constant 0.000000e+00 : f32
    %79 = vector.shape_cast %77 : vector<1x16x1xi1> to vector<1x16x1xi1>
    %80 = vector.broadcast %79 : vector<1x16x1xi1> to vector<16x16x128xi1>
    %81 = vector.broadcast %cst_31 : f32 to vector<16x16x128xf32>
    %82 = arith.select %80, %78, %81 : vector<16x16x128xi1>, vector<16x16x128xf32>
    %83 = tpu.concatenate %75, %68, %82 in 2 : vector<16x16x128xf32>, vector<16x16x128xf32>, vector<16x16x128xf32> -> vector<16x16x384xf32>
    %84 = vector.shape_cast %83 : vector<16x16x384xf32> to vector<256x384xf32>
    %85 = arith.truncf %84 : vector<256x384xf32> to vector<256x384xbf16>
    %c1 = arith.constant 1 : index
    %c0_32 = arith.constant 0 : index
    %c0_33 = arith.constant 0 : index
    %86 = vector.load %arg7[%c1, %c0_32, %c0_33] : memref<3x384x128xbf16, #tpu.memory_space<vmem>>, vector<1x384x128xbf16>
    %87 = vector.shape_cast %86 : vector<1x384x128xbf16> to vector<384x128xbf16>
    %cst_34 = arith.constant dense<0.000000e+00> : vector<256x128xf32>
    %88 = tpu.matmul %85, %87, %cst_34 {dimension_numbers = #tpu.dot_dimension_numbers<[1], [0], [0], [1], [0, 0, 1, 1], [], []>} : vector<256x384xbf16>, vector<384x128xbf16>, vector<256x128xf32> -> vector<256x128xf32>
    %89 = arith.addf %67, %88 : vector<256x128xf32>
    %90 = vector.extract_strided_slice %45 {offsets = [2, 0, 0], sizes = [16, 16, 128], strides = [1, 1, 1]} : vector<18x16x128xf32> to vector<16x16x128xf32>
    %c1_i32_35 = arith.constant 1 : i32
    %91 = vector.broadcast %c1_i32_35 : i32 to vector<1x16x1xi32>
    %92 = arith.cmpi sge, %46, %91 : vector<1x16x1xi32>
    %c1_i32_36 = arith.constant 1 : i32
    %93 = tpu.dynamic_rotate %90 by %c1_i32_36 dim 1 : vector<16x16x128xf32>, i32 -> vector<16x16x128xf32>
    %cst_37 = arith.constant 0.000000e+00 : f32
    %94 = vector.shape_cast %92 : vector<1x16x1xi1> to vector<1x16x1xi1>
    %95 = vector.broadcast %94 : vector<1x16x1xi1> to vector<16x16x128xi1>
    %96 = vector.broadcast %cst_37 : f32 to vector<16x16x128xf32>
    %97 = arith.select %95, %93, %96 : vector<16x16x128xi1>, vector<16x16x128xf32>
    %c15_i32_38 = arith.constant 15 : i32
    %98 = vector.broadcast %c15_i32_38 : i32 to vector<1x16x1xi32>
    %99 = arith.cmpi slt, %46, %98 : vector<1x16x1xi32>
    %c15_i32_39 = arith.constant 15 : i32
    %100 = tpu.dynamic_rotate %90 by %c15_i32_39 dim 1 : vector<16x16x128xf32>, i32 -> vector<16x16x128xf32>
    %cst_40 = arith.constant 0.000000e+00 : f32
    %101 = vector.shape_cast %99 : vector<1x16x1xi1> to vector<1x16x1xi1>
    %102 = vector.broadcast %101 : vector<1x16x1xi1> to vector<16x16x128xi1>
    %103 = vector.broadcast %cst_40 : f32 to vector<16x16x128xf32>
    %104 = arith.select %102, %100, %103 : vector<16x16x128xi1>, vector<16x16x128xf32>
    %105 = tpu.concatenate %97, %90, %104 in 2 : vector<16x16x128xf32>, vector<16x16x128xf32>, vector<16x16x128xf32> -> vector<16x16x384xf32>
    %106 = vector.shape_cast %105 : vector<16x16x384xf32> to vector<256x384xf32>
    %107 = arith.truncf %106 : vector<256x384xf32> to vector<256x384xbf16>
    %c2 = arith.constant 2 : index
    %c0_41 = arith.constant 0 : index
    %c0_42 = arith.constant 0 : index
    %108 = vector.load %arg7[%c2, %c0_41, %c0_42] : memref<3x384x128xbf16, #tpu.memory_space<vmem>>, vector<1x384x128xbf16>
    %109 = vector.shape_cast %108 : vector<1x384x128xbf16> to vector<384x128xbf16>
    %cst_43 = arith.constant dense<0.000000e+00> : vector<256x128xf32>
    %110 = tpu.matmul %107, %109, %cst_43 {dimension_numbers = #tpu.dot_dimension_numbers<[1], [0], [0], [1], [0, 0, 1, 1], [], []>} : vector<256x384xbf16>, vector<384x128xbf16>, vector<256x128xf32> -> vector<256x128xf32>
    %111 = arith.addf %89, %110 : vector<256x128xf32>
    %112 = vector.shape_cast %111 : vector<256x128xf32> to vector<16x16x128xf32>
    %113 = vector.shape_cast %112 : vector<16x16x128xf32> to vector<256x128xf32>
    %cst_44 = arith.constant dense<0.000000e+00> : vector<128xf32>
    %114 = vector.multi_reduction <add>, %113, %cst_44 [0] : vector<256x128xf32> to vector<128xf32>
    %115 = vector.shape_cast %114 : vector<128xf32> to vector<1x128xf32>
    %c0_45 = arith.constant 0 : index
    %c0_46 = arith.constant 0 : index
    %c0_47 = arith.constant 0 : index
    %c0_48 = arith.constant 0 : index
    %116 = vector.load %arg9[%c0_45, %c0_46, %c0_47, %c0_48] : memref<1x1x2x128xf32, #tpu.memory_space<vmem>>, vector<1x1x1x128xf32>
    %117 = vector.shape_cast %116 : vector<1x1x1x128xf32> to vector<1x128xf32>
    %118 = vector.shape_cast %115 : vector<1x128xf32> to vector<1x1x1x128xf32>
    tpu.vector_store %arg9[%c0_45, %c0_46, %c0_47, %c0_48], %118 {strides = array<i32>} : memref<1x1x2x128xf32, #tpu.memory_space<vmem>>, vector<1x1x1x128xf32>,
    %119 = arith.mulf %113, %113 : vector<256x128xf32>
    %cst_49 = arith.constant dense<0.000000e+00> : vector<128xf32>
    %120 = vector.multi_reduction <add>, %119, %cst_49 [0] : vector<256x128xf32> to vector<128xf32>
    %121 = vector.shape_cast %120 : vector<128xf32> to vector<1x128xf32>
    %c0_50 = arith.constant 0 : index
    %c0_51 = arith.constant 0 : index
    %c1_52 = arith.constant 1 : index
    %c0_53 = arith.constant 0 : index
    %122 = vector.load %arg9[%c0_50, %c0_51, %c1_52, %c0_53] : memref<1x1x2x128xf32, #tpu.memory_space<vmem>>, vector<1x1x1x128xf32>
    %123 = vector.shape_cast %122 : vector<1x1x1x128xf32> to vector<1x128xf32>
    %124 = vector.shape_cast %121 : vector<1x128xf32> to vector<1x1x1x128xf32>
    tpu.vector_store %arg9[%c0_50, %c0_51, %c1_52, %c0_53], %124 {strides = array<i32>} : memref<1x1x2x128xf32, #tpu.memory_space<vmem>>, vector<1x1x1x128xf32>,
    %125 = arith.truncf %112 : vector<16x16x128xf32> to vector<16x16x128xbf16>
    %c0_54 = arith.constant 0 : index
    %c0_55 = arith.constant 0 : index
    %c0_56 = arith.constant 0 : index
    %c0_57 = arith.constant 0 : index
    %126 = vector.load %arg8[%c0_54, %c0_55, %c0_56, %c0_57] : memref<1x16x16x128xbf16, #tpu.memory_space<vmem>>, vector<1x16x16x128xbf16>
    %127 = vector.shape_cast %126 : vector<1x16x16x128xbf16> to vector<16x16x128xbf16>
    %128 = vector.shape_cast %125 : vector<16x16x128xbf16> to vector<1x16x16x128xbf16>
    tpu.vector_store %arg8[%c0_54, %c0_55, %c0_56, %c0_57], %128 {strides = array<i32>} : memref<1x16x16x128xbf16, #tpu.memory_space<vmem>>, vector<1x16x16x128xbf16>,
    return
  }
  func.func @transform_0(%arg0: i32, %arg1: i32) -> (i32, i32, i32, i32) {
    %c0_i32 = arith.constant 0 : i32
    %c0_i32_0 = arith.constant 0 : i32
    %c0_i32_1 = arith.constant 0 : i32
    return %arg0, %arg1, %c0_i32, %c0_i32_0 : i32, i32, i32, i32
  }
  func.func @transform_1(%arg0: i32, %arg1: i32) -> (i32, i32, i32, i32) {
    %c16_i32 = arith.constant 16 : i32
    %0 = arith.muli %arg1, %c16_i32 : i32
    %c1_i32 = arith.constant 1 : i32
    %1 = arith.subi %0, %c1_i32 : i32
    %c0_i32 = arith.constant 0 : i32
    %2 = arith.maxsi %1, %c0_i32 : i32
    %c0_i32_0 = arith.constant 0 : i32
    %c0_i32_1 = arith.constant 0 : i32
    %c0_i32_2 = arith.constant 0 : i32
    return %arg0, %2, %c0_i32_0, %c0_i32_1 : i32, i32, i32, i32
  }
  func.func @transform_2(%arg0: i32, %arg1: i32) -> (i32, i32, i32, i32) {
    %c16_i32 = arith.constant 16 : i32
    %0 = arith.muli %arg1, %c16_i32 : i32
    %c16_i32_0 = arith.constant 16 : i32
    %1 = arith.addi %0, %c16_i32_0 : i32
    %c15_i32 = arith.constant 15 : i32
    %2 = arith.minsi %1, %c15_i32 : i32
    %c0_i32 = arith.constant 0 : i32
    %c0_i32_1 = arith.constant 0 : i32
    %c0_i32_2 = arith.constant 0 : i32
    return %arg0, %2, %c0_i32, %c0_i32_1 : i32, i32, i32, i32
  }
  func.func @transform_3(%arg0: i32, %arg1: i32) -> (i32, i32) {
    %c0_i32 = arith.constant 0 : i32
    %c0_i32_0 = arith.constant 0 : i32
    %c0_i32_1 = arith.constant 0 : i32
    return %c0_i32, %c0_i32_0 : i32, i32
  }
  func.func @transform_4(%arg0: i32, %arg1: i32) -> (i32, i32) {
    %c0_i32 = arith.constant 0 : i32
    %c0_i32_0 = arith.constant 0 : i32
    %c0_i32_1 = arith.constant 0 : i32
    return %c0_i32, %c0_i32_0 : i32, i32
  }
  func.func @transform_5(%arg0: i32, %arg1: i32) -> (i32, i32, i32) {
    %c0_i32 = arith.constant 0 : i32
    %c0_i32_0 = arith.constant 0 : i32
    %c0_i32_1 = arith.constant 0 : i32
    %c0_i32_2 = arith.constant 0 : i32
    return %c0_i32, %c0_i32_0, %c0_i32_1 : i32, i32, i32
  }
  func.func @transform_6(%arg0: i32, %arg1: i32) -> (i32, i32, i32, i32) {
    %c0_i32 = arith.constant 0 : i32
    %c0_i32_0 = arith.constant 0 : i32
    %c0_i32_1 = arith.constant 0 : i32
    return %arg0, %arg1, %c0_i32, %c0_i32_0 : i32, i32, i32, i32
  }
  func.func @transform_7(%arg0: i32, %arg1: i32) -> (i32, i32, i32, i32) {
    %c0_i32 = arith.constant 0 : i32
    %c0_i32_0 = arith.constant 0 : i32
    %c0_i32_1 = arith.constant 0 : i32
    return %arg0, %arg1, %c0_i32, %c0_i32_0 : i32, i32, i32, i32
  }
}

module attributes {stable_mosaic.version = 11 : i64} {
  func.func @_bn2_pool_kernel(%arg0: i32, %arg1: i32, %arg2: memref<1x16x16x128xbf16, #tpu.memory_space<vmem>>, %arg3: memref<1x128xf32, #tpu.memory_space<vmem>>, %arg4: memref<1x128xf32, #tpu.memory_space<vmem>>, %arg5: memref<1x16x16x128xf32, #tpu.memory_space<vmem>>, %arg6: memref<1x8x8x128xf32, #tpu.memory_space<vmem>>) attributes {dimension_semantics = [#tpu.dimension_semantics<parallel>, #tpu.dimension_semantics<parallel>], iteration_bounds = array<i64: 2, 1>, scalar_prefetch = 0 : i64, scratch_operands = 0 : i64, tpu.core_type = #tpu.core_type<tc>, window_params = [{transform_indices = @transform_0, window_bounds = array<i64: 1, 16, 16, 128>}, {pipeline_mode = #tpu.pipeline_mode<synchronous>, transform_indices = @transform_1, window_bounds = array<i64: 1, 128>}, {pipeline_mode = #tpu.pipeline_mode<synchronous>, transform_indices = @transform_2, window_bounds = array<i64: 1, 128>}, {transform_indices = @transform_3, window_bounds = array<i64: 1, 16, 16, 128>}, {transform_indices = @transform_4, window_bounds = array<i64: 1, 8, 8, 128>}]} {
    %c0 = arith.constant 0 : index
    %c0_0 = arith.constant 0 : index
    %c0_1 = arith.constant 0 : index
    %c0_2 = arith.constant 0 : index
    %0 = vector.load %arg2[%c0, %c0_0, %c0_1, %c0_2] : memref<1x16x16x128xbf16, #tpu.memory_space<vmem>>, vector<1x16x16x128xbf16>
    %1 = vector.shape_cast %0 : vector<1x16x16x128xbf16> to vector<16x16x128xbf16>
    %2 = arith.extf %1 : vector<16x16x128xbf16> to vector<16x16x128xf32>
    %c0_3 = arith.constant 0 : index
    %c0_4 = arith.constant 0 : index
    %3 = vector.load %arg3[%c0_3, %c0_4] : memref<1x128xf32, #tpu.memory_space<vmem>>, vector<1x128xf32>
    %4 = vector.shape_cast %3 : vector<1x128xf32> to vector<1x1x128xf32>
    %5 = vector.broadcast %4 : vector<1x1x128xf32> to vector<16x16x128xf32>
    %6 = arith.mulf %2, %5 : vector<16x16x128xf32>
    %c0_5 = arith.constant 0 : index
    %c0_6 = arith.constant 0 : index
    %7 = vector.load %arg4[%c0_5, %c0_6] : memref<1x128xf32, #tpu.memory_space<vmem>>, vector<1x128xf32>
    %8 = vector.shape_cast %7 : vector<1x128xf32> to vector<1x1x128xf32>
    %9 = vector.broadcast %8 : vector<1x1x128xf32> to vector<16x16x128xf32>
    %10 = arith.addf %6, %9 : vector<16x16x128xf32>
    %cst = arith.constant 0.000000e+00 : f32
    %11 = vector.broadcast %cst : f32 to vector<16x16x128xf32>
    %12 = arith.maximumf %10, %11 : vector<16x16x128xf32>
    %c0_7 = arith.constant 0 : index
    %c0_8 = arith.constant 0 : index
    %c0_9 = arith.constant 0 : index
    %c0_10 = arith.constant 0 : index
    %13 = vector.load %arg5[%c0_7, %c0_8, %c0_9, %c0_10] : memref<1x16x16x128xf32, #tpu.memory_space<vmem>>, vector<1x16x16x128xf32>
    %14 = vector.shape_cast %13 : vector<1x16x16x128xf32> to vector<16x16x128xf32>
    %15 = vector.shape_cast %12 : vector<16x16x128xf32> to vector<1x16x16x128xf32>
    tpu.vector_store %arg5[%c0_7, %c0_8, %c0_9, %c0_10], %15 {strides = array<i32>} : memref<1x16x16x128xf32, #tpu.memory_space<vmem>>, vector<1x16x16x128xf32>,
    %16 = vector.shape_cast %12 : vector<16x16x128xf32> to vector<8x2x16x128xf32>
    %cst_11 = arith.constant dense<0xFF800000> : vector<8x16x128xf32>
    %17 = vector.multi_reduction <maximumf>, %16, %cst_11 [1] : vector<8x2x16x128xf32> to vector<8x16x128xf32>
    %18 = vector.shape_cast %17 : vector<8x16x128xf32> to vector<8x8x2x128xf32>
    %cst_12 = arith.constant dense<0xFF800000> : vector<8x8x128xf32>
    %19 = vector.multi_reduction <maximumf>, %18, %cst_12 [2] : vector<8x8x2x128xf32> to vector<8x8x128xf32>
    %c0_13 = arith.constant 0 : index
    %c0_14 = arith.constant 0 : index
    %c0_15 = arith.constant 0 : index
    %c0_16 = arith.constant 0 : index
    %20 = vector.load %arg6[%c0_13, %c0_14, %c0_15, %c0_16] : memref<1x8x8x128xf32, #tpu.memory_space<vmem>>, vector<1x8x8x128xf32>
    %21 = vector.shape_cast %20 : vector<1x8x8x128xf32> to vector<8x8x128xf32>
    %22 = vector.shape_cast %19 : vector<8x8x128xf32> to vector<1x8x8x128xf32>
    tpu.vector_store %arg6[%c0_13, %c0_14, %c0_15, %c0_16], %22 {strides = array<i32>} : memref<1x8x8x128xf32, #tpu.memory_space<vmem>>, vector<1x8x8x128xf32>,
    return
  }
  func.func @transform_0(%arg0: i32, %arg1: i32) -> (i32, i32, i32, i32) {
    %c0_i32 = arith.constant 0 : i32
    %c0_i32_0 = arith.constant 0 : i32
    %c0_i32_1 = arith.constant 0 : i32
    return %arg0, %arg1, %c0_i32, %c0_i32_0 : i32, i32, i32, i32
  }
  func.func @transform_1(%arg0: i32, %arg1: i32) -> (i32, i32) {
    %c0_i32 = arith.constant 0 : i32
    %c0_i32_0 = arith.constant 0 : i32
    %c0_i32_1 = arith.constant 0 : i32
    return %c0_i32, %c0_i32_0 : i32, i32
  }
  func.func @transform_2(%arg0: i32, %arg1: i32) -> (i32, i32) {
    %c0_i32 = arith.constant 0 : i32
    %c0_i32_0 = arith.constant 0 : i32
    %c0_i32_1 = arith.constant 0 : i32
    return %c0_i32, %c0_i32_0 : i32, i32
  }
  func.func @transform_3(%arg0: i32, %arg1: i32) -> (i32, i32, i32, i32) {
    %c0_i32 = arith.constant 0 : i32
    %c0_i32_0 = arith.constant 0 : i32
    %c0_i32_1 = arith.constant 0 : i32
    return %arg0, %arg1, %c0_i32, %c0_i32_0 : i32, i32, i32, i32
  }
  func.func @transform_4(%arg0: i32, %arg1: i32) -> (i32, i32, i32, i32) {
    %c0_i32 = arith.constant 0 : i32
    %c0_i32_0 = arith.constant 0 : i32
    %c0_i32_1 = arith.constant 0 : i32
    return %arg0, %arg1, %c0_i32, %c0_i32_0 : i32, i32, i32, i32
  }
}

</mosaic_0001>

<bundles_post_ra>
// kernel: encoder_block_forward.3
= control target key start
LH: loop header
LB: loop body
LE: loop exit
PB: predicated region body
PF: predicated region fallthrough
CT: control target
= control target key end

     0   :  { %s1370_s12 = smov 0   ;;  %s1372_s13 = smov 0   ;;  %s1564_s0 = inlined_call_operand.vmem [shape: bf16[2,16,16,128], index: 0, kind: input, shape index: {}]   ;;  %s1565_s1 = inlined_call_operand.vmem [shape: bf16[128,128], index: 1, kind: input, shape index: {}]   ;;  %s1566_s2 = inlined_call_operand.vmem [shape: bf16[2,16,16,128], index: 2, kind: output, shape index: {0}]   ;;  %s1567_s3 = inlined_call_operand.vmem [shape: f32[2,1,2,128], index: 3, kind: output, shape index: {1}]  }
   0x1   :  { %s1374_s14 = smov 0  }
   0x2 LB: > { %s26_s15 = sadd.s32 1, %s1344_s13  ;;  %p997_p0 = scmp.ge.s32.totalorder %s1348_s14, 1  ;;  %s1348_s14 = sphi %s1374_s14, %s14_s14   ;;  %s1344_s13 = sphi %s1372_s13, %s1569_s13   ;;  %s1340_s12 = sphi %s1370_s12, %s1568_s12  }
   0x3   : > { %p28_p1 = scmp.ge.s32.totalorder %s26_s15, 2  ;;  %p164_p2 = scmp.lt.s32.totalorder %s1348_s14, 3 }
   0x5   : > { %s1571_s15 = smov (%p28_p1, %s26_s15), 0  ;;  %p165_p3 = pnand %p997_p0, %p164_p2 }
   0x6   : > { %p206_p4 = scmp.lt.s32.totalorder (!%p165_p3), %s1340_s12, 1 }
   0x7   : > { %168 = sbr.rel (%p165_p3) target bundleno = 321 (0x141), region = 28 }
   0xc   : > { %v1302_v0 = vld [vmem:[%s1565_s1 + $0x38] sm:$0xff]   ;;  %v1303_v1 = vld [vmem:[%s1565_s1 + $0x30] sm:$0xff]   ;;  %s1573_s12 = smov (!%p206_p4, %s1340_s12), 1  ;;  %v1304_v2 = vld [vmem:[%s1565_s1 + $0x28] sm:$0xff]  }
   0xd   : > { %1214 = vmatprep.subr.bf16.mxu0 %v1302_v0  ;;  %1262 = vmatprep.subr.bf16.mxu1 %v1302_v0  ;;  %s1061_s22 = sshll.u32 %s1573_s12, 7  ;;  %v1305_v3 = vld [vmem:[%s1565_s1 + $0x20] sm:$0xff]   ;;  %v1306_v5 = vld [vmem:[%s1565_s1 + $0x18] sm:$0xff]   ;;  %v1307_v6 = vld [vmem:[%s1565_s1 + $0x10] sm:$0xff]   ;;  %s1002_s16 = sshll.u32 %s1573_s12, 1 }
   0xe   : > { %1215 = vmatpush3.bf16.msra.mxu0 %v1302_v0  ;;  %1270 = vmatpush3.bf16.msra.mxu1 %v1302_v0  ;;  %s1405_s25 = scalar_lea.vmem %s1564_s0, %s1061_s22  ;;  %v1308_v8 = vld [vmem:[%s1565_s1 + $0x8] sm:$0xff]   ;;  %v1309_v9 = vld [vmem:[%s1565_s1] sm:$0xff]   ;;  %s1447_s11 = scalar_lea.vmem %s1566_s2, %s1061_s22 }
   0xf   : > { %1216 = vmatprep.subr.bf16.mxu0 %v1303_v1  ;;  %1263 = vmatprep.subr.bf16.mxu1 %v1303_v1  ;;  %v1310_v4 = vld [vmem:[%s1405_s25] sm:$0xff]   ;;  %v1311_v10 = vld [vmem:[%s1405_s25 + $0x8] sm:$0xff]   ;;  %v1312_v12 = vld [vmem:[%s1405_s25 + $0x10] sm:$0xff]   ;;  %s233_s19 = scalar_lea.vmem %s1567_s3, %s1002_s16 }
  0x10   : > { %1230 = vmatprep.mubr.bf16.mxu0 %v1310_v4  ;;  %v1318_v7 = vld [vmem:[%s1405_s25 + $0x40] sm:$0xff]   ;;  %v1319_v11 = vld [vmem:[%s1405_s25 + $0x48] sm:$0xff]   ;;  %v1320_v13 = vld [vmem:[%s1405_s25 + $0x50] sm:$0xff]  }
  0x11   : > { %1246 = vmatprep.mubr.bf16.mxu1 %v1318_v7  ;;  %v1313_v14 = vld [vmem:[%s1405_s25 + $0x18] sm:$0xff]   ;;  %v1314_v16 = vld [vmem:[%s1405_s25 + $0x20] sm:$0xff]   ;;  %v1315_v18 = vld [vmem:[%s1405_s25 + $0x28] sm:$0xff]  }
  0x12   : > { %1217 = vmatpush3.bf16.msra.mxu0 %v1303_v1  ;;  %1271 = vmatpush3.bf16.msra.mxu1 %v1303_v1  ;;  %v1321_v15 = vld [vmem:[%s1405_s25 + $0x58] sm:$0xff]   ;;  %v1322_v17 = vld [vmem:[%s1405_s25 + $0x60] sm:$0xff]   ;;  %v1323_v19 = vld [vmem:[%s1405_s25 + $0x68] sm:$0xff]  }
  0x13   : > { %1218 = vmatprep.subr.bf16.mxu0 %v1304_v2  ;;  %1264 = vmatprep.subr.bf16.mxu1 %v1304_v2  ;;  %v1316_v20 = vld [vmem:[%s1405_s25 + $0x30] sm:$0xff]   ;;  %v1317_v22 = vld [vmem:[%s1405_s25 + $0x38] sm:$0xff]  }
  0x14   : > { %v1324_v21 = vld [vmem:[%s1405_s25 + $0x70] sm:$0xff]   ;;  %v1325_v23 = vld [vmem:[%s1405_s25 + $0x78] sm:$0xff]  }
  0x16   : > { %1219 = vmatpush3.bf16.msra.mxu0 %v1304_v2  ;;  %1272 = vmatpush3.bf16.msra.mxu1 %v1304_v2 }
  0x17   : > { %1220 = vmatprep.subr.bf16.mxu0 %v1305_v3  ;;  %1265 = vmatprep.subr.bf16.mxu1 %v1305_v3 }
  0x1a   : > { %1221 = vmatpush3.bf16.msra.mxu0 %v1305_v3  ;;  %1273 = vmatpush3.bf16.msra.mxu1 %v1305_v3 }
  0x1b   : > { %1222 = vmatprep.subr.bf16.mxu0 %v1306_v5  ;;  %1266 = vmatprep.subr.bf16.mxu1 %v1306_v5 }
  0x1e   : > { %1223 = vmatpush3.bf16.msra.mxu0 %v1306_v5  ;;  %1274 = vmatpush3.bf16.msra.mxu1 %v1306_v5 }
  0x1f   : > { %1224 = vmatprep.subr.bf16.mxu0 %v1307_v6  ;;  %1267 = vmatprep.subr.bf16.mxu1 %v1307_v6 }
  0x22   : > { %1225 = vmatpush3.bf16.msra.mxu0 %v1307_v6  ;;  %1275 = vmatpush3.bf16.msra.mxu1 %v1307_v6 }
  0x23   : > { %1226 = vmatprep.subr.bf16.mxu0 %v1308_v8  ;;  %1268 = vmatprep.subr.bf16.mxu1 %v1308_v8 }
  0x26   : > { %1227 = vmatpush3.bf16.msra.mxu0 %v1308_v8  ;;  %1276 = vmatpush3.bf16.msra.mxu1 %v1308_v8 }
  0x27   : > { %1228 = vmatprep.subr.bf16.mxu0 %v1309_v9  ;;  %1269 = vmatprep.subr.bf16.mxu1 %v1309_v9 }
  0x2a   : > { %1229 = vmatpush3.bf16.msra.mxu0 %v1309_v9  ;;  %1277 = vmatpush3.bf16.msra.mxu1 %v1309_v9 }
  0x2d   : > { %1231 = vmatmul.mubr.bf16.vlgmr.msra.gmra.mxu0 %v1311_v10  ;;  %1247 = vmatmul.mubr.bf16.vlgmr.msra.gmra.mxu1 %v1319_v11 }
  0x2e   : > { %1234 = vmatprep.mubr.bf16.mxu0 %v1312_v12  ;;  %1250 = vmatprep.mubr.bf16.mxu1 %v1320_v13 }
  0x35   : > { %1235 = vmatmul.mubr.bf16.gmra.mxu0 %v1313_v14  ;;  %1251 = vmatmul.mubr.bf16.gmra.mxu1 %v1321_v15 }
  0x36   : > { %1238 = vmatprep.mubr.bf16.mxu0 %v1314_v16  ;;  %1254 = vmatprep.mubr.bf16.mxu1 %v1322_v17 }
  0x3d   : > { %1239 = vmatmul.mubr.bf16.gmra.mxu0 %v1315_v18  ;;  %1255 = vmatmul.mubr.bf16.gmra.mxu1 %v1323_v19 }
  0x3e   : > { %1242 = vmatprep.mubr.bf16.mxu0 %v1316_v20  ;;  %1258 = vmatprep.mubr.bf16.mxu1 %v1324_v21 }
  0x45   : > { %1243 = vmatmul.mubr.bf16.gmra.mxu0 %v1317_v22  ;;  %1259 = vmatmul.mubr.bf16.gmra.mxu1 %v1325_v23 }
  0xed   : > { %v1232_v24 = vpop.f32.mrf.mxu0  ;;  %v1438_v25 = vpop.f32.mrf.mxu1 }
  0xee   : > { %v628_v41 = vmul.f32 %v1232_v24, %v1232_v24 }
  0xef   : > { %v461_v26 = vpop.f32.mrf.mxu0  ;;  %v1440_v27 = vpop.f32.mrf.mxu1 }
  0xf0   : > { %v626_v34 = vmul.f32 %v461_v26, %v461_v26 }
  0xf1   : > { %v1233_v28 = vpop.f32.mrf.mxu0  ;;  %v1449_v29 = vpop.f32.mrf.mxu1 }
  0xf2   : > { %v1103_v30 = vpack.c.bf16 %v1233_v28, %v1232_v24  ;;  %v1143_v31 = vpack.c.bf16 %v1449_v29, %v1438_v25  ;;  %v629_v46 = vmul.f32 %v1233_v28, %v1233_v28 }
  0xf3   : > { %v464_v32 = vpop.f32.mrf.mxu0  ;;  %v1453_v33 = vpop.f32.mrf.mxu1 }
  0xf4   : > { %1175 = vst [vmem:[%s1447_s11 + $0x8] sm:$0xff] %v1103_v30   ;;  %v588_v35 = vadd.f32 %v464_v32, %v461_v26  ;;  %v627_v36 = vmul.f32 %v464_v32, %v464_v32  ;;  %v1098_v37 = vpack.c.bf16 %v464_v32, %v461_v26  ;;  %1183 = vst [vmem:[%s1447_s11 + $0x48] sm:$0xff] %v1143_v31  }
  0xf5   : > { %v1236_v38 = vpop.f32.mrf.mxu0  ;;  %v1138_v39 = vpack.c.bf16 %v1453_v33, %v1440_v27  ;;  %v1459_v40 = vpop.f32.mrf.mxu1 }
  0xf6   : > { %v589_v42 = vadd.f32 %v1232_v24, %v588_v35  ;;  %v658_v43 = vadd.f32 %v627_v36, %v626_v34  ;;  %1099 = vst [vmem:[%s1447_s11] sm:$0xff] %v1098_v37   ;;  %v632_v1 = vmul.f32 %v1236_v38, %v1236_v38 }
  0xf7   : > { %v477_v44 = vpop.f32.mrf.mxu0  ;;  %1182 = vst [vmem:[%s1447_s11 + $0x40] sm:$0xff] %v1138_v39   ;;  %v1463_v45 = vpop.f32.mrf.mxu1 }
  0xf8   : > { %v659_v47 = vadd.f32 %v658_v43, %v628_v41  ;;  %v590_v48 = vadd.f32 %v1233_v28, %v589_v42  ;;  %v630_v52 = vmul.f32 %v477_v44, %v477_v44 }
  0xf9   : > { %v1237_v49 = vpop.f32.mrf.mxu0  ;;  %v1465_v50 = vpop.f32.mrf.mxu1 }
  0xfa   : > { %v591_v51 = vadd.f32 %v590_v48, %v477_v44  ;;  %v660_v53 = vadd.f32 %v659_v47, %v629_v46  ;;  %v1113_v54 = vpack.c.bf16 %v1237_v49, %v1236_v38  ;;  %v1153_v56 = vpack.c.bf16 %v1465_v50, %v1459_v40 }
  0xfb   : > { %v480_v55 = vpop.f32.mrf.mxu0  ;;  %v1469_v57 = vpop.f32.mrf.mxu1  ;;  %v633_v6 = vmul.f32 %v1237_v49, %v1237_v49 }
  0xfc   : > { %v661_v58 = vadd.f32 %v660_v53, %v630_v52  ;;  %1177 = vst [vmem:[%s1447_s11 + $0x18] sm:$0xff] %v1113_v54   ;;  %v592_v59 = vadd.f32 %v591_v51, %v480_v55  ;;  %v631_v60 = vmul.f32 %v480_v55, %v480_v55  ;;  %v1108_v61 = vpack.c.bf16 %v480_v55, %v477_v44 }
  0xfd   : > { %v1240_v62 = vpop.f32.mrf.mxu0  ;;  %1185 = vst [vmem:[%s1447_s11 + $0x58] sm:$0xff] %v1153_v56   ;;  %v1148_v63 = vpack.c.bf16 %v1469_v57, %v1463_v45  ;;  %v1475_v0 = vpop.f32.mrf.mxu1 }
  0xfe   : > { %v593_v2 = vadd.f32 %v1236_v38, %v592_v59  ;;  %v662_v3 = vadd.f32 %v661_v58, %v631_v60  ;;  %1176 = vst [vmem:[%s1447_s11 + $0x10] sm:$0xff] %v1108_v61   ;;  %v636_v26 = vmul.f32 %v1240_v62, %v1240_v62  ;;  %v642_v61 = vmul.f32 %v1440_v27, %v1440_v27 }
  0xff   : > { %v493_v4 = vpop.f32.mrf.mxu0  ;;  %1184 = vst [vmem:[%s1447_s11 + $0x50] sm:$0xff] %v1148_v63   ;;  %v1479_v5 = vpop.f32.mrf.mxu1 }
 0x100   : > { %v663_v7 = vadd.f32 %v662_v3, %v632_v1  ;;  %v594_v8 = vadd.f32 %v1237_v49, %v593_v2  ;;  %v634_v12 = vmul.f32 %v493_v4, %v493_v4  ;;  %v643_v2 = vmul.f32 %v1453_v33, %v1453_v33 }
 0x101   : > { %v1241_v9 = vpop.f32.mrf.mxu0  ;;  %v1481_v10 = vpop.f32.mrf.mxu1 }
 0x102   : > { %v595_v11 = vadd.f32 %v594_v8, %v493_v4  ;;  %v664_v13 = vadd.f32 %v663_v7, %v633_v6  ;;  %v1123_v14 = vpack.c.bf16 %v1241_v9, %v1240_v62  ;;  %v1163_v16 = vpack.c.bf16 %v1481_v10, %v1475_v0 }
 0x103   : > { %v496_v15 = vpop.f32.mrf.mxu0  ;;  %v1485_v17 = vpop.f32.mrf.mxu1  ;;  %v637_v34 = vmul.f32 %v1241_v9, %v1241_v9  ;;  %v645_v8 = vmul.f32 %v1449_v29, %v1449_v29 }
 0x104   : > { %v665_v18 = vadd.f32 %v664_v13, %v634_v12  ;;  %1179 = vst [vmem:[%s1447_s11 + $0x28] sm:$0xff] %v1123_v14   ;;  %v596_v19 = vadd.f32 %v595_v11, %v496_v15  ;;  %v635_v20 = vmul.f32 %v496_v15, %v496_v15  ;;  %v1118_v21 = vpack.c.bf16 %v496_v15, %v493_v4 }
 0x105   : > { %v1244_v22 = vpop.f32.mrf.mxu0  ;;  %1187 = vst [vmem:[%s1447_s11 + $0x68] sm:$0xff] %v1163_v16   ;;  %v1158_v23 = vpack.c.bf16 %v1485_v17, %v1479_v5  ;;  %v1491_v24 = vpop.f32.mrf.mxu1  ;;  %v644_v4 = vmul.f32 %v1438_v25, %v1438_v25  ;;  %v646_v12 = vmul.f32 %v1463_v45, %v1463_v45  ;;  %v647_v15 = vmul.f32 %v1469_v57, %v1469_v57 }
 0x106   : > { %v597_v28 = vadd.f32 %v1240_v62, %v596_v19  ;;  %v666_v30 = vadd.f32 %v665_v18, %v635_v20  ;;  %1178 = vst [vmem:[%s1447_s11 + $0x20] sm:$0xff] %v1118_v21   ;;  %v640_v54 = vmul.f32 %v1244_v22, %v1244_v22  ;;  %v650_v21 = vmul.f32 %v1479_v5, %v1479_v5 }
 0x107   : > { %v509_v31 = vpop.f32.mrf.mxu0  ;;  %1186 = vst [vmem:[%s1447_s11 + $0x60] sm:$0xff] %v1158_v23   ;;  %v1495_v32 = vpop.f32.mrf.mxu1 }
 0x108   : > { %v667_v35 = vadd.f32 %v666_v30, %v636_v26  ;;  %v598_v36 = vadd.f32 %v1241_v9, %v597_v28  ;;  %v638_v41 = vmul.f32 %v509_v31, %v509_v31  ;;  %v651_v26 = vmul.f32 %v1485_v17, %v1485_v17 }
 0x109   : > { %v1245_v37 = vpop.f32.mrf.mxu0  ;;  %v1497_v38 = vpop.f32.mrf.mxu1 }
 0x10a   : > { %v599_v39 = vadd.f32 %v598_v36, %v509_v31  ;;  %v668_v42 = vadd.f32 %v667_v35, %v637_v34  ;;  %v1133_v43 = vpack.c.bf16 %v1245_v37, %v1244_v22  ;;  %v1173_v46 = vpack.c.bf16 %v1497_v38, %v1491_v24 }
 0x10b   : > { %v512_v44 = vpop.f32.mrf.mxu0  ;;  %v576_v47 = vpop.f32.mrf.mxu1  ;;  %v641_v58 = vmul.f32 %v1245_v37, %v1245_v37  ;;  %v654_v35 = vmul.f32 %v1495_v32, %v1495_v32 }
 0x10c   : > { %v669_v48 = vadd.f32 %v668_v42, %v638_v41  ;;  %1181 = vst [vmem:[%s1447_s11 + $0x38] sm:$0xff] %v1133_v43   ;;  %v600_v49 = vadd.f32 %v599_v39, %v512_v44  ;;  %v639_v51 = vmul.f32 %v512_v44, %v512_v44  ;;  %v1128_v52 = vpack.c.bf16 %v512_v44, %v509_v31 }
 0x10d   : > { %1189 = vst [vmem:[%s1447_s11 + $0x78] sm:$0xff] %v1173_v46   ;;  %v1168_v53 = vpack.c.bf16 %v576_v47, %v1495_v32  ;;  %v655_v39 = vmul.f32 %v576_v47, %v576_v47  ;;  %v657_v43 = vmul.f32 %v1497_v38, %v1497_v38 }
 0x10e   : > { %v601_v55 = vadd.f32 %v1244_v22, %v600_v49  ;;  %v670_v56 = vadd.f32 %v669_v48, %v639_v51  ;;  %1180 = vst [vmem:[%s1447_s11 + $0x30] sm:$0xff] %v1128_v52  }
 0x10f   : > { %1188 = vst [vmem:[%s1447_s11 + $0x70] sm:$0xff] %v1168_v53  }
 0x110   : > { %v602_v59 = vadd.f32 %v1245_v37, %v601_v55  ;;  %v671_v60 = vadd.f32 %v670_v56, %v640_v54 }
 0x112   : > { %v672_v62 = vadd.f32 %v671_v60, %v641_v58  ;;  %v603_v63 = vadd.f32 %v602_v59, %v1440_v27 }
 0x114   : > { %v604_v1 = vadd.f32 %v603_v63, %v1453_v33  ;;  %v673_v3 = vadd.f32 %v672_v62, %v642_v61 }
 0x116   : > { %v605_v6 = vadd.f32 %v1438_v25, %v604_v1  ;;  %v674_v7 = vadd.f32 %v673_v3, %v643_v2  ;;  %v648_v25 = vmul.f32 %v1459_v40, %v1459_v40 }
 0x118   : > { %v675_v9 = vadd.f32 %v674_v7, %v644_v4  ;;  %v606_v11 = vadd.f32 %v1449_v29, %v605_v6  ;;  %v649_v29 = vmul.f32 %v1465_v50, %v1465_v50 }
 0x11a   : > { %v607_v27 = vadd.f32 %v606_v11, %v1463_v45  ;;  %v676_v13 = vadd.f32 %v675_v9, %v645_v8 }
 0x11c   : > { %v677_v33 = vadd.f32 %v676_v13, %v646_v12  ;;  %v608_v14 = vadd.f32 %v607_v27, %v1469_v57 }
 0x11e   : > { %v609_v16 = vadd.f32 %v1459_v40, %v608_v14  ;;  %v678_v18 = vadd.f32 %v677_v33, %v647_v15  ;;  %v652_v40 = vmul.f32 %v1475_v0, %v1475_v0 }
 0x120   : > { %v679_v19 = vadd.f32 %v678_v18, %v648_v25  ;;  %v610_v20 = vadd.f32 %v1465_v50, %v609_v16  ;;  %v653_v50 = vmul.f32 %v1481_v10, %v1481_v10 }
 0x122   : > { %v611_v45 = vadd.f32 %v610_v20, %v1479_v5  ;;  %v680_v22 = vadd.f32 %v679_v19, %v649_v29 }
 0x124   : > { %v681_v23 = vadd.f32 %v680_v22, %v650_v21  ;;  %v612_v57 = vadd.f32 %v611_v45, %v1485_v17 }
 0x126   : > { %v613_v28 = vadd.f32 %v1475_v0, %v612_v57  ;;  %v682_v30 = vadd.f32 %v681_v23, %v651_v26  ;;  %v656_v0 = vmul.f32 %v1491_v24, %v1491_v24 }
 0x128   : > { %v683_v31 = vadd.f32 %v682_v30, %v652_v40  ;;  %v614_v34 = vadd.f32 %v1481_v10, %v613_v28 }
 0x12a   : > { %v615_v5 = vadd.f32 %v614_v34, %v1495_v32  ;;  %v684_v36 = vadd.f32 %v683_v31, %v653_v50 }
 0x12c   : > { %v685_v17 = vadd.f32 %v684_v36, %v654_v35  ;;  %v616_v37 = vadd.f32 %v615_v5, %v576_v47 }
 0x12e   : > { %v617_v41 = vadd.f32 %v1491_v24, %v616_v37  ;;  %v686_v42 = vadd.f32 %v685_v17, %v655_v39 }
 0x130   : > { %v618_v10 = vadd.f32 %v1497_v38, %v617_v41  ;;  %v687_v44 = vadd.f32 %v686_v42, %v656_v0 }
 0x132   : > { %v619_v46 = vrot.slane %v618_v10, 4  ;;  %v688_v48 = vadd.f32 %v687_v44, %v657_v43 }
 0x134   : > { %v620_v32 = vadd.f32 %v619_v46, %v618_v10  ;;  %v689_v49 = vrot.slane %v688_v48, 4 }
 0x136   : > { %v621_v51 = vrot.slane %v620_v32, 2  ;;  %v690_v52 = vadd.f32 %v689_v49, %v688_v48 }
 0x138   : > { %v622_v47 = vadd.f32 %v621_v51, %v620_v32  ;;  %v691_v53 = vrot.slane %v690_v52, 2 }
 0x13a   : > { %v623_v54 = vrot.slane %v622_v47, 1  ;;  %v692_v55 = vadd.f32 %v691_v53, %v690_v52 }
 0x13c   : > { %v624_v24 = vadd.f32 %v623_v54, %v622_v47  ;;  %v693_v56 = vrot.slane %v692_v55, 1 }
 0x13e   : > { %625 = vst [vmem:[%s233_s19] sm:$0x1] %v624_v24  ;;  %v694_v38 = vadd.f32 %v693_v56, %v692_v55 }
 0x140   : > { %695 = vst [vmem:[%s233_s19 + $0x1] sm:$0x1] %v694_v38 }
 0x141 PF: > { %s14_s14 = sadd.s32 1, %s1348_s14   ;;  %s1568_s12 = smov %s1344_s13 }
 0x142   : > { %p11_p5 = scmp.ge.s32.totalorder %s14_s14, 4   ;;  %s1569_s13 = smov %s1571_s15 }
 0x144   :  { %13 = sbr.rel (!%p11_p5) target bundleno = 2 (0x2), region = 70 }

// kernel: encoder_block_forward.5
= control target key start
LH: loop header
LB: loop body
LE: loop exit
PB: predicated region body
PF: predicated region fallthrough
CT: control target
= control target key end

     0   :  { %s1750_s15 = smov 0   ;;  %s1752_s16 = smov 0   ;;  %s2467_s0 = inlined_call_operand.vmem [shape: bf16[2,16,16,128], index: 0, kind: input, shape index: {}]   ;;  %s2468_s1 = inlined_call_operand.vmem [shape: f32[1,128], index: 1, kind: input, shape index: {}]   ;;  %s2469_s2 = inlined_call_operand.vmem [shape: f32[1,128], index: 2, kind: input, shape index: {}]   ;;  %s2470_s3 = inlined_call_operand.vmem [shape: f32[2,16,16,128], index: 3, kind: output, shape index: {0}]   ;;  %s2471_s4 = inlined_call_operand.vmem [shape: f32[2,8,8,128], index: 4, kind: output, shape index: {1}]  }
   0x1   :  { %s1754_s17 = smov 0  }
   0x2 LB: > { %s27_s18 = sadd.s32 1, %s1718_s16  ;;  %p1582_p0 = scmp.ge.s32.totalorder %s1722_s17, 1  ;;  %s1722_s17 = sphi %s1754_s17, %s15_s17   ;;  %s1718_s16 = sphi %s1752_s16, %s2549_s16   ;;  %s1714_s15 = sphi %s1750_s15, %s2548_s15  }
   0x3   : > { %p29_p1 = scmp.ge.s32.totalorder %s27_s18, 2  ;;  %p189_p2 = scmp.lt.s32.totalorder %s1722_s17, 3 }
   0x5   : > { %s2551_s18 = smov (%p29_p1, %s27_s18), 0  ;;  %p190_p3 = pnand %p1582_p0, %p189_p2 }
   0x7   : > { %193 = sbr.rel (%p190_p3) target bundleno = 212 (0xd4), region = 32 }
   0xc   : > { %p235_p4 = scmp.lt.s32.totalorder %s1714_s15, 1  ;;  %v508_v0 = vlaneseq  ;;  %v1724_v1 = vmov 1983009808   ;;  %v1779_v5 = vld [vmem:[%s2468_s1] ss:$0 sm:$0xff]  ;;  %vm840_vm0 = vcmask 1041408  }
   0xd   : > { %v506_v2 = vunpack.c.l.s4 %v1724_v1  ;;  %v1790_v15 = vld [vmem:[%s2469_s2] ss:$0 sm:$0xff]  ;;  %vm1353_vm1 = vcmask 1041409   ;;  %vm1355_vm2 = vcmask 1042434   ;;  %vm1357_vm3 = vcmask 1043459  }
   0xe   : > { %s2553_s15 = smov (!%p235_p4, %s1714_s15), 1  ;;  %v509_v3 = vshrl.u32 %v508_v0, 7  ;;  %vm1359_vm4 = vcmask 1044484   ;;  %vm1361_vm5 = vcmask 1045509   ;;  %vm1363_vm6 = vcmask 1046534  }
   0xf   : > { %s1593_s19 = sshll.u32 %s2553_s15, 7  ;;  %v507_v4 = vunpack.c.0.s8 %v506_v2  ;;  %s1594_s27 = sshll.u32 %s2553_s15, 8  ;;  %vm1365_vm7 = vcmask 1047559  }
  0x10   : > { %s1774_s22 = scalar_lea.vmem %s2467_s0, %s1593_s19  ;;  %s1808_s30 = scalar_lea.vmem %s2470_s3, %s1594_s27 }
  0x11   : > { %v1597_v6 = vld [vmem:[%s1774_s22] sm:$0xff]   ;;  %v1660_v7 = vld [vmem:[%s1774_s22 + $0x8] sm:$0xff]   ;;  %v1783_v8 = vsub.s32 %v507_v4, %v509_v3  ;;  %v1661_v9 = vld [vmem:[%s1774_s22 + $0x10] sm:$0xff]   ;;  %s1595_s5 = sshll.u32 %s2553_s15, 6 }
  0x12   : > { %v1598_v10 = vunpack.c.l.bf16 %v1597_v6  ;;  %v1599_v11 = vunpack.c.h.bf16 %v1597_v6  ;;  %v1602_v12 = vunpack.c.l.bf16 %v1660_v7  ;;  %v1603_v13 = vunpack.c.h.bf16 %v1660_v7  ;;  %v1662_v14 = vld [vmem:[%s1774_s22 + $0x18] sm:$0xff]   ;;  %v1815_v36 = vld [vmem:[%s1774_s22 + $0x20] sm:$0xff]   ;;  %v1818_v41 = vld [vmem:[%s1774_s22 + $0x28] sm:$0xff]   ;;  %s2284_s8 = scalar_lea.vmem %s2471_s4, %s1595_s5 }
  0x13   : > { %v1606_v16 = vunpack.c.l.bf16 %v1661_v9  ;;  %v1607_v17 = vunpack.c.h.bf16 %v1661_v9  ;;  %v1610_v18 = vunpack.c.l.bf16 %v1662_v14  ;;  %v1611_v19 = vunpack.c.h.bf16 %v1662_v14 }
  0x14   : > { %v337_v20 = vmul.f32 %v1598_v10, %v1779_v5  ;;  %v338_v21 = vmul.f32 %v1599_v11, %v1779_v5  ;;  %v339_v22 = vmul.f32 %v1602_v12, %v1779_v5  ;;  %v340_v23 = vmul.f32 %v1603_v13, %v1779_v5 }
  0x15   : > { %v341_v24 = vmul.f32 %v1606_v16, %v1779_v5  ;;  %v342_v25 = vmul.f32 %v1607_v17, %v1779_v5  ;;  %v343_v26 = vmul.f32 %v1610_v18, %v1779_v5  ;;  %v344_v27 = vmul.f32 %v1611_v19, %v1779_v5 }
  0x16   : > { %v376_v28 = vadd.f32 %v1790_v15, %v337_v20  ;;  %v377_v29 = vadd.f32 %v1790_v15, %v338_v21  ;;  %v378_v30 = vadd.f32 %v1790_v15, %v339_v22  ;;  %v379_v31 = vadd.f32 %v1790_v15, %v340_v23 }
  0x17   : > { %v380_v32 = vadd.f32 %v1790_v15, %v341_v24  ;;  %v381_v33 = vadd.f32 %v1790_v15, %v342_v25  ;;  %v382_v34 = vadd.f32 %v1790_v15, %v343_v26  ;;  %v383_v35 = vadd.f32 %v1790_v15, %v344_v27 }
  0x18   : > { %v408_v37 = vmax.f32 %v376_v28, 0.0  ;;  %v409_v38 = vmax.f32 %v377_v29, 0.0  ;;  %v410_v39 = vmax.f32 %v378_v30, 0.0  ;;  %v411_v40 = vmax.f32 %v379_v31, 0.0 }
  0x19   : > { %v412_v42 = vmax.f32 %v380_v32, 0.0  ;;  %v413_v43 = vmax.f32 %v381_v33, 0.0  ;;  %v414_v44 = vmax.f32 %v382_v34, 0.0  ;;  %v415_v45 = vmax.f32 %v383_v35, 0.0 }
  0x1a   : > { %440 = vst [vmem:[%s1808_s30] sm:$0xff] %v408_v37  ;;  %441 = vst [vmem:[%s1808_s30 + $0x8] sm:$0xff] %v409_v38  ;;  %v472_v46 = vmax.f32 %v408_v37, %v410_v39  ;;  %v473_v47 = vmax.f32 %v409_v38, %v411_v40  ;;  %v1614_v48 = vunpack.c.l.bf16 %v1815_v36  ;;  %v1615_v49 = vunpack.c.h.bf16 %v1815_v36 }
  0x1b   : > { %442 = vst [vmem:[%s1808_s30 + $0x10] sm:$0xff] %v410_v39  ;;  %443 = vst [vmem:[%s1808_s30 + $0x18] sm:$0xff] %v411_v40  ;;  %v474_v50 = vmax.f32 %v412_v42, %v414_v44  ;;  %v1830_v51 = vmax.f32 %v413_v43, %v415_v45  ;;  %v1618_v52 = vunpack.c.l.bf16 %v1818_v41  ;;  %v1619_v53 = vunpack.c.h.bf16 %v1818_v41 }
  0x1c   : > { %444 = vst [vmem:[%s1808_s30 + $0x20] sm:$0xff] %v412_v42  ;;  %445 = vst [vmem:[%s1808_s30 + $0x28] sm:$0xff] %v413_v43  ;;  %v504_v54 = vcombine.high %v472_v46, %v472_v46  ;;  %v511_v55 = vrot.slane %v472_v46, %v1783_v8  ;;  %v521_v56 = vcombine.high %v473_v47, %v473_v47 }
  0x1d   : > { %446 = vst [vmem:[%s1808_s30 + $0x30] sm:$0xff] %v414_v44  ;;  %447 = vst [vmem:[%s1808_s30 + $0x38] sm:$0xff] %v415_v45  ;;  %v528_v57 = vrot.slane %v473_v47, %v1783_v8  ;;  %v538_v58 = vcombine.high %v474_v50, %v474_v50  ;;  %v545_v59 = vrot.slane %v474_v50, %v1783_v8 }
  0x1e   : > { %v555_v60 = vcombine.high %v1830_v51, %v1830_v51  ;;  %v1841_v61 = vrot.slane %v1830_v51, %v1783_v8  ;;  %v518_v62 = vrot.slane %v504_v54, %v1783_v8  ;;  %v519_v63 = vcombine.high %v511_v55, %v511_v55 }
  0x1f   : > { %v841_v0 = vsel %vm840_vm0, %v511_v55, -inf  ;;  %v1846_v1 = vrot.slane %v521_v56, %v1783_v8  ;;  %v536_v3 = vcombine.high %v528_v57, %v528_v57  ;;  %v869_v4 = vsel %vm840_vm0, %v528_v57, -inf }
  0x20   : > { %v842_v2 = vrot.slane %v841_v0, 4  ;;  %v552_v6 = vrot.slane %v538_v58, %v1783_v8  ;;  %v520_v7 = vcombine.high %v518_v62, %v518_v62  ;;  %v848_v9 = vsel %vm840_vm0, %v519_v63, -inf }
  0x21   : > { %v855_v10 = vsel %vm840_vm0, %v518_v62, -inf  ;;  %v849_v13 = vrot.slane %v848_v9, 4  ;;  %v870_v16 = vrot.slane %v869_v4, 4  ;;  %v876_v18 = vsel %vm840_vm0, %v536_v3, -inf }
  0x22   : > { %v843_v12 = vmax.f32 %v841_v0, %v842_v2  ;;  %v856_v14 = vrot.slane %v855_v10, 4  ;;  %v862_v17 = vsel %vm840_vm0, %v520_v7, -inf  ;;  %v883_v19 = vsel %vm840_vm0, %v1846_v1, -inf }
  0x23   : > { %v553_v20 = vcombine.high %v545_v59, %v545_v59  ;;  %v850_v22 = vmax.f32 %v848_v9, %v849_v13  ;;  %v863_v24 = vrot.slane %v862_v17, 4  ;;  %v871_v25 = vmax.f32 %v869_v4, %v870_v16 }
  0x24   : > { %v844_v21 = vrot.slane %v843_v12, 2  ;;  %v857_v23 = vmax.f32 %v855_v10, %v856_v14  ;;  %v877_v26 = vrot.slane %v876_v18, 4  ;;  %v884_v27 = vrot.slane %v883_v19, 4 }
  0x25   : > { %v554_v28 = vcombine.high %v552_v6, %v552_v6  ;;  %v851_v30 = vrot.slane %v850_v22, 2  ;;  %v864_v32 = vmax.f32 %v862_v17, %v863_v24  ;;  %v872_v33 = vrot.slane %v871_v25, 2 }
  0x26   : > { %v845_v29 = vmax.f32 %v843_v12, %v844_v21  ;;  %v858_v31 = vrot.slane %v857_v23, 2  ;;  %v1858_v34 = vmax.f32 %v876_v18, %v877_v26  ;;  %v1860_v35 = vmax.f32 %v883_v19, %v884_v27 }
  0x27   : > { %v897_v37 = vsel %vm840_vm0, %v545_v59, -inf  ;;  %v852_v39 = vmax.f32 %v850_v22, %v851_v30  ;;  %v865_v42 = vrot.slane %v864_v32, 2  ;;  %v1863_v43 = vmax.f32 %v871_v25, %v872_v33 }
  0x28   : > { %v846_v38 = vrot.slane %v845_v29, 1  ;;  %v859_v40 = vmax.f32 %v857_v23, %v858_v31  ;;  %v898_v45 = vrot.slane %v897_v37, 4  ;;  %v904_v46 = vsel %vm840_vm0, %v553_v20, -inf  ;;  %v1665_v31 = vld [vmem:[%s1774_s22 + $0x30] sm:$0xff]  }
  0x29   : > { %v853_v50 = vrot.slane %v852_v39, 1  ;;  %v1869_v54 = vmax.f32 %v864_v32, %v865_v42  ;;  %v905_v57 = vrot.slane %v904_v46, 4  ;;  %v911_v58 = vsel %vm840_vm0, %v552_v6, -inf }
  0x2a   : > { %v1867_v47 = vmax.f32 %v845_v29, %v846_v38  ;;  %v860_v51 = vrot.slane %v859_v40, 1  ;;  %v899_v56 = vmax.f32 %v897_v37, %v898_v45  ;;  %v912_v63 = vrot.slane %v911_v58, 4 }
  0x2b   : > { %v1873_v59 = vmax.f32 %v852_v39, %v853_v50  ;;  %v918_v0 = vsel %vm840_vm0, %v554_v28, -inf  ;;  %v906_v3 = vmax.f32 %v904_v46, %v905_v57  ;;  %v1879_v7 = vrot.slane %v555_v60, %v1783_v8  ;;  %v1666_v39 = vld [vmem:[%s1774_s22 + $0x38] sm:$0xff]  }
  0x2c   : > { %v1875_v62 = vmax.f32 %v859_v40, %v860_v51  ;;  %v900_v2 = vrot.slane %v899_v56, 2  ;;  %v919_v4 = vrot.slane %v918_v0, 4  ;;  %v913_v9 = vmax.f32 %v911_v58, %v912_v63 }
  0x2d   : > { %v570_v10 = vcombine.high %v1841_v61, %v1841_v61  ;;  %v925_v6 = vsel %vm840_vm0, %v1841_v61, -inf  ;;  %v345_v12 = vmul.f32 %v1614_v48, %v1779_v5  ;;  %v907_v14 = vrot.slane %v906_v3, 2 }
  0x2e   : > { %v901_v13 = vmax.f32 %v899_v56, %v900_v2  ;;  %v920_v16 = vmax.f32 %v918_v0, %v919_v4  ;;  %v914_v18 = vrot.slane %v913_v9, 2  ;;  %v926_v60 = vrot.slane %v925_v6, 4  ;;  %v1924_v0 = vld [vmem:[%s1774_s22 + $0x40] sm:$0xff]  }
  0x2f   : > { %v932_v19 = vsel %vm840_vm0, %v570_v10, -inf  ;;  %v939_v20 = vsel %vm840_vm0, %v1879_v7, -inf  ;;  %v908_v61 = vmax.f32 %v906_v3, %v907_v14  ;;  %v384_v26 = vadd.f32 %v1790_v15, %v345_v12 }
  0x30   : > { %v902_v21 = vrot.slane %v901_v13, 1  ;;  %v921_v22 = vrot.slane %v920_v16, 2  ;;  %v933_v23 = vrot.slane %v932_v19, 4  ;;  %v915_v48 = vmax.f32 %v913_v9, %v914_v18 }
  0x31   : > { %v927_v24 = vmax.f32 %v925_v6, %v926_v60  ;;  %v940_v25 = vrot.slane %v939_v20, 4  ;;  %v909_v28 = vrot.slane %v908_v61, 1  ;;  %v416_v38 = vmax.f32 %v384_v26, 0.0 }
  0x32   : > { %v1894_v27 = vmax.f32 %v901_v13, %v902_v21  ;;  %v1896_v29 = vmax.f32 %v920_v16, %v921_v22  ;;  %v1898_v30 = vmax.f32 %v932_v19, %v933_v23  ;;  %v916_v32 = vrot.slane %v915_v48, 1 }
  0x33   : > { %v928_v33 = vrot.slane %v927_v24, 2  ;;  %v1901_v37 = vmax.f32 %v939_v20, %v940_v25  ;;  %v1904_v40 = vmax.f32 %v908_v61, %v909_v28  ;;  %v346_v45 = vmul.f32 %v1615_v49, %v1779_v5  ;;  %448 = vst [vmem:[%s1808_s30 + $0x40] sm:$0xff] %v416_v38 }
  0x34   : > { %v347_v46 = vmul.f32 %v1618_v52, %v1779_v5  ;;  %v1913_v50 = vmax.f32 %v915_v48, %v916_v32  ;;  %v348_v56 = vmul.f32 %v1619_v53, %v1779_v5  ;;  %v1622_v57 = vunpack.c.l.bf16 %v1665_v31 }
  0x35   : > { %v1915_v51 = vmax.f32 %v927_v24, %v928_v33  ;;  %v385_v58 = vadd.f32 %v1790_v15, %v346_v45  ;;  %v1623_v36 = vunpack.c.h.bf16 %v1665_v31  ;;  %v1626_v49 = vunpack.c.l.bf16 %v1666_v39 }
  0x36   : > { %v386_v63 = vadd.f32 %v1790_v15, %v347_v46  ;;  %v387_v2 = vadd.f32 %v1790_v15, %v348_v56  ;;  %v349_v3 = vmul.f32 %v1622_v57, %v1779_v5  ;;  %v1627_v41 = vunpack.c.h.bf16 %v1666_v39 }
  0x37   : > { %v417_v53 = vmax.f32 %v385_v58, 0.0  ;;  %v350_v9 = vmul.f32 %v1623_v36, %v1779_v5  ;;  %v351_v10 = vmul.f32 %v1626_v49, %v1779_v5  ;;  %v1630_v14 = vunpack.c.l.bf16 %v1924_v0 }
  0x38   : > { %v418_v4 = vmax.f32 %v386_v63, 0.0  ;;  %v419_v6 = vmax.f32 %v387_v2, 0.0  ;;  %v388_v12 = vadd.f32 %v1790_v15, %v349_v3  ;;  %v352_v13 = vmul.f32 %v1627_v41, %v1779_v5 }
  0x39   : > { %449 = vst [vmem:[%s1808_s30 + $0x48] sm:$0xff] %v417_v53  ;;  %v1937_v18 = vadd.f32 %v1790_v15, %v350_v9  ;;  %v390_v60 = vadd.f32 %v1790_v15, %v351_v10  ;;  %v1631_v19 = vunpack.c.h.bf16 %v1924_v0  ;;  %v353_v22 = vmul.f32 %v1630_v14, %v1779_v5 }
  0x3a   : > { %450 = vst [vmem:[%s1808_s30 + $0x50] sm:$0xff] %v418_v4  ;;  %v476_v16 = vmax.f32 %v416_v38, %v418_v4  ;;  %451 = vst [vmem:[%s1808_s30 + $0x58] sm:$0xff] %v419_v6  ;;  %v477_v20 = vmax.f32 %v417_v53, %v419_v6  ;;  %v420_v21 = vmax.f32 %v388_v12, 0.0  ;;  %v1943_v61 = vadd.f32 %v1790_v15, %v352_v13  ;;  %v1670_v4 = vld [vmem:[%s1774_s22 + $0x58] sm:$0xff]  }
  0x3b   : > { %v421_v24 = vmax.f32 %v1937_v18, 0.0  ;;  %v422_v25 = vmax.f32 %v390_v60, 0.0  ;;  %v1952_v32 = vadd.f32 %v1790_v15, %v353_v22 }
  0x3c   : > { %v572_v23 = vcombine.high %v476_v16, %v476_v16  ;;  %v579_v48 = vrot.slane %v476_v16, %v1783_v8  ;;  %v589_v26 = vcombine.high %v477_v20, %v477_v20  ;;  %v596_v28 = vrot.slane %v477_v20, %v1783_v8  ;;  %452 = vst [vmem:[%s1808_s30 + $0x60] sm:$0xff] %v420_v21 }
  0x3d   : > { %v423_v31 = vmax.f32 %v1943_v61, 0.0  ;;  %453 = vst [vmem:[%s1808_s30 + $0x68] sm:$0xff] %v421_v24  ;;  %454 = vst [vmem:[%s1808_s30 + $0x70] sm:$0xff] %v422_v25  ;;  %v478_v45 = vmax.f32 %v420_v21, %v422_v25 }
  0x3e   : > { %v586_v33 = vrot.slane %v572_v23, %v1783_v8  ;;  %v587_v38 = vcombine.high %v579_v48, %v579_v48  ;;  %v953_v39 = vsel %vm840_vm0, %v579_v48, -inf  ;;  %v1961_v56 = vrot.slane %v589_v26, %v1783_v8 }
  0x3f   : > { %v954_v46 = vrot.slane %v953_v39, 4  ;;  %v604_v57 = vcombine.high %v596_v28, %v596_v28  ;;  %v981_v58 = vsel %vm840_vm0, %v596_v28, -inf  ;;  %455 = vst [vmem:[%s1808_s30 + $0x78] sm:$0xff] %v423_v31  ;;  %v606_v23 = vcombine.high %v478_v45, %v478_v45 }
  0x40   : > { %v588_v63 = vcombine.high %v586_v33, %v586_v33  ;;  %v960_v36 = vsel %vm840_vm0, %v587_v38, -inf  ;;  %v967_v49 = vsel %vm840_vm0, %v586_v33, -inf  ;;  %v982_v2 = vrot.slane %v981_v58, 4 }
  0x41   : > { %v955_v3 = vmax.f32 %v953_v39, %v954_v46  ;;  %v961_v41 = vrot.slane %v960_v36, 4  ;;  %v968_v53 = vrot.slane %v967_v49, 4  ;;  %v988_v6 = vsel %vm840_vm0, %v604_v57, -inf }
  0x42   : > { %v974_v9 = vsel %vm840_vm0, %v588_v63, -inf  ;;  %v983_v10 = vmax.f32 %v981_v58, %v982_v2  ;;  %v995_v12 = vsel %vm840_vm0, %v1961_v56, -inf  ;;  %v989_v21 = vrot.slane %v988_v6, 4 }
  0x43   : > { %v956_v13 = vrot.slane %v955_v3, 2  ;;  %v962_v14 = vmax.f32 %v960_v36, %v961_v41  ;;  %v969_v16 = vmax.f32 %v967_v49, %v968_v53  ;;  %v975_v60 = vrot.slane %v974_v9, 4 }
  0x44   : > { %v984_v20 = vrot.slane %v983_v10, 2  ;;  %v996_v22 = vrot.slane %v995_v12, 4  ;;  %v1977_v38 = vmax.f32 %v988_v6, %v989_v21  ;;  %v613_v46 = vrot.slane %v478_v45, %v1783_v8 }
  0x45   : > { %v957_v48 = vmax.f32 %v955_v3, %v956_v13  ;;  %v963_v25 = vrot.slane %v962_v14, 2  ;;  %v970_v26 = vrot.slane %v969_v16, 2  ;;  %v976_v28 = vmax.f32 %v974_v9, %v975_v60 }
  0x46   : > { %v1975_v33 = vmax.f32 %v983_v10, %v984_v20  ;;  %v1979_v39 = vmax.f32 %v995_v12, %v996_v22  ;;  %v620_v3 = vrot.slane %v606_v23, %v1783_v8  ;;  %v621_v41 = vcombine.high %v613_v46, %v613_v46  ;;  %v1668_v22 = vld [vmem:[%s1774_s22 + $0x48] sm:$0xff]  }
  0x47   : > { %v958_v57 = vrot.slane %v957_v48, 1  ;;  %v964_v58 = vmax.f32 %v962_v14, %v963_v25  ;;  %v971_v63 = vmax.f32 %v969_v16, %v970_v26  ;;  %v977_v36 = vrot.slane %v976_v28, 2 }
  0x48   : > { %v622_v12 = vcombine.high %v620_v3, %v620_v3  ;;  %v1009_v45 = vsel %vm840_vm0, %v613_v46, -inf  ;;  %v1016_v13 = vsel %vm840_vm0, %v621_v41, -inf  ;;  %v1023_v14 = vsel %vm840_vm0, %v620_v3, -inf }
  0x49   : > { %v1985_v53 = vmax.f32 %v957_v48, %v958_v57  ;;  %v965_v9 = vrot.slane %v964_v58, 1  ;;  %v972_v10 = vrot.slane %v971_v63, 1  ;;  %v1987_v6 = vmax.f32 %v976_v28, %v977_v36 }
  0x4a   : > { %v1010_v20 = vrot.slane %v1009_v45, 4  ;;  %v1017_v21 = vrot.slane %v1016_v13, 4  ;;  %v1024_v23 = vrot.slane %v1023_v14, 4  ;;  %v1030_v48 = vsel %vm840_vm0, %v622_v12, -inf }
  0x4b   : > { %v1992_v16 = vmax.f32 %v964_v58, %v965_v9  ;;  %v1994_v60 = vmax.f32 %v971_v63, %v972_v10  ;;  %v479_v25 = vmax.f32 %v421_v24, %v423_v31  ;;  %v424_v26 = vmax.f32 %v1952_v32, 0.0 }
  0x4c   : > { %v1011_v28 = vmax.f32 %v1009_v45, %v1010_v20  ;;  %v1018_v46 = vmax.f32 %v1016_v13, %v1017_v21  ;;  %v1031_v57 = vrot.slane %v1030_v48, 4  ;;  %v354_v58 = vmul.f32 %v1631_v19, %v1779_v5 }
  0x4d   : > { %v1025_v63 = vmax.f32 %v1023_v14, %v1024_v23  ;;  %v623_v36 = vcombine.high %v479_v25, %v479_v25  ;;  %v630_v3 = vrot.slane %v479_v25, %v1783_v8  ;;  %456 = vst [vmem:[%s1808_s30 + $0x80] sm:$0xff] %v424_v26  ;;  %v1634_v61 = vunpack.c.l.bf16 %v1668_v22 }
  0x4e   : > { %v1012_v41 = vrot.slane %v1011_v28, 2  ;;  %v1019_v18 = vrot.slane %v1018_v46, 2  ;;  %v1032_v24 = vmax.f32 %v1030_v48, %v1031_v57  ;;  %v2011_v31 = vadd.f32 %v1790_v15, %v354_v58 }
  0x4f   : > { %v1026_v9 = vrot.slane %v1025_v63, 2  ;;  %v2014_v10 = vrot.slane %v623_v36, %v1783_v8  ;;  %v638_v0 = vcombine.high %v630_v3, %v630_v3  ;;  %v1037_v19 = vsel %vm840_vm0, %v630_v3, -inf }
  0x50   : > { %v1013_v12 = vmax.f32 %v1011_v28, %v1012_v41  ;;  %v1020_v45 = vmax.f32 %v1018_v46, %v1019_v18  ;;  %v1033_v13 = vrot.slane %v1032_v24, 2  ;;  %v1038_v14 = vrot.slane %v1037_v19, 4  ;;  %v1669_v41 = vld [vmem:[%s1774_s22 + $0x50] sm:$0xff]  }
  0x51   : > { %v1027_v20 = vmax.f32 %v1025_v63, %v1026_v9  ;;  %v1044_v23 = vsel %vm840_vm0, %v638_v0, -inf  ;;  %v1051_v48 = vsel %vm840_vm0, %v2014_v10, -inf  ;;  %v425_v63 = vmax.f32 %v2011_v31, 0.0 }
  0x52   : > { %v1014_v25 = vrot.slane %v1013_v12, 1  ;;  %v1021_v57 = vrot.slane %v1020_v45, 1  ;;  %v2022_v58 = vmax.f32 %v1032_v24, %v1033_v13  ;;  %v1039_v28 = vmax.f32 %v1037_v19, %v1038_v14 }
  0x53   : > { %v1028_v36 = vrot.slane %v1027_v20, 1  ;;  %v1045_v46 = vrot.slane %v1044_v23, 4  ;;  %v1052_v3 = vrot.slane %v1051_v48, 4  ;;  %v355_v21 = vmul.f32 %v1634_v61, %v1779_v5  ;;  %457 = vst [vmem:[%s1808_s30 + $0x88] sm:$0xff] %v425_v63 }
  0x54   : > { %v2026_v18 = vmax.f32 %v1013_v12, %v1014_v25  ;;  %v2028_v9 = vmax.f32 %v1020_v45, %v1021_v57  ;;  %v1040_v0 = vrot.slane %v1039_v28, 2  ;;  %v1635_v13 = vunpack.c.h.bf16 %v1668_v22  ;;  %v1671_v25 = vld [vmem:[%s1774_s22 + $0x60] sm:$0xff]  }
  0x55   : > { %v2032_v2 = vmax.f32 %v1027_v20, %v1028_v36  ;;  %v2034_v24 = vmax.f32 %v1044_v23, %v1045_v46  ;;  %v2036_v19 = vmax.f32 %v1051_v48, %v1052_v3  ;;  %v394_v31 = vadd.f32 %v1790_v15, %v355_v21 }
  0x56   : > { %2486 = vst [vmem:[#allocation2_spill] sm:$0xff] %v2028_v9  ;;  %v2039_v14 = vmax.f32 %v1039_v28, %v1040_v0  ;;  %v1638_v12 = vunpack.c.l.bf16 %v1669_v41  ;;  %v1639_v45 = vunpack.c.h.bf16 %v1669_v41  ;;  %v356_v61 = vmul.f32 %v1635_v13, %v1779_v5 }
  0x57   : > { %2487 = vst [vmem:[#allocation3_spill] sm:$0xff] %v2032_v2  ;;  %v1642_v20 = vunpack.c.l.bf16 %v1670_v4  ;;  %v1643_v36 = vunpack.c.h.bf16 %v1670_v4  ;;  %v426_v48 = vmax.f32 %v394_v31, 0.0  ;;  %v1646_v41 = vunpack.c.l.bf16 %v1671_v25 }
  0x58   : > { %v357_v46 = vmul.f32 %v1638_v12, %v1779_v5  ;;  %v358_v22 = vmul.f32 %v1639_v45, %v1779_v5  ;;  %v395_v28 = vadd.f32 %v1790_v15, %v356_v61  ;;  %v1647_v31 = vunpack.c.h.bf16 %v1671_v25 }
  0x59   : > { %v359_v21 = vmul.f32 %v1642_v20, %v1779_v5  ;;  %v360_v3 = vmul.f32 %v1643_v36, %v1779_v5  ;;  %458 = vst [vmem:[%s1808_s30 + $0x90] sm:$0xff] %v426_v48  ;;  %v480_v0 = vmax.f32 %v424_v26, %v426_v48  ;;  %v361_v20 = vmul.f32 %v1646_v41, %v1779_v5 }
  0x5a   : > { %v396_v4 = vadd.f32 %v1790_v15, %v357_v46  ;;  %v397_v13 = vadd.f32 %v1790_v15, %v358_v22  ;;  %v427_v12 = vmax.f32 %v395_v28, 0.0 }
  0x5b   : > { %v398_v45 = vadd.f32 %v1790_v15, %v359_v21  ;;  %v399_v61 = vadd.f32 %v1790_v15, %v360_v3  ;;  %v640_v36 = vcombine.high %v480_v0, %v480_v0  ;;  %v647_v57 = vrot.slane %v480_v0, %v1783_v8 }
  0x5c   : > { %v428_v23 = vmax.f32 %v396_v4, 0.0  ;;  %v429_v32 = vmax.f32 %v397_v13, 0.0  ;;  %459 = vst [vmem:[%s1808_s30 + $0x98] sm:$0xff] %v427_v12  ;;  %v481_v26 = vmax.f32 %v425_v63, %v427_v12  ;;  %v2062_v46 = vadd.f32 %v1790_v15, %v361_v20 }
  0x5d   : > { %v430_v48 = vmax.f32 %v398_v45, 0.0  ;;  %v431_v25 = vmax.f32 %v399_v61, 0.0  ;;  %v654_v22 = vrot.slane %v640_v36, %v1783_v8  ;;  %v655_v28 = vcombine.high %v647_v57, %v647_v57 }
  0x5e   : > { %v1065_v21 = vsel %vm840_vm0, %v647_v57, -inf  ;;  %460 = vst [vmem:[%s1808_s30 + $0xa0] sm:$0xff] %v428_v23  ;;  %461 = vst [vmem:[%s1808_s30 + $0xa8] sm:$0xff] %v429_v32  ;;  %v2069_v3 = vmul.f32 %v1647_v31, %v1779_v5  ;;  %v657_v0 = vcombine.high %v481_v26, %v481_v26  ;;  %v664_v4 = vrot.slane %v481_v26, %v1783_v8 }
  0x5f   : > { %v1066_v41 = vrot.slane %v1065_v21, 4  ;;  %462 = vst [vmem:[%s1808_s30 + $0xb0] sm:$0xff] %v430_v48  ;;  %v482_v63 = vmax.f32 %v428_v23, %v430_v48  ;;  %463 = vst [vmem:[%s1808_s30 + $0xb8] sm:$0xff] %v431_v25  ;;  %v656_v13 = vcombine.high %v654_v22, %v654_v22  ;;  %v1072_v12 = vsel %vm840_vm0, %v655_v28, -inf }
  0x60   : > { %v1079_v45 = vsel %vm840_vm0, %v654_v22, -inf  ;;  %v483_v61 = vmax.f32 %v429_v32, %v431_v25  ;;  %v1073_v57 = vrot.slane %v1072_v12, 4  ;;  %v2077_v49 = vrot.slane %v657_v0, %v1783_v8 }
  0x61   : > { %v1067_v20 = vmax.f32 %v1065_v21, %v1066_v41  ;;  %v1080_v36 = vrot.slane %v1079_v45, 4  ;;  %v1086_v31 = vsel %vm840_vm0, %v656_v13, -inf  ;;  %v672_v17 = vcombine.high %v664_v4, %v664_v4 }
  0x62   : > { %2488 = vst [vmem:[#allocation4_spill] sm:$0xff] %v2077_v49  ;;  %v1093_v26 = vsel %vm840_vm0, %v664_v4, -inf  ;;  %v674_v42 = vcombine.high %v482_v63, %v482_v63  ;;  %v1074_v48 = vmax.f32 %v1072_v12, %v1073_v57  ;;  %v1087_v11 = vrot.slane %v1086_v31, 4 }
  0x63   : > { %v1068_v23 = vrot.slane %v1067_v20, 2  ;;  %v1081_v52 = vmax.f32 %v1079_v45, %v1080_v36  ;;  %v1094_v32 = vrot.slane %v1093_v26, 4  ;;  %v1100_v25 = vsel %vm840_vm0, %v672_v17, -inf }
  0x64   : > { %v1107_v28 = vsel %vm840_vm0, %v2077_v49, -inf  ;;  %v1075_v41 = vrot.slane %v1074_v48, 2  ;;  %v1088_v13 = vmax.f32 %v1086_v31, %v1087_v11  ;;  %v1101_v4 = vrot.slane %v1100_v25, 4 }
  0x65   : > { %v1069_v21 = vmax.f32 %v1067_v20, %v1068_v23  ;;  %v1082_v0 = vrot.slane %v1081_v52, 2  ;;  %v1095_v44 = vmax.f32 %v1093_v26, %v1094_v32  ;;  %v1108_v55 = vrot.slane %v1107_v28, 4 }
  0x66   : > { %v681_v12 = vrot.slane %v482_v63, %v1783_v8  ;;  %v1076_v57 = vmax.f32 %v1074_v48, %v1075_v41  ;;  %v1089_v2 = vrot.slane %v1088_v13, 2  ;;  %v2087_v9 = vmax.f32 %v1100_v25, %v1101_v4 }
  0x67   : > { %v1070_v45 = vrot.slane %v1069_v21, 1  ;;  %v1083_v36 = vmax.f32 %v1081_v52, %v1082_v0  ;;  %v1096_v22 = vrot.slane %v1095_v44, 2  ;;  %v2089_v17 = vmax.f32 %v1107_v28, %v1108_v55 }
  0x68   : > { %v688_v49 = vrot.slane %v674_v42, %v1783_v8  ;;  %v1077_v23 = vrot.slane %v1076_v57, 1  ;;  %v2094_v31 = vmax.f32 %v1088_v13, %v1089_v2  ;;  %v689_v48 = vcombine.high %v681_v12, %v681_v12 }
  0x69   : > { %2489 = vst [vmem:[#allocation5_spill] sm:$0xff] %v2089_v17  ;;  %v2092_v20 = vmax.f32 %v1069_v21, %v1070_v45  ;;  %v1084_v11 = vrot.slane %v1083_v36, 1  ;;  %v2096_v26 = vmax.f32 %v1095_v44, %v1096_v22  ;;  %v1121_v55 = vsel %vm840_vm0, %v681_v12, -inf  ;;  %v1673_v17 = vld [vmem:[%s1774_s22 + $0x70] sm:$0xff]  }
  0x6a   : > { %v690_v52 = vcombine.high %v688_v49, %v688_v49  ;;  %v2099_v32 = vmax.f32 %v1076_v57, %v1077_v23  ;;  %v1135_v42 = vsel %vm840_vm0, %v688_v49, -inf  ;;  %v1122_v21 = vrot.slane %v1121_v55, 4 }
  0x6b   : > { %2490 = vst [vmem:[#allocation6_spill] sm:$0xff] %v2092_v20  ;;  %v2101_v25 = vmax.f32 %v1083_v36, %v1084_v11  ;;  %v1128_v2 = vsel %vm840_vm0, %v689_v48, -inf  ;;  %v1136_v41 = vrot.slane %v1135_v42, 4  ;;  %v691_v0 = vcombine.high %v483_v61, %v483_v61 }
  0x6c   : > { %2491 = vst [vmem:[#allocation7_spill] sm:$0xff] %v2099_v32  ;;  %v1129_v44 = vrot.slane %v1128_v2, 4  ;;  %v1142_v22 = vsel %vm840_vm0, %v690_v52, -inf  ;;  %v698_v13 = vrot.slane %v483_v61, %v1783_v8  ;;  %v1123_v4 = vmax.f32 %v1121_v55, %v1122_v21 }
  0x6d   : > { %2492 = vst [vmem:[#allocation8_spill] sm:$0xff] %v2101_v25  ;;  %v1137_v45 = vmax.f32 %v1135_v42, %v1136_v41  ;;  %v1143_v57 = vrot.slane %v1142_v22, 4  ;;  %v2474_v12 = vmax.f32 %v2062_v46, 0.0  ;;  %v2111_v49 = vrot.slane %v691_v0, %v1783_v8  ;;  %v1672_v25 = vld [vmem:[%s1774_s22 + $0x68] sm:$0xff]  }
  0x6e   : > { %v1130_v36 = vmax.f32 %v1128_v2, %v1129_v44  ;;  %v706_v23 = vcombine.high %v698_v13, %v698_v13  ;;  %v1149_v11 = vsel %vm840_vm0, %v698_v13, -inf  ;;  %v1124_v48 = vrot.slane %v1123_v4, 2 }
  0x6f   : > { %2493 = vst [vmem:[#allocation9_spill] sm:$0xff] %v2111_v49  ;;  %v1138_v63 = vrot.slane %v1137_v45, 2  ;;  %v1144_v28 = vmax.f32 %v1142_v22, %v1143_v57  ;;  %v1150_v52 = vrot.slane %v1149_v11, 4  ;;  %464 = vst [vmem:[%s1808_s30 + $0xc0] sm:$0xff] %v2474_v12  ;;  %v1163_v21 = vsel %vm840_vm0, %v2111_v49, -inf }
  0x70   : > { %v1131_v61 = vrot.slane %v1130_v36, 2  ;;  %v1156_v42 = vsel %vm840_vm0, %v706_v23, -inf  ;;  %v1125_v2 = vmax.f32 %v1123_v4, %v1124_v48  ;;  %v1164_v57 = vrot.slane %v1163_v21, 4 }
  0x71   : > { %v1139_v41 = vmax.f32 %v1137_v45, %v1138_v63  ;;  %v1145_v44 = vrot.slane %v1144_v28, 2  ;;  %v1151_v0 = vmax.f32 %v1149_v11, %v1150_v52  ;;  %v1157_v13 = vrot.slane %v1156_v42, 4 }
  0x72   : > { %v1132_v22 = vmax.f32 %v1130_v36, %v1131_v61  ;;  %v401_v12 = vadd.f32 %v1790_v15, %v2069_v3  ;;  %v1126_v32 = vrot.slane %v1125_v2, 1  ;;  %v2130_v63 = vmax.f32 %v1163_v21, %v1164_v57  ;;  %v1674_v36 = vld [vmem:[%s1774_s22 + $0x78] sm:$0xff]  }
  0x73   : > { %v1140_v55 = vrot.slane %v1139_v41, 1  ;;  %v2125_v20 = vmax.f32 %v1144_v28, %v1145_v44  ;;  %v1152_v23 = vrot.slane %v1151_v0, 2  ;;  %v2128_v4 = vmax.f32 %v1156_v42, %v1157_v13 }
  0x74   : > { %v1133_v49 = vrot.slane %v1132_v22, 1  ;;  %2496 = vst [vmem:[#allocation12_spill] sm:$0xff] %v2130_v63  ;;  %v433_v45 = vmax.f32 %v401_v12, 0.0  ;;  %v2133_v11 = vmax.f32 %v1125_v2, %v1126_v32  ;;  %v1650_v52 = vunpack.c.l.bf16 %v1672_v25 }
  0x75   : > { %2494 = vst [vmem:[#allocation10_spill] sm:$0xff] %v2125_v20  ;;  %2495 = vst [vmem:[#allocation11_spill] sm:$0xff] %v2128_v4  ;;  %v2135_v48 = vmax.f32 %v1139_v41, %v1140_v55  ;;  %v2137_v3 = vmax.f32 %v1151_v0, %v1152_v23  ;;  %v1651_v44 = vunpack.c.h.bf16 %v1672_v25  ;;  %v1654_v20 = vunpack.c.l.bf16 %v1673_v17 }
  0x76   : > { %2497 = vst [vmem:[#allocation13_spill] sm:$0xff] %v2133_v11  ;;  %v2139_v61 = vmax.f32 %v1132_v22, %v1133_v49  ;;  %465 = vst [vmem:[%s1808_s30 + $0xc8] sm:$0xff] %v433_v45  ;;  %v363_v21 = vmul.f32 %v1650_v52, %v1779_v5  ;;  %v1655_v12 = vunpack.c.h.bf16 %v1673_v17  ;;  %v1658_v13 = vunpack.c.l.bf16 %v1674_v36 }
  0x77   : > { %2498 = vst [vmem:[#allocation14_spill] sm:$0xff] %v2135_v48  ;;  %2499 = vst [vmem:[#allocation15_spill] sm:$0xff] %v2137_v3  ;;  %v364_v32 = vmul.f32 %v1651_v44, %v1779_v5  ;;  %v365_v55 = vmul.f32 %v1654_v20, %v1779_v5  ;;  %v1659_v2 = vunpack.c.h.bf16 %v1674_v36  ;;  %v867_v41 = vrot.slane %v1869_v54, 1 }
  0x78   : > { %2500 = vst [vmem:[#allocation16_spill] sm:$0xff] %v2139_v61  ;;  %v402_v49 = vadd.f32 %v1790_v15, %v363_v21  ;;  %v366_v0 = vmul.f32 %v1655_v12, %v1779_v5  ;;  %v367_v25 = vmul.f32 %v1658_v13, %v1779_v5  ;;  %v2501_v22 = vrot.slane %v1863_v43, 1 }
  0x79   : > { %v403_v17 = vadd.f32 %v1790_v15, %v364_v32  ;;  %v404_v23 = vadd.f32 %v1790_v15, %v365_v55  ;;  %v368_v20 = vmul.f32 %v1659_v2, %v1779_v5  ;;  %v2160_v36 = vmax.f32 %v1869_v54, %v867_v41 }
  0x7a   : > { %v2154_v57 = vmax.f32 %v1863_v43, %v2501_v22  ;;  %v434_v52 = vmax.f32 %v402_v49, 0.0  ;;  %v405_v44 = vadd.f32 %v1790_v15, %v366_v0  ;;  %v406_v21 = vadd.f32 %v1790_v15, %v367_v25 }
  0x7b   : > { %v2502_v12 = vrot.slane %v1858_v34, 2  ;;  %v435_v13 = vmax.f32 %v403_v17, 0.0  ;;  %v436_v32 = vmax.f32 %v404_v23, 0.0  ;;  %v407_v55 = vadd.f32 %v1790_v15, %v368_v20 }
  0x7c   : > { %v886_v5 = vrot.slane %v1860_v35, 2  ;;  %466 = vst [vmem:[%s1808_s30 + $0xd0] sm:$0xff] %v434_v52  ;;  %v2503_v54 = vmax.f32 %v2062_v46, 0.0  ;;  %v437_v41 = vmax.f32 %v405_v44, 0.0  ;;  %v438_v49 = vmax.f32 %v406_v21, 0.0 }
  0x7d   : > { %v880_v43 = vmax.f32 %v1858_v34, %v2502_v12  ;;  %467 = vst [vmem:[%s1808_s30 + $0xd8] sm:$0xff] %v435_v13  ;;  %v485_v25 = vmax.f32 %v433_v45, %v435_v13  ;;  %468 = vst [vmem:[%s1808_s30 + $0xe0] sm:$0xff] %v436_v32  ;;  %v439_v34 = vmax.f32 %v407_v55, 0.0  ;;  %v2504_v15 = vcombine.high %v1846_v1, %v1846_v1 }
  0x7e   : > { %v484_v2 = vmax.f32 %v2503_v54, %v434_v52  ;;  %v2175_v22 = vmax.f32 %v1860_v35, %v886_v5  ;;  %469 = vst [vmem:[%s1808_s30 + $0xe8] sm:$0xff] %v437_v41  ;;  %470 = vst [vmem:[%s1808_s30 + $0xf0] sm:$0xff] %v438_v49  ;;  %v486_v20 = vmax.f32 %v436_v32, %v438_v49 }
  0x7f   : > { %v881_v0 = vrot.slane %v880_v43, 1  ;;  %v2181_v17 = vsel %vm840_vm0, %v2504_v15, -inf  ;;  %v725_v45 = vcombine.high %v485_v25, %v485_v25  ;;  %v732_v44 = vrot.slane %v485_v25, %v1783_v8  ;;  %471 = vst [vmem:[%s1808_s30 + $0xf8] sm:$0xff] %v439_v34 }
  0x80   : > { %v708_v23 = vcombine.high %v484_v2, %v484_v2  ;;  %v715_v46 = vrot.slane %v484_v2, %v1783_v8  ;;  %v2190_v35 = vmax.f32 %v437_v41, %v439_v34  ;;  %v742_v55 = vcombine.high %v486_v20, %v486_v20 }
  0x81   : > { %v2186_v52 = vmax.f32 %v880_v43, %v881_v0  ;;  %v2196_v54 = vrot.slane %v725_v45, %v1783_v8  ;;  %v740_v43 = vcombine.high %v732_v44, %v732_v44  ;;  %v1205_v32 = vsel %vm840_vm0, %v732_v44, -inf }
  0x82   : > { %v722_v1 = vrot.slane %v708_v23, %v1783_v8  ;;  %v723_v12 = vcombine.high %v715_v46, %v715_v46  ;;  %v1177_v13 = vsel %vm840_vm0, %v715_v46, -inf  ;;  %v1206_v0 = vrot.slane %v1205_v32, 4 }
  0x83   : > { %v1178_v5 = vrot.slane %v1177_v13, 4  ;;  %2505 = vst [vmem:[#allocation17_spill] sm:$0xff] %v2196_v54  ;;  %v1212_v45 = vsel %vm840_vm0, %v740_v43, -inf  ;;  %v1219_v44 = vsel %vm840_vm0, %v2196_v54, -inf }
  0x84   : > { %v724_v2 = vcombine.high %v722_v1, %v722_v1  ;;  %v1184_v49 = vsel %vm840_vm0, %v723_v12, -inf  ;;  %v1191_v41 = vsel %vm840_vm0, %v722_v1, -inf  ;;  %v1207_v28 = vmax.f32 %v1205_v32, %v1206_v0 }
  0x85   : > { %v1179_v25 = vmax.f32 %v1177_v13, %v1178_v5  ;;  %v1185_v34 = vrot.slane %v1184_v49, 4  ;;  %v1192_v15 = vrot.slane %v1191_v41, 4  ;;  %v1213_v61 = vrot.slane %v1212_v45, 4 }
  0x86   : > { %v1198_v46 = vsel %vm840_vm0, %v724_v2, -inf  ;;  %v1208_v1 = vrot.slane %v1207_v28, 2  ;;  %v1220_v13 = vrot.slane %v1219_v44, 4  ;;  %v749_v5 = vrot.slane %v486_v20, %v1783_v8 }
  0x87   : > { %v1180_v42 = vrot.slane %v1179_v25, 2  ;;  %v1186_v21 = vmax.f32 %v1184_v49, %v1185_v34  ;;  %v1193_v12 = vmax.f32 %v1191_v41, %v1192_v15  ;;  %v1199_v48 = vrot.slane %v1198_v46, 4 }
  0x88   : > { %v2208_v2 = vmax.f32 %v1207_v28, %v1208_v1  ;;  %v2210_v32 = vmax.f32 %v1212_v45, %v1213_v61  ;;  %v2212_v43 = vmax.f32 %v1219_v44, %v1220_v13  ;;  %v756_v0 = vrot.slane %v742_v55, %v1783_v8 }
  0x89   : > { %v1181_v11 = vmax.f32 %v1179_v25, %v1180_v42  ;;  %v1187_v63 = vrot.slane %v1186_v21, 2  ;;  %v1194_v23 = vrot.slane %v1193_v12, 2  ;;  %v1200_v4 = vmax.f32 %v1198_v46, %v1199_v48 }
  0x8a   : > { %v757_v42 = vcombine.high %v749_v5, %v749_v5  ;;  %v758_v25 = vcombine.high %v756_v0, %v756_v0  ;;  %v1233_v46 = vsel %vm840_vm0, %v749_v5, -inf  ;;  %v766_v13 = vrot.slane %v2190_v35, %v1783_v8 }
  0x8b   : > { %v1182_v49 = vrot.slane %v1181_v11, 1  ;;  %v1188_v41 = vmax.f32 %v1186_v21, %v1187_v63  ;;  %v1195_v34 = vmax.f32 %v1193_v12, %v1194_v23  ;;  %v1201_v15 = vrot.slane %v1200_v4, 2 }
  0x8c   : > { %v1240_v55 = vsel %vm840_vm0, %v757_v42, -inf  ;;  %v1247_v63 = vsel %vm840_vm0, %v756_v0, -inf  ;;  %v1254_v21 = vsel %vm840_vm0, %v758_v25, -inf  ;;  %v1234_v44 = vrot.slane %v1233_v46, 4 }
  0x8d   : > { %v2217_v3 = vmax.f32 %v1181_v11, %v1182_v49  ;;  %v1189_v48 = vrot.slane %v1188_v41, 1  ;;  %v1196_v28 = vrot.slane %v1195_v34, 1  ;;  %v2219_v61 = vmax.f32 %v1200_v4, %v1201_v15 }
  0x8e   : > { %v1241_v12 = vrot.slane %v1240_v55, 4  ;;  %v1248_v11 = vrot.slane %v1247_v63, 4  ;;  %v1255_v1 = vrot.slane %v1254_v21, 4  ;;  %v759_v4 = vcombine.high %v2190_v35, %v2190_v35 }
  0x8f   : > { %2506 = vst [vmem:[#allocation18_spill] sm:$0xff] %v2217_v3  ;;  %v2225_v23 = vmax.f32 %v1188_v41, %v1189_v48  ;;  %v2227_v45 = vmax.f32 %v1195_v34, %v1196_v28  ;;  %v1235_v5 = vmax.f32 %v1233_v46, %v1234_v44  ;;  %v2509_v0 = vrot.slane %v2175_v22, 1 }
  0x90   : > { %v1242_v49 = vmax.f32 %v1240_v55, %v1241_v12  ;;  %v891_v41 = vrot.slane %v2181_v17, 4  ;;  %v1249_v34 = vmax.f32 %v1247_v63, %v1248_v11  ;;  %v1256_v42 = vmax.f32 %v1254_v21, %v1255_v1 }
  0x91   : > { %2507 = vst [vmem:[#allocation19_spill] sm:$0xff] %v2225_v23  ;;  %2508 = vst [vmem:[#allocation20_spill] sm:$0xff] %v2227_v45  ;;  %v889_v15 = vmax.f32 %v2175_v22, %v2509_v0  ;;  %v2238_v25 = vrot.slane %v759_v4, %v1783_v8  ;;  %v774_v48 = vcombine.high %v766_v13, %v766_v13  ;;  %v1236_v28 = vrot.slane %v1235_v5, 2 }
  0x92   : > { %v1243_v20 = vrot.slane %v1242_v49, 2  ;;  %v1261_v54 = vsel %vm840_vm0, %v766_v13, -inf  ;;  %v892_v35 = vmax.f32 %v2181_v17, %v891_v41  ;;  %v1250_v46 = vrot.slane %v1249_v34, 2 }
  0x93   : > { %v1257_v55 = vrot.slane %v1256_v42, 2  ;;  %v1262_v22 = vrot.slane %v1261_v54, 4  ;;  %v1237_v12 = vmax.f32 %v1235_v5, %v1236_v28  ;;  %v1268_v63 = vsel %vm840_vm0, %v774_v48, -inf }
  0x94   : > { %v1244_v0 = vmax.f32 %v1242_v49, %v1243_v20  ;;  %v1275_v8 = vsel %vm840_vm0, %v2238_v25, -inf  ;;  %v1251_v21 = vmax.f32 %v1249_v34, %v1250_v46  ;;  %v1269_v4 = vrot.slane %v1268_v63, 4 }
  0x95   : > { %v2247_v11 = vmax.f32 %v1256_v42, %v1257_v55  ;;  %v1263_v1 = vmax.f32 %v1261_v54, %v1262_v22  ;;  %v1238_v13 = vrot.slane %v1237_v12, 1  ;;  %v1276_v41 = vrot.slane %v1275_v8, 4 }
  0x96   : > { %v1245_v17 = vrot.slane %v1244_v0, 1  ;;  %v893_v45 = vrot.slane %v892_v35, 2  ;;  %v1252_v23 = vrot.slane %v1251_v21, 1  ;;  %v2249_v44 = vmax.f32 %v1268_v63, %v1269_v4 }
  0x97   : > { %v1264_v3 = vrot.slane %v1263_v1, 2  ;;  %v2251_v20 = vmax.f32 %v1237_v12, %v1238_v13  ;;  %v2255_v49 = vmax.f32 %v1275_v8, %v1276_v41  ;;  %v1354_v28 = vsel %vm1353_vm1, %v1873_v59, %v1867_v47 }
  0x98   : > { %v2253_v5 = vmax.f32 %v1244_v0, %v1245_v17  ;;  %v894_v34 = vmax.f32 %v892_v35, %v893_v45  ;;  %v2257_v42 = vmax.f32 %v1251_v21, %v1252_v23  ;;  %v1271_v48 = vrot.slane %v2249_v44, 2 }
  0x99   : > { %v2259_v54 = vmax.f32 %v1263_v1, %v1264_v3  ;;  %v1356_v45 = vsel %vm1355_vm2, %v1875_v62, %v1354_v28  ;;  %v923_v35 = vrot.slane %v1896_v29, 1  ;;  %v2510_v59 = vrot.slane %v1915_v51, 1 }
  0x9a   : > { %v895_v46 = vrot.slane %v894_v34, 1  ;;  %v1358_v23 = vsel %vm1357_vm3, %v2160_v36, %v1356_v45  ;;  %v2511_v12 = vrot.slane %v1898_v30, 2  ;;  %v942_v0 = vrot.slane %v1901_v37, 2 }
  0x9b   : > { %v1266_v55 = vrot.slane %v2259_v54, 1  ;;  %v1360_v47 = vsel %vm1359_vm4, %v2154_v57, %v1358_v23  ;;  %v931_v22 = vmax.f32 %v1915_v51, %v2510_v59  ;;  %v924_v57 = vmax.f32 %v1896_v29, %v923_v35 }
  0x9c   : > { %v896_v3 = vmax.f32 %v894_v34, %v895_v46  ;;  %v936_v62 = vmax.f32 %v1898_v30, %v2511_v12  ;;  %v1362_v36 = vsel %vm1361_vm5, %v2186_v52, %v1360_v47  ;;  %v2512_v51 = vcombine.high %v1879_v7, %v1879_v7 }
  0x9d   : > { %v1367_v30 = vsel %vm1353_vm1, %v1904_v40, %v1894_v27  ;;  %v1364_v8 = vsel %vm1363_vm6, %v889_v15, %v1362_v36  ;;  %v943_v1 = vmax.f32 %v1901_v37, %v942_v0  ;;  %v979_v52 = vrot.slane %v1987_v6, 1 }
  0x9e   : > { %v946_v63 = vsel %vm840_vm0, %v2512_v51, -inf  ;;  %v937_v21 = vrot.slane %v936_v62, 1  ;;  %v1366_v13 = vsel %vm1365_vm7, %v896_v3, %v1364_v8  ;;  %v1368_v29 = vsel %vm1355_vm2, %v1913_v50, %v1367_v30 }
  0x9f   : > { %v947_v4 = vrot.slane %v946_v63, 4  ;;  %v2513_v7 = vrot.slane %v1975_v33, 1  ;;  %1424 = vst [vmem:[%s2284_s8] sm:$0xff] %v1366_v13  ;;  %v944_v27 = vrot.slane %v943_v1, 1  ;;  %v1369_v15 = vsel %vm1357_vm3, %v924_v57, %v1368_v29 }
  0xa0   : > { %v938_v41 = vmax.f32 %v936_v62, %v937_v21  ;;  %v1370_v37 = vsel %vm1359_vm4, %v931_v22, %v1369_v15  ;;  %v980_v34 = vmax.f32 %v1987_v6, %v979_v52  ;;  %v2514_v28 = vrot.slane %v1977_v38, 2 }
  0xa1   : > { %v987_v17 = vmax.f32 %v1975_v33, %v2513_v7  ;;  %v948_v40 = vmax.f32 %v946_v63, %v947_v4  ;;  %v998_v46 = vrot.slane %v1979_v39, 2  ;;  %v945_v45 = vmax.f32 %v943_v1, %v944_v27  ;;  %v2519_v7 = vld [vmem:[#allocation2_spill] sm:$0xff] }
  0xa2   : > { %v992_v50 = vmax.f32 %v1977_v38, %v2514_v28  ;;  %v1371_v33 = vsel %vm1361_vm5, %v938_v41, %v1370_v37  ;;  %v2515_v23 = vcombine.high %v1961_v56, %v1961_v56  ;;  %v1374_v6 = vsel %vm1353_vm1, %v1992_v16, %v1985_v53  ;;  %v2520_v37 = vld [vmem:[#allocation3_spill] sm:$0xff] }
  0xa3   : > { %v949_v3 = vrot.slane %v948_v40, 2  ;;  %v999_v59 = vmax.f32 %v1979_v39, %v998_v46  ;;  %v1372_v12 = vsel %vm1363_vm6, %v945_v45, %v1371_v33  ;;  %v1375_v62 = vsel %vm1355_vm2, %v1994_v60, %v1374_v6 }
  0xa4   : > { %v1002_v35 = vsel %vm840_vm0, %v2515_v23, -inf  ;;  %v993_v47 = vrot.slane %v992_v50, 1  ;;  %v1035_v0 = vrot.slane %v2022_v58, 1  ;;  %v1376_v51 = vsel %vm1357_vm3, %v980_v34, %v1375_v62 }
  0xa5   : > { %v1003_v22 = vrot.slane %v1002_v35, 4  ;;  %v950_v38 = vmax.f32 %v948_v40, %v949_v3  ;;  %v1000_v56 = vrot.slane %v999_v59, 1  ;;  %v1377_v39 = vsel %vm1359_vm4, %v987_v17, %v1376_v51 }
  0xa6   : > { %v994_v36 = vmax.f32 %v992_v50, %v993_v47  ;;  %v1036_v30 = vmax.f32 %v2022_v58, %v1035_v0  ;;  %v2516_v53 = vrot.slane %v2039_v14, 1  ;;  %v2517_v1 = vrot.slane %v2034_v24, 2  ;;  %v2524_v0 = vld [vmem:[#allocation4_spill] sm:$0xff] }
  0xa7   : > { %v1004_v57 = vmax.f32 %v1002_v35, %v1003_v22  ;;  %v951_v63 = vrot.slane %v950_v38, 1  ;;  %v1001_v8 = vmax.f32 %v999_v59, %v1000_v56  ;;  %v1054_v29 = vrot.slane %v2036_v19, 2  ;;  %v2526_v56 = vld [vmem:[#allocation6_spill] sm:$0xff] }
  0xa8   : > { %v1043_v16 = vmax.f32 %v2039_v14, %v2516_v53  ;;  %v1378_v60 = vsel %vm1361_vm5, %v994_v36, %v1377_v39  ;;  %v1048_v4 = vmax.f32 %v2034_v24, %v2517_v1  ;;  %v2518_v52 = vcombine.high %v2014_v10, %v2014_v10 }
  0xa9   : > { %v1005_v21 = vrot.slane %v1004_v57, 2  ;;  %v952_v13 = vmax.f32 %v950_v38, %v951_v63  ;;  %v1381_v14 = vsel %vm1353_vm1, %v2519_v7, %v2026_v18  ;;  %v1379_v41 = vsel %vm1363_vm6, %v1001_v8, %v1378_v60 }
  0xaa   : > { %v1058_v58 = vsel %vm840_vm0, %v2518_v52, -inf  ;;  %v1049_v27 = vrot.slane %v1048_v4, 1  ;;  %v1055_v24 = vmax.f32 %v2036_v19, %v1054_v29  ;;  %v1382_v34 = vsel %vm1355_vm2, %v2520_v37, %v1381_v14  ;;  %v2530_v14 = vld [vmem:[#allocation15_spill] sm:$0xff] }
  0xab   : > { %v1006_v17 = vmax.f32 %v1004_v57, %v1005_v21  ;;  %v1059_v40 = vrot.slane %v1058_v58, 4  ;;  %v1373_v15 = vsel %vm1365_vm7, %v952_v13, %v1372_v12  ;;  %v1091_v10 = vrot.slane %v2094_v31, 1  ;;  %v2523_v12 = vld [vmem:[#allocation5_spill] sm:$0xff]  ;;  %v2527_v57 = vld [vmem:[#allocation7_spill] sm:$0xff]  ;;  %v2529_v21 = vld [vmem:[#allocation10_spill] sm:$0xff] }
  0xac   : > { %1425 = vst [vmem:[%s2284_s8 + $0x8] sm:$0xff] %v1373_v15  ;;  %v1050_v50 = vmax.f32 %v1048_v4, %v1049_v27  ;;  %v1383_v18 = vsel %vm1357_vm3, %v1036_v30, %v1382_v34  ;;  %v1056_v45 = vrot.slane %v1055_v24, 1  ;;  %v2521_v23 = vrot.slane %v2096_v26, 1 }
  0xad   : > { %v1007_v28 = vrot.slane %v1006_v17, 1  ;;  %v1060_v46 = vmax.f32 %v1058_v58, %v1059_v40  ;;  %v1384_v3 = vsel %vm1359_vm4, %v1043_v16, %v1383_v18  ;;  %v1092_v33 = vmax.f32 %v2094_v31, %v1091_v10  ;;  %v2528_v16 = vld [vmem:[#allocation8_spill] sm:$0xff] }
  0xae   : > { %v1099_v19 = vmax.f32 %v2096_v26, %v2521_v23  ;;  %v1385_v59 = vsel %vm1361_vm5, %v1050_v50, %v1384_v3  ;;  %v2522_v22 = vrot.slane %v2087_v9, 2  ;;  %v1057_v38 = vmax.f32 %v1055_v24, %v1056_v45  ;;  %v2532_v24 = vld [vmem:[#allocation11_spill] sm:$0xff]  ;;  %v2537_v3 = vld [vmem:[#allocation13_spill] sm:$0xff] }
  0xaf   : > { %v1008_v35 = vmax.f32 %v1006_v17, %v1007_v28  ;;  %v1061_v47 = vrot.slane %v1060_v46, 2  ;;  %v1110_v62 = vrot.slane %v2523_v12, 2  ;;  %v2525_v36 = vcombine.high %v2524_v0, %v2524_v0  ;;  %v2534_v28 = vld [vmem:[#allocation12_spill] sm:$0xff] }
  0xb0   : > { %v1104_v6 = vmax.f32 %v2087_v9, %v2522_v22  ;;  %v1388_v26 = vsel %vm1353_vm1, %v2527_v57, %v2526_v56  ;;  %v1386_v9 = vsel %vm1363_vm6, %v1057_v38, %v1385_v59  ;;  %v1147_v60 = vrot.slane %v2529_v21, 1  ;;  %v2539_v38 = vld [vmem:[#allocation14_spill] sm:$0xff] }
  0xb1   : > { %v1114_v31 = vsel %vm840_vm0, %v2525_v36, -inf  ;;  %v1380_v51 = vsel %vm1365_vm7, %v1008_v35, %v1379_v41  ;;  %v1062_v63 = vmax.f32 %v1060_v46, %v1061_v47  ;;  %v1111_v53 = vmax.f32 %v2523_v12, %v1110_v62  ;;  %v2535_v46 = vld [vmem:[#allocation9_spill] sm:$0xff] }
  0xb2   : > { %v1105_v39 = vrot.slane %v1104_v6, 1  ;;  %v1115_v30 = vrot.slane %v1114_v31, 4  ;;  %1426 = vst [vmem:[%s2284_s8 + $0x10] sm:$0xff] %v1380_v51  ;;  %v1389_v8 = vsel %vm1355_vm2, %v2528_v16, %v1388_v26  ;;  %v1148_v7 = vmax.f32 %v2529_v21, %v1147_v60 }
  0xb3   : > { %v1063_v1 = vrot.slane %v1062_v63, 1  ;;  %v1390_v29 = vsel %vm1357_vm3, %v1092_v33, %v1389_v8  ;;  %v1112_v52 = vrot.slane %v1111_v53, 1  ;;  %v2531_v17 = vrot.slane %v2530_v14, 1  ;;  %v2538_v33 = vld [vmem:[#allocation16_spill] sm:$0xff] }
  0xb4   : > { %v1106_v4 = vmax.f32 %v1104_v6, %v1105_v39  ;;  %v1116_v13 = vmax.f32 %v1114_v31, %v1115_v30  ;;  %v1391_v58 = vsel %vm1359_vm4, %v1099_v19, %v1390_v29  ;;  %v2533_v37 = vrot.slane %v2532_v24, 2  ;;  %v2545_v29 = vld [vmem:[#allocation19_spill] sm:$0xff] }
  0xb5   : > { %v1155_v41 = vmax.f32 %v2530_v14, %v2531_v17  ;;  %v1064_v27 = vmax.f32 %v1062_v63, %v1063_v1  ;;  %v1113_v10 = vmax.f32 %v1111_v53, %v1112_v52  ;;  %v1166_v50 = vrot.slane %v2534_v28, 2  ;;  %v2542_v1 = vld [vmem:[#allocation17_spill] sm:$0xff] }
  0xb6   : > { %v1117_v40 = vrot.slane %v1116_v13, 2  ;;  %v1392_v15 = vsel %vm1361_vm5, %v1106_v4, %v1391_v58  ;;  %v1160_v34 = vmax.f32 %v2532_v24, %v2533_v37  ;;  %v2536_v18 = vcombine.high %v2535_v46, %v2535_v46 }
  0xb7   : > { %v1395_v23 = vsel %vm1353_vm1, %v2538_v33, %v2537_v3  ;;  %v1387_v19 = vsel %vm1365_vm7, %v1064_v27, %v1386_v9  ;;  %v1393_v22 = vsel %vm1363_vm6, %v1113_v10, %v1392_v15  ;;  %v1167_v6 = vmax.f32 %v2534_v28, %v1166_v50 }
  0xb8   : > { %v1170_v45 = vsel %vm840_vm0, %v2536_v18, -inf  ;;  %v1118_v35 = vmax.f32 %v1116_v13, %v1117_v40  ;;  %v1161_v47 = vrot.slane %v1160_v34, 1  ;;  %1427 = vst [vmem:[%s2284_s8 + $0x18] sm:$0xff] %v1387_v19  ;;  %v1396_v12 = vsel %vm1355_vm2, %v2539_v38, %v1395_v23  ;;  %v2544_v13 = vld [vmem:[#allocation18_spill] sm:$0xff] }
  0xb9   : > { %v1171_v59 = vrot.slane %v1170_v45, 4  ;;  %v1203_v62 = vrot.slane %v2219_v61, 1  ;;  %v1397_v56 = vsel %vm1357_vm3, %v1148_v7, %v1396_v12  ;;  %v1168_v57 = vrot.slane %v1167_v6, 1 }
  0xba   : > { %v1119_v0 = vrot.slane %v1118_v35, 1  ;;  %v1162_v36 = vmax.f32 %v1160_v34, %v1161_v47  ;;  %v1398_v26 = vsel %vm1359_vm4, %v1155_v41, %v1397_v56  ;;  %v2540_v63 = vrot.slane %v2208_v2, 1  ;;  %v2546_v41 = vld [vmem:[#allocation20_spill] sm:$0xff] }
  0xbb   : > { %v1172_v31 = vmax.f32 %v1170_v45, %v1171_v59  ;;  %v1204_v51 = vmax.f32 %v2219_v61, %v1203_v62  ;;  %v2541_v16 = vrot.slane %v2210_v32, 2  ;;  %v1169_v21 = vmax.f32 %v1167_v6, %v1168_v57 }
  0xbc   : > { %v1211_v39 = vmax.f32 %v2208_v2, %v2540_v63  ;;  %v1120_v30 = vmax.f32 %v1118_v35, %v1119_v0  ;;  %v1399_v53 = vsel %vm1361_vm5, %v1162_v36, %v1398_v26  ;;  %v1222_v60 = vrot.slane %v2212_v43, 2 }
  0xbd   : > { %v1173_v9 = vrot.slane %v1172_v31, 2  ;;  %v1216_v8 = vmax.f32 %v2210_v32, %v2541_v16  ;;  %v2543_v4 = vcombine.high %v2542_v1, %v2542_v1  ;;  %v1402_v2 = vsel %vm1353_vm1, %v2545_v29, %v2544_v13 }
  0xbe   : > { %v1394_v52 = vsel %vm1365_vm7, %v1120_v30, %v1393_v22  ;;  %v1400_v32 = vsel %vm1363_vm6, %v1169_v21, %v1399_v53  ;;  %v1223_v17 = vmax.f32 %v2212_v43, %v1222_v60  ;;  %v1403_v27 = vsel %vm1355_vm2, %v2546_v41, %v1402_v2 }
  0xbf   : > { %v1226_v61 = vsel %vm840_vm0, %v2543_v4, -inf  ;;  %v1174_v58 = vmax.f32 %v1172_v31, %v1173_v9  ;;  %v1217_v7 = vrot.slane %v1216_v8, 1  ;;  %1428 = vst [vmem:[%s2284_s8 + $0x20] sm:$0xff] %v1394_v52  ;;  %v1259_v40 = vrot.slane %v2247_v11, 1 }
  0xc0   : > { %v1227_v14 = vrot.slane %v1226_v61, 4  ;;  %v1404_v34 = vsel %vm1357_vm3, %v1204_v51, %v1403_v27  ;;  %v1224_v10 = vrot.slane %v1223_v17, 1  ;;  %v1267_v43 = vmax.f32 %v2259_v54, %v1266_v55 }
  0xc1   : > { %v1175_v15 = vrot.slane %v1174_v58, 1  ;;  %v1218_v24 = vmax.f32 %v1216_v8, %v1217_v7  ;;  %v1405_v28 = vsel %vm1359_vm4, %v1211_v39, %v1404_v34  ;;  %v1260_v50 = vmax.f32 %v2247_v11, %v1259_v40 }
  0xc2   : > { %v1228_v37 = vmax.f32 %v1226_v61, %v1227_v14  ;;  %v1272_v3 = vmax.f32 %v2249_v44, %v1271_v48  ;;  %v1225_v33 = vmax.f32 %v1223_v17, %v1224_v10  ;;  %v1278_v23 = vrot.slane %v2255_v49, 2 }
  0xc3   : > { %v1176_v46 = vmax.f32 %v1174_v58, %v1175_v15  ;;  %v1406_v45 = vsel %vm1361_vm5, %v1218_v24, %v1405_v28  ;;  %v2547_v19 = vcombine.high %v2238_v25, %v2238_v25  ;;  %v1409_v54 = vsel %vm1353_vm1, %v2253_v5, %v2251_v20 }
  0xc4   : > { %v1229_v18 = vrot.slane %v1228_v37, 2  ;;  %v1273_v47 = vrot.slane %v1272_v3, 1  ;;  %v1407_v44 = vsel %vm1363_vm6, %v1225_v33, %v1406_v45  ;;  %v1279_v48 = vmax.f32 %v2255_v49, %v1278_v23 }
  0xc5   : > { %v1282_v11 = vsel %vm840_vm0, %v2547_v19, -inf  ;;  %v1401_v55 = vsel %vm1365_vm7, %v1176_v46, %v1400_v32  ;;  %v1410_v25 = vsel %vm1355_vm2, %v2257_v42, %v1409_v54 }
  0xc6   : > { %v1230_v35 = vmax.f32 %v1228_v37, %v1229_v18  ;;  %v1283_v59 = vrot.slane %v1282_v11, 4  ;;  %1429 = vst [vmem:[%s2284_s8 + $0x28] sm:$0xff] %v1401_v55  ;;  %v1274_v6 = vmax.f32 %v1272_v3, %v1273_v47  ;;  %v1411_v20 = vsel %vm1357_vm3, %v1260_v50, %v1410_v25 }
  0xc7   : > { %v1280_v5 = vrot.slane %v1279_v48, 1  ;;  %v1412_v12 = vsel %vm1359_vm4, %v1267_v43, %v1411_v20 }
  0xc8   : > { %v1231_v22 = vrot.slane %v1230_v35, 1  ;;  %v1284_v38 = vmax.f32 %v1282_v11, %v1283_v59  ;;  %v1413_v49 = vsel %vm1361_vm5, %v1274_v6, %v1412_v12 }
  0xc9   : > { %v1281_v36 = vmax.f32 %v1279_v48, %v1280_v5 }
  0xca   : > { %v1232_v62 = vmax.f32 %v1230_v35, %v1231_v22  ;;  %v1285_v0 = vrot.slane %v1284_v38, 2 }
  0xcb   : > { %v1414_v42 = vsel %vm1363_vm6, %v1281_v36, %v1413_v49 }
  0xcc   : > { %v1408_v31 = vsel %vm1365_vm7, %v1232_v62, %v1407_v44  ;;  %v1286_v56 = vmax.f32 %v1284_v38, %v1285_v0 }
  0xcd   : > { %1430 = vst [vmem:[%s2284_s8 + $0x30] sm:$0xff] %v1408_v31 }
  0xce   : > { %v1287_v57 = vrot.slane %v1286_v56, 1 }
  0xd0   : > { %v1288_v26 = vmax.f32 %v1286_v56, %v1287_v57 }
  0xd2   : > { %v1415_v51 = vsel %vm1365_vm7, %v1288_v26, %v1414_v42 }
  0xd3   : > { %1431 = vst [vmem:[%s2284_s8 + $0x38] sm:$0xff] %v1415_v51 }
  0xd4 PF: > { %s15_s17 = sadd.s32 1, %s1722_s17   ;;  %s2548_s15 = smov %s1718_s16 }
  0xd5   : > { %p12_p5 = scmp.ge.s32.totalorder %s15_s17, 4   ;;  %s2549_s16 = smov %s2551_s18 }
  0xd7   :  { %14 = sbr.rel (!%p12_p5) target bundleno = 2 (0x2), region = 74 }

// kernel: encoder_block_forward.4
= control target key start
LH: loop header
LB: loop body
LE: loop exit
PB: predicated region body
PF: predicated region fallthrough
CT: control target
= control target key end

     0   :  { %s4441_s24 = smov 0   ;;  %s4443_s25 = smov 0   ;;  %s6003_s0 = inlined_call_operand.vmem [shape: bf16[2,16,16,128], index: 0, kind: input, shape index: {}, may-alias: {0,1,2}]   ;;  %s6004_s1 = inlined_call_operand.vmem [shape: bf16[2,16,16,128], index: 1, kind: input, shape index: {}, may-alias: {0,1,2}]   ;;  %s6005_s2 = inlined_call_operand.vmem [shape: bf16[2,16,16,128], index: 2, kind: input, shape index: {}, may-alias: {0,1,2}]   ;;  %s6006_s3 = inlined_call_operand.vmem [shape: f32[1,128], index: 3, kind: input, shape index: {}]   ;;  %s6007_s4 = inlined_call_operand.vmem [shape: f32[1,128], index: 4, kind: input, shape index: {}]   ;;  %s6008_s5 = inlined_call_operand.vmem [shape: bf16[3,384,128], index: 5, kind: input, shape index: {}]   ;;  %s6009_s6 = inlined_call_operand.vmem [shape: bf16[2,16,16,128], index: 6, kind: output, shape index: {0}]   ;;  %s6010_s7 = inlined_call_operand.vmem [shape: f32[2,1,2,128], index: 7, kind: output, shape index: {1}]  }
   0x1   :  { %s4445_s26 = smov 0  }
   0x2 LB: > { %s30_s27 = sadd.s32 1, %s4394_s25  ;;  %p2987_p0 = scmp.ge.s32.totalorder %s4398_s26, 1  ;;  %s4398_s26 = sphi %s4445_s26, %s18_s26   ;;  %s4394_s25 = sphi %s4443_s25, %s6074_s25   ;;  %s4390_s24 = sphi %s4441_s24, %s6073_s24  }
   0x3   : > { %p32_p1 = scmp.ge.s32.totalorder %s30_s27, 2  ;;  %p328_p2 = scmp.lt.s32.totalorder %s4398_s26, 3 }
   0x5   : > { %s6076_s27 = smov (%p32_p1, %s30_s27), 0  ;;  %p329_p3 = pnand %p2987_p0, %p328_p2 }
   0x7   : > { %332 = sbr.rel (%p329_p3) target bundleno = 550 (0x226), region = 44 }
   0xc   : > { %v4302_v0 = vld [vmem:[%s6008_s5 + $0x138] sm:$0xff]   ;;  %v4304_v2 = vld [vmem:[%s6008_s5 + $0x130] sm:$0xff]   ;;  %p404_p4 = scmp.lt.s32.totalorder %s4390_s24, 1  ;;  %v4306_v4 = vld [vmem:[%s6008_s5 + $0x128] sm:$0xff]   ;;  %v673_v9 = vlaneseq  ;;  %vm4400_vm2 = vmmov 1  }
   0xd   : > { %v4303_v1 = vld [vmem:[%s6008_s5 + $0xf8] sm:$0xff]   ;;  %3709 = vmatprep.subr.bf16.mxu0 %v4302_v0  ;;  %4261 = vmatprep.subr.bf16.mxu1 %v4302_v0  ;;  %v4305_v3 = vld [vmem:[%s6008_s5 + $0xf0] sm:$0xff]   ;;  %v4307_v5 = vld [vmem:[%s6008_s5 + $0xe8] sm:$0xff]  }
   0xe   : > { %3710 = vmatpush3.bf16.msra.mxu0 %v4303_v1  ;;  %4269 = vmatpush3.bf16.msra.mxu1 %v4303_v1  ;;  %s6078_s24 = smov (!%p404_p4, %s4390_s24), 1  ;;  %v4308_v6 = vld [vmem:[%s6008_s5 + $0x120] sm:$0xff]   ;;  %v4310_v8 = vld [vmem:[%s6008_s5 + $0x118] sm:$0xff]   ;;  %v4312_v11 = vld [vmem:[%s6008_s5 + $0x110] sm:$0xff]   ;;  %v4510_v17 = vshrl.u32 %v673_v9, 7 }
   0xf   : > { %3711 = vmatprep.subr.bf16.mxu0 %v4304_v2  ;;  %4262 = vmatprep.subr.bf16.mxu1 %v4304_v2  ;;  %s4483_s19 = sshll.u32 %s6078_s24, 7  ;;  %v4309_v7 = vld [vmem:[%s6008_s5 + $0xe0] sm:$0xff]   ;;  %v4311_v10 = vld [vmem:[%s6008_s5 + $0xd8] sm:$0xff]   ;;  %v4313_v21 = vld [vmem:[%s6008_s5 + $0xd0] sm:$0xff]  }
  0x10   : > { %s4495_s30 = scalar_lea.vmem %s6003_s0, %s4483_s19  ;;  %v4506_v12 = vld [vmem:[%s6006_s3] ss:$0 sm:$0xff]  ;;  %v4314_v24 = vld [vmem:[%s6008_s5 + $0x108] sm:$0xff]   ;;  %v4528_v27 = vadd.s32 8, %v4510_v17  ;;  %vm676_vm0 = vcmp.ge.s32.totalorder %v4510_v17, 1  ;;  %vm710_vm1 = vcmp.lt.s32.totalorder %v4510_v17, 1  ;;  %s426_s22 = scalar_lea.vmem %s6004_s1, %s4483_s19 }
  0x11   : > { %v3535_v13 = vld [vmem:[%s4495_s30] sm:$0xff]   ;;  %v3679_v30 = vld [vmem:[%s4495_s30 + $0x8] sm:$0xff]   ;;  %v3680_v49 = vld [vmem:[%s4495_s30 + $0x10] sm:$0xff]   ;;  %vm813_vm4 = vcmp.lt.s32.totalorder %v4510_v17, 7  ;;  %s3492_s23 = sadd.s32 120, %s4483_s19  ;;  %s5868_s10 = scalar_lea.vmem %s6009_s6, %s4483_s19 }
  0x12   : > { %3712 = vmatpush3.bf16.msra.mxu0 %v4305_v3  ;;  %4270 = vmatpush3.bf16.msra.mxu1 %v4305_v3  ;;  %v3536_v14 = vunpack.c.l.bf16 %v3535_v13  ;;  %v3537_v15 = vunpack.c.h.bf16 %v3535_v13  ;;  %v3690_v16 = vld [vmem:[%s4495_s30 + $0x60] sm:$0xff]   ;;  %v3691_v31 = vld [vmem:[%s4495_s30 + $0x68] sm:$0xff]   ;;  %v3540_v34 = vunpack.c.l.bf16 %v3679_v30  ;;  %v3541_v35 = vunpack.c.h.bf16 %v3679_v30  ;;  %v3692_v58 = vld [vmem:[%s4495_s30 + $0x70] sm:$0xff]   ;;  %s443_s8 = scalar_lea.vmem %s6005_s2, %s3492_s23  ;;  %s2996_s19 = sshll.u32 %s6078_s24, 1 }
  0x13   : > { %3713 = vmatprep.subr.bf16.mxu0 %v4306_v4  ;;  %4263 = vmatprep.subr.bf16.mxu1 %v4306_v4  ;;  %v4515_v18 = vld [vmem:[%s6007_s4] ss:$0 sm:$0xff]  ;;  %v3584_v19 = vunpack.c.l.bf16 %v3690_v16  ;;  %v3585_v20 = vunpack.c.h.bf16 %v3690_v16  ;;  %v4315_v36 = vld [vmem:[%s6008_s5 + $0xc8] sm:$0xff]   ;;  %v3588_v43 = vunpack.c.l.bf16 %v3691_v31  ;;  %v3589_v48 = vunpack.c.h.bf16 %v3691_v31  ;;  %v4318_v62 = vld [vmem:[%s6008_s5 + $0x178] sm:$0xff]   ;;  %s465_s13 = scalar_lea.vmem %s6010_s7, %s2996_s19 }
  0x14   : > { %v577_v22 = vmul.f32 %v3536_v14, %v4506_v12  ;;  %v578_v23 = vmul.f32 %v3537_v15, %v4506_v12  ;;  %v4316_v37 = vld [vmem:[%s6008_s5 + $0x100] sm:$0xff]   ;;  %v579_v42 = vmul.f32 %v3540_v34, %v4506_v12  ;;  %v580_v47 = vmul.f32 %v3541_v35, %v4506_v12  ;;  %v4319_v63 = vld [vmem:[%s6008_s5 + $0xb8] sm:$0xff]   ;;  %vm4603_vm3 = vmpackc.low %vm4400_vm2, %vm676_vm0 }
  0x15   : > { %v601_v25 = vmul.f32 %v3584_v19, %v4506_v12  ;;  %v602_v26 = vmul.f32 %v3585_v20, %v4506_v12  ;;  %v4317_v44 = vld [vmem:[%s6008_s5 + $0xc0] sm:$0xff]   ;;  %v3544_v57 = vunpack.c.l.bf16 %v3680_v49  ;;  %v3545_v0 = vunpack.c.h.bf16 %v3680_v49  ;;  %v4320_v16 = vld [vmem:[%s6008_s5 + $0x170] sm:$0xff]   ;;  %v3681_v35 = vld [vmem:[%s4495_s30 + $0x18] sm:$0xff]  }
  0x16   : > { %3714 = vmatpush3.bf16.msra.mxu0 %v4307_v5  ;;  %4271 = vmatpush3.bf16.msra.mxu1 %v4307_v5  ;;  %v609_v28 = vadd.f32 %v4515_v18, %v577_v22  ;;  %v610_v29 = vadd.f32 %v4515_v18, %v578_v23  ;;  %v611_v56 = vadd.f32 %v4515_v18, %v579_v42  ;;  %v3693_v49 = vld [vmem:[%s4495_s30 + $0x78] sm:$0xff]   ;;  %vm780_vm5 = vcmp.lt.s32.totalorder %v4528_v27, 15 }
  0x17   : > { %3715 = vmatprep.subr.bf16.mxu0 %v4308_v6  ;;  %4264 = vmatprep.subr.bf16.mxu1 %v4308_v6  ;;  %v633_v32 = vadd.f32 %v4515_v18, %v601_v25  ;;  %v634_v33 = vadd.f32 %v4515_v18, %v602_v26  ;;  %v612_v2 = vadd.f32 %v4515_v18, %v580_v47  ;;  %v4323_v25 = vld [vmem:[%s6008_s5 + $0xb0] sm:$0xff]   ;;  %v3593_v26 = vunpack.c.h.bf16 %v3692_v58  ;;  %vm4815_vm6 = vmpackc.low %vm780_vm5, %vm4400_vm2 }
  0x18   : > { %v4544_v38 = vmax.f32 %v609_v28, 0.0  ;;  %v4546_v39 = vmax.f32 %v610_v29, 0.0  ;;  %v4593_v3 = vmax.f32 %v611_v56, 0.0  ;;  %v603_v4 = vmul.f32 %v3588_v43, %v4506_v12  ;;  %v4321_v29 = vld [vmem:[%s6008_s5 + $0x168] sm:$0xff]  }
  0x19   : > { %v4548_v40 = vmax.f32 %v633_v32, 0.0  ;;  %v4550_v41 = vmax.f32 %v634_v33, 0.0  ;;  %v604_v5 = vmul.f32 %v3589_v48, %v4506_v12  ;;  %v581_v6 = vmul.f32 %v3544_v57, %v4506_v12 }
  0x1a   : > { %3716 = vmatpush3.bf16.msra.mxu0 %v4309_v7  ;;  %4272 = vmatpush3.bf16.msra.mxu1 %v4309_v7  ;;  %v679_v45 = vrot.slane %v4544_v38, 7  ;;  %v695_v46 = vrot.slane %v4546_v39, 7  ;;  %v4562_v50 = vpack.c.bf16 %v4546_v39, %v4544_v38  ;;  %v582_v7 = vmul.f32 %v3545_v0, %v4506_v12 }
  0x1b   : > { %3717 = vmatprep.subr.bf16.mxu0 %v4310_v8  ;;  %4265 = vmatprep.subr.bf16.mxu1 %v4310_v8  ;;  %v4566_v51 = vpack.c.bf16 %v4550_v41, %v4548_v40  ;;  %v691_v52 = vrot.slane %v4548_v40, 7  ;;  %v707_v53 = vrot.slane %v4550_v41, 7  ;;  %v3592_v8 = vunpack.c.l.bf16 %v3692_v58 }
  0x1c   : > { %v712_v54 = vsel %vm710_vm1, %v679_v45, %v695_v46  ;;  %v728_v55 = vsel %vm710_vm1, %v695_v46, %v679_v45  ;;  %1218 = vmatprep.mubr.bf16.mxu0 %v4562_v50  ;;  %v782_v9 = vrot.slane %v4544_v38, 1  ;;  %v635_v13 = vadd.f32 %v4515_v18, %v603_v4 }
  0x1d   : > { %v4576_v59 = vpack.c.bf16 %v712_v54, %v728_v55  ;;  %v724_v60 = vsel %vm710_vm1, %v691_v52, %v707_v53  ;;  %v740_v61 = vsel %vm710_vm1, %v707_v53, %v691_v52  ;;  %1314 = vmatprep.mubr.bf16.mxu1 %v4566_v51  ;;  %v680_v14 = vrot.slane %v4593_v3, 7  ;;  %v4322_v54 = vld [vmem:[%s6008_s5 + $0x160] sm:$0xff]  }
  0x1e   : > { %3718 = vmatpush3.bf16.msra.mxu0 %v4311_v10  ;;  %4273 = vmatpush3.bf16.msra.mxu1 %v4311_v10  ;;  %v4590_v1 = vpack.c.bf16 %v724_v60, %v740_v61  ;;  %v798_v15 = vrot.slane %v4546_v39, 1  ;;  %v636_v19 = vadd.f32 %v4515_v18, %v604_v5  ;;  %v613_v20 = vadd.f32 %v4515_v18, %v581_v6  ;;  %v4331_v5 = vld [vmem:[%s6008_s5 + $0xa0] sm:$0xff]  }
  0x1f   : > { %3719 = vmatprep.subr.bf16.mxu0 %v4312_v11  ;;  %4266 = vmatprep.subr.bf16.mxu1 %v4312_v11  ;;  %v4607_v11 = vmax.f32 %v612_v2, 0.0  ;;  %v4622_v23 = vmax.f32 %v635_v13, 0.0  ;;  %v605_v32 = vmul.f32 %v3592_v8, %v4506_v12  ;;  %v606_v46 = vmul.f32 %v3593_v26, %v4506_v12  ;;  %v4328_v39 = vld [vmem:[%s6008_s5 + $0x140] sm:$0xff]  }
  0x20   : > { %6023 = vst [vmem:[#allocation2_spill] sm:$0xff] %v4590_v1  ;;  %v4634_v28 = vmax.f32 %v636_v19, 0.0  ;;  %v4639_v30 = vmax.f32 %v613_v20, 0.0  ;;  %v3548_v56 = vunpack.c.l.bf16 %v3681_v35  ;;  %v3549_v61 = vunpack.c.h.bf16 %v3681_v35 }
  0x21   : > { %v4620_v22 = vpack.c.bf16 %v4607_v11, %v4593_v3  ;;  %v692_v34 = vrot.slane %v4622_v23, 7  ;;  %v637_v47 = vadd.f32 %v4515_v18, %v605_v32  ;;  %v638_v58 = vadd.f32 %v4515_v18, %v606_v46  ;;  %v4324_v32 = vld [vmem:[%s6008_s5 + $0x158] sm:$0xff]  }
  0x22   : > { %3720 = vmatpush3.bf16.msra.mxu0 %v4313_v21  ;;  %4274 = vmatpush3.bf16.msra.mxu1 %v4313_v21  ;;  %v614_v21 = vadd.f32 %v4515_v18, %v582_v7  ;;  %v708_v42 = vrot.slane %v4634_v28, 7  ;;  %v681_v48 = vrot.slane %v4639_v30, 7  ;;  %v583_v2 = vmul.f32 %v3548_v56, %v4506_v12 }
  0x23   : > { %3721 = vmatprep.subr.bf16.mxu0 %v4314_v24  ;;  %4267 = vmatprep.subr.bf16.mxu1 %v4314_v24  ;;  %v696_v24 = vrot.slane %v4607_v11, 7  ;;  %v4681_v60 = vmax.f32 %v637_v47, 0.0  ;;  %v3596_v4 = vunpack.c.l.bf16 %v3693_v49  ;;  %v4693_v6 = vmax.f32 %v638_v58, 0.0 }
  0x24   : > { %v4641_v31 = vmax.f32 %v614_v21, 0.0  ;;  %v725_v52 = vsel %vm710_vm1, %v692_v34, %v708_v42  ;;  %v741_v53 = vsel %vm710_vm1, %v708_v42, %v692_v34  ;;  %v584_v13 = vmul.f32 %v3549_v61, %v4506_v12 }
  0x25   : > { %v713_v33 = vsel %vm710_vm1, %v680_v14, %v696_v24  ;;  %v4678_v57 = vpack.c.bf16 %v725_v52, %v741_v53  ;;  %v693_v8 = vrot.slane %v4681_v60, 7  ;;  %v607_v19 = vmul.f32 %v3596_v4, %v4506_v12 }
  0x26   : > { %3722 = vmatpush3.bf16.msra.mxu0 %v4315_v36  ;;  %4275 = vmatpush3.bf16.msra.mxu1 %v4315_v36  ;;  %v4651_v36 = vpack.c.bf16 %v4634_v28, %v4622_v23  ;;  %v4658_v43 = vpack.c.bf16 %v4641_v31, %v4639_v30  ;;  %v697_v55 = vrot.slane %v4641_v31, 7  ;;  %v4710_v21 = vpack.c.bf16 %v4693_v6, %v4681_v60 }
  0x27   : > { %3723 = vmatprep.subr.bf16.mxu0 %v4316_v37  ;;  %4268 = vmatprep.subr.bf16.mxu1 %v4316_v37  ;;  %v729_v37 = vsel %vm710_vm1, %v696_v24, %v680_v14  ;;  %6027 = vst [vmem:[#allocation4_spill] sm:$0xff] %v4678_v57  ;;  %v615_v14 = vadd.f32 %v4515_v18, %v583_v2  ;;  %v709_v24 = vrot.slane %v4693_v6, 7 }
  0x28   : > { %6026 = vst [vmem:[#allocation3_spill] sm:$0xff] %v4651_v36  ;;  %v4663_v45 = vpack.c.bf16 %v713_v33, %v729_v37  ;;  %v730_v0 = vsel %vm710_vm1, %v697_v55, %v681_v48  ;;  %6028 = vst [vmem:[#allocation5_spill] sm:$0xff] %v4710_v21  ;;  %v639_v34 = vadd.f32 %v4515_v18, %v607_v19  ;;  %v783_v19 = vrot.slane %v4593_v3, 1 }
  0x29   : > { %v4718_v33 = vmax.f32 %v615_v14, 0.0  ;;  %v726_v37 = vsel %vm710_vm1, %v693_v8, %v709_v24  ;;  %v742_v42 = vsel %vm710_vm1, %v709_v24, %v693_v8  ;;  %v4339_v8 = vld [vmem:[%s6008_s5 + $0x90] sm:$0xff]   ;;  %v4326_v24 = vld [vmem:[%s6008_s5 + $0x148] sm:$0xff]  }
  0x2a   : > { %3724 = vmatpush3.bf16.msra.mxu0 %v4317_v44  ;;  %4276 = vmatpush3.bf16.msra.mxu1 %v4317_v44  ;;  %v4327_v44 = vld [vmem:[%s6008_s5 + $0xa8] sm:$0xff]   ;;  %v4737_v52 = vmax.f32 %v639_v34, 0.0 }
  0x2b   : > { %4117 = vmatprep.subr.bf16.mxu1 %v4318_v62  ;;  %4165 = vmatprep.subr.bf16.mxu0 %v4319_v63  ;;  %v682_v53 = vrot.slane %v4718_v33, 7 }
  0x2d   : > { %3073 = vmatmul.mubr.msk.bf16.vlgmr.msra.gmra.mxu0 %vm4603_vm3, %v4576_v59  ;;  %3109 = vmatmul.mubr.msk.bf16.vlgmr.msra.gmra.mxu1 %vm4603_vm3, %v4590_v1 }
  0x2e   : > { %4118 = vmatpush3.bf16.msra.mxu1 %v4318_v62  ;;  %4166 = vmatpush3.bf16.msra.mxu0 %v4319_v63  ;;  %v3682_v62 = vld [vmem:[%s4495_s30 + $0x20] sm:$0xff]   ;;  %v714_v63 = vsel %vm710_vm1, %v681_v48, %v697_v55  ;;  %v4734_v48 = vpack.c.bf16 %v726_v37, %v742_v42  ;;  %v831_v37 = vsel %vm813_vm4, %v798_v15, %v782_v9 }
  0x2f   : > { %4119 = vmatprep.subr.bf16.mxu1 %v4320_v16  ;;  %1226 = vmatprep.mubr.bf16.mxu0 %v4620_v22  ;;  %v4695_v7 = vpack.c.bf16 %v714_v63, %v730_v0  ;;  %v3552_v20 = vunpack.c.l.bf16 %v3682_v62  ;;  %v3553_v26 = vunpack.c.h.bf16 %v3682_v62  ;;  %v4325_v62 = vld [vmem:[%s6008_s5 + $0x150] sm:$0xff]   ;;  %v978_v0 = vrot.slane %v4737_v52, 7 }
  0x30   : > { %4167 = vmatprep.subr.bf16.mxu0 %v4323_v25  ;;  %1322 = vmatprep.mubr.bf16.mxu1 %v4651_v36  ;;  %6029 = vst [vmem:[#allocation6_spill] sm:$0xff] %v4734_v48 }
  0x31   : > { %v585_v35 = vmul.f32 %v3552_v20, %v4506_v12  ;;  %v586_v47 = vmul.f32 %v3553_v26, %v4506_v12  ;;  %v799_v20 = vrot.slane %v4607_v11, 1  ;;  %v3684_v26 = vld [vmem:[%s4495_s30 + $0x30] sm:$0xff]  }
  0x32   : > { %4120 = vmatpush3.bf16.msra.mxu1 %v4320_v16  ;;  %4168 = vmatpush3.bf16.msra.mxu0 %v4323_v25  ;;  %v3597_v16 = vunpack.c.h.bf16 %v3693_v49  ;;  %v616_v25 = vadd.f32 %v4515_v18, %v584_v13 }
  0x33   : > { %4121 = vmatprep.subr.bf16.mxu1 %v4321_v29  ;;  %4169 = vmatprep.subr.bf16.mxu0 %v4327_v44  ;;  %v617_v58 = vadd.f32 %v4515_v18, %v585_v35  ;;  %v618_v61 = vadd.f32 %v4515_v18, %v586_v47 }
  0x34   : > { %v4728_v46 = vmax.f32 %v616_v25, 0.0  ;;  %v815_v25 = vsel %vm813_vm4, %v782_v9, %v798_v15  ;;  %v784_v9 = vrot.slane %v4639_v30, 1  ;;  %v800_v15 = vrot.slane %v4641_v31, 1  ;;  %v4344_v30 = vld [vmem:[%s6008_s5 + $0x88] sm:$0xff]  }
  0x35   : > { %3076 = vmatmul.mubr.msk.bf16.gmra.mxu0 %vm4603_vm3, %v4663_v45  ;;  %3112 = vmatmul.mubr.msk.bf16.gmra.mxu1 %vm4603_vm3, %v4678_v57  ;;  %v4756_v4 = vmax.f32 %v617_v58, 0.0  ;;  %v3561_v58 = vunpack.c.h.bf16 %v3684_v26 }
  0x36   : > { %4122 = vmatpush3.bf16.msra.mxu1 %v4321_v29  ;;  %1234 = vmatprep.mubr.bf16.mxu0 %v4658_v43  ;;  %v608_v29 = vmul.f32 %v3597_v16, %v4506_v12  ;;  %v4742_v55 = vpack.c.bf16 %v4728_v46, %v4718_v33  ;;  %v698_v56 = vrot.slane %v4728_v46, 7  ;;  %v4774_v16 = vmax.f32 %v618_v61, 0.0 }
  0x37   : > { %4123 = vmatprep.subr.bf16.mxu1 %v4322_v54  ;;  %4170 = vmatpush3.bf16.msra.mxu0 %v4327_v44  ;;  %v4336_v44 = vld [vmem:[%s6008_s5 + $0x98] sm:$0xff]   ;;  %v683_v42 = vrot.slane %v4756_v4, 7  ;;  %v4824_v61 = vpack.c.bf16 %v831_v37, %v815_v25  ;;  %v832_v25 = vsel %vm813_vm4, %v799_v20, %v783_v19 }
  0x38   : > { %1330 = vmatprep.mubr.bf16.mxu1 %v4710_v21  ;;  %4171 = vmatprep.subr.bf16.mxu0 %v4331_v5  ;;  %v640_v49 = vadd.f32 %v4515_v18, %v608_v29  ;;  %v715_v2 = vsel %vm710_vm1, %v682_v53, %v698_v56  ;;  %v731_v13 = vsel %vm710_vm1, %v698_v56, %v682_v53 }
  0x39   : > { %v4794_v34 = vpack.c.bf16 %v715_v2, %v731_v13  ;;  %v4798_v35 = vpack.c.bf16 %v4774_v16, %v4756_v4  ;;  %v3685_v2 = vld [vmem:[%s4495_s30 + $0x38] sm:$0xff]  }
  0x3a   : > { %4124 = vmatpush3.bf16.msra.mxu1 %v4322_v54  ;;  %v4750_v63 = vmax.f32 %v640_v49, 0.0  ;;  %v3683_v54 = vld [vmem:[%s4495_s30 + $0x28] sm:$0xff]   ;;  %v699_v49 = vrot.slane %v4774_v16, 7 }
  0x3b   : > { %4125 = vmatprep.subr.bf16.mxu1 %v4324_v32  ;;  %4172 = vmatpush3.bf16.msra.mxu0 %v4331_v5  ;;  %v3557_v29 = vunpack.c.h.bf16 %v3683_v54 }
  0x3c   : > { %4173 = vmatprep.subr.bf16.mxu0 %v4336_v44  ;;  %v4769_v5 = vpack.c.bf16 %v4750_v63, %v4737_v52  ;;  %v979_v14 = vrot.slane %v4750_v63, 7 }
  0x3d   : > { %3079 = vmatmul.mubr.msk.bf16.gmra.mxu0 %vm4603_vm3, %v4695_v7  ;;  %3115 = vmatmul.mubr.msk.bf16.gmra.mxu1 %vm4603_vm3, %v4734_v48  ;;  %v588_v56 = vmul.f32 %v3557_v29, %v4506_v12  ;;  %v4330_v29 = vld [vmem:[%s6008_s5 + $0x38] sm:$0xff]  }
  0x3e   : > { %6030 = vst [vmem:[#allocation7_spill] sm:$0xff] %v4769_v5  ;;  %4126 = vmatpush3.bf16.msra.mxu1 %v4324_v32  ;;  %1242 = vmatprep.mubr.bf16.mxu0 %v4742_v55  ;;  %v980_v3 = vsel %vm710_vm1, %v978_v0, %v979_v14  ;;  %v981_v11 = vsel %vm710_vm1, %v979_v14, %v978_v0  ;;  %v3556_v32 = vunpack.c.l.bf16 %v3683_v54  ;;  %v785_v14 = vrot.slane %v4718_v33, 1  ;;  %v4347_v33 = vld [vmem:[%s6008_s5 + $0x80] sm:$0xff]  }
  0x3f   : > { %4127 = vmatprep.subr.bf16.mxu1 %v4325_v62  ;;  %1338 = vmatprep.mubr.bf16.mxu1 %v4769_v5  ;;  %v4807_v47 = vpack.c.bf16 %v980_v3, %v981_v11  ;;  %v620_v0 = vadd.f32 %v4515_v18, %v588_v56  ;;  %v732_v3 = vsel %vm710_vm1, %v699_v49, %v683_v42  ;;  %v801_v11 = vrot.slane %v4728_v46, 1 }
  0x40   : > { %4174 = vmatpush3.bf16.msra.mxu0 %v4336_v44  ;;  %v587_v53 = vmul.f32 %v3556_v32, %v4506_v12  ;;  %v3560_v44 = vunpack.c.l.bf16 %v3684_v26  ;;  %v716_v26 = vsel %vm710_vm1, %v683_v42, %v699_v49  ;;  %v3564_v32 = vunpack.c.l.bf16 %v3685_v2 }
  0x41   : > { %6031 = vst [vmem:[#allocation8_spill] sm:$0xff] %v4807_v47  ;;  %4175 = vmatprep.subr.bf16.mxu0 %v4339_v8  ;;  %v4843_v13 = vmax.f32 %v620_v0, 0.0  ;;  %v786_v42 = vrot.slane %v4756_v4, 1  ;;  %v802_v49 = vrot.slane %v4774_v16, 1  ;;  %v818_v0 = vsel %vm813_vm4, %v785_v14, %v801_v11 }
  0x42   : > { %4128 = vmatpush3.bf16.msra.mxu1 %v4325_v62  ;;  %v619_v27 = vadd.f32 %v4515_v18, %v587_v53  ;;  %v816_v62 = vsel %vm813_vm4, %v783_v19, %v799_v20  ;;  %v589_v54 = vmul.f32 %v3560_v44, %v4506_v12  ;;  %v4329_v19 = vld [vmem:[%s6008_s5 + $0x78] sm:$0xff]   ;;  %v817_v20 = vsel %vm813_vm4, %v784_v9, %v800_v15  ;;  %v4332_v44 = vld [vmem:[%s6008_s5 + $0x70] sm:$0xff]  }
  0x43   : > { %4129 = vmatprep.subr.bf16.mxu1 %v4326_v24  ;;  %v4875_v53 = vpack.c.bf16 %v716_v26, %v732_v3  ;;  %v4877_v56 = vpack.c.bf16 %v832_v25, %v816_v62  ;;  %v834_v62 = vsel %vm813_vm4, %v801_v11, %v785_v14 }
  0x44   : > { %4176 = vmatpush3.bf16.msra.mxu0 %v4339_v8  ;;  %v4841_v31 = vmax.f32 %v619_v27, 0.0  ;;  %v590_v8 = vmul.f32 %v3561_v58, %v4506_v12  ;;  %v621_v46 = vadd.f32 %v4515_v18, %v589_v54  ;;  %v3565_v58 = vunpack.c.h.bf16 %v3685_v2  ;;  %v3686_v27 = vld [vmem:[%s4495_s30 + $0x40] sm:$0xff]  }
  0x45   : > { %3082 = vmatmul.mubr.msk.bf16.gmra.mxu0 %vm4603_vm3, %v4794_v34  ;;  %3118 = vmatmul.mubr.msk.bf16.gmra.mxu1 %vm4603_vm3, %v4807_v47  ;;  %v819_v2 = vsel %vm813_vm4, %v786_v42, %v802_v49 }
  0x46   : > { %4130 = vmatpush3.bf16.msra.mxu1 %v4326_v24  ;;  %1250 = vmatprep.mubr.bf16.mxu0 %v4798_v35  ;;  %v833_v24 = vsel %vm813_vm4, %v800_v15, %v784_v9  ;;  %v622_v37 = vadd.f32 %v4515_v18, %v590_v8  ;;  %v684_v9 = vrot.slane %v4841_v31, 7  ;;  %v700_v15 = vrot.slane %v4843_v13, 7  ;;  %v4351_v8 = vld [vmem:[%s6008_s5 + $0x1f8] sm:$0xff]  }
  0x47   : > { %4131 = vmatprep.subr.bf16.mxu1 %v4328_v39  ;;  %4133 = vmatprep.mubr.msk.bf16.mxu1 %vm4815_vm6, %v4824_v61  ;;  %v4886_v4 = vpack.c.bf16 %v4843_v13, %v4841_v31  ;;  %v4888_v16 = vpack.c.bf16 %v833_v24, %v817_v20  ;;  %v653_v54 = vmax.f32 %v621_v46, 0.0  ;;  %v787_v26 = vrot.slane %v4841_v31, 1  ;;  %v4333_v20 = vld [vmem:[%s6008_s5 + $0x30] sm:$0xff]  }
  0x48   : > { %4177 = vmatprep.subr.bf16.mxu0 %v4344_v30  ;;  %v654_v25 = vmax.f32 %v622_v37, 0.0  ;;  %v592_v3 = vmul.f32 %v3565_v58, %v4506_v12  ;;  %v717_v14 = vsel %vm710_vm1, %v684_v9, %v700_v15  ;;  %v733_v11 = vsel %vm710_vm1, %v700_v15, %v684_v9 }
  0x49   : > { %4178 = vmatpush3.bf16.msra.mxu0 %v4344_v30  ;;  %v591_v30 = vmul.f32 %v3564_v32, %v4506_v12  ;;  %v3568_v31 = vunpack.c.l.bf16 %v3686_v27  ;;  %v803_v24 = vrot.slane %v4843_v13, 1  ;;  %v3569_v37 = vunpack.c.h.bf16 %v3686_v27 }
  0x4a   : > { %4132 = vmatpush3.bf16.msra.mxu1 %v4328_v39  ;;  %4179 = vmatprep.subr.bf16.mxu0 %v4347_v33  ;;  %v3687_v39 = vld [vmem:[%s4495_s30 + $0x48] sm:$0xff]   ;;  %v624_v32 = vadd.f32 %v4515_v18, %v592_v3  ;;  %v701_v15 = vrot.slane %v654_v25, 7  ;;  %v788_v58 = vrot.slane %v653_v54, 1  ;;  %v3688_v3 = vld [vmem:[%s4495_s30 + $0x50] sm:$0xff]   ;;  %v4934_v47 = vpack.c.bf16 %v717_v14, %v733_v11 }
  0x4b   : > { %3845 = vmatprep.subr.bf16.mxu1 %v4329_v19  ;;  %v835_v19 = vsel %vm813_vm4, %v802_v49, %v786_v42  ;;  %v623_v46 = vadd.f32 %v4515_v18, %v591_v30  ;;  %v4926_v42 = vpack.c.bf16 %v834_v62, %v818_v0  ;;  %v4334_v49 = vld [vmem:[%s6008_s5 + $0x68] sm:$0xff]   ;;  %v593_v9 = vmul.f32 %v3568_v31, %v4506_v12 }
  0x4c   : > { %v3572_v13 = vunpack.c.l.bf16 %v3687_v39  ;;  %v804_v30 = vrot.slane %v654_v25, 1  ;;  %v594_v27 = vmul.f32 %v3569_v37, %v4506_v12  ;;  %v4936_v0 = vpack.c.bf16 %v835_v19, %v819_v2 }
  0x4d   : > { %3085 = vmatmul.mubr.msk.bf16.gmra.mxu0 %vm4603_vm3, %v4875_v53  ;;  %4134 = vmatmul.mubr.msk.bf16.vlgmr.msra.gmra.mxu1 %vm4815_vm6, %v4877_v56  ;;  %v3573_v62 = vunpack.c.h.bf16 %v3687_v39  ;;  %v4939_v5 = vpack.c.bf16 %v654_v25, %v653_v54  ;;  %v820_v31 = vsel %vm813_vm4, %v787_v26, %v803_v24  ;;  %v655_v48 = vmax.f32 %v623_v46, 0.0  ;;  %v4337_v25 = vld [vmem:[%s6008_s5 + $0x60] sm:$0xff]  }
  0x4e   : > { %3846 = vmatpush3.bf16.msra.mxu1 %v4330_v29  ;;  %1258 = vmatprep.mubr.bf16.mxu0 %v4886_v4  ;;  %v685_v29 = vrot.slane %v653_v54, 7  ;;  %v656_v21 = vmax.f32 %v624_v32, 0.0  ;;  %v836_v37 = vsel %vm813_vm4, %v803_v24, %v787_v26  ;;  %v626_v2 = vadd.f32 %v4515_v18, %v594_v27 }
  0x4f   : > { %4137 = vmatprep.mubr.msk.bf16.mxu1 %vm4815_vm6, %v4888_v16  ;;  %3847 = vmatprep.subr.bf16.mxu1 %v4332_v44  ;;  %v625_v44 = vadd.f32 %v4515_v18, %v593_v9  ;;  %v595_v54 = vmul.f32 %v3572_v13, %v4506_v12  ;;  %v596_v26 = vmul.f32 %v3573_v62, %v4506_v12  ;;  %v3576_v14 = vunpack.c.l.bf16 %v3688_v3 }
  0x50   : > { %4180 = vmatpush3.bf16.msra.mxu0 %v4347_v33  ;;  %v4335_v33 = vld [vmem:[%s6008_s5 + $0x28] sm:$0xff]   ;;  %v3577_v11 = vunpack.c.h.bf16 %v3688_v3  ;;  %v734_v19 = vsel %vm710_vm1, %v701_v15, %v685_v29  ;;  %v837_v24 = vsel %vm813_vm4, %v804_v30, %v788_v58  ;;  %v658_v46 = vmax.f32 %v626_v2, 0.0 }
  0x51   : > { %3981 = vmatprep.subr.bf16.mxu0 %v4351_v8  ;;  %v4949_v39 = vmax.f32 %v625_v44, 0.0  ;;  %v718_v8 = vsel %vm710_vm1, %v685_v29, %v701_v15  ;;  %v686_v32 = vrot.slane %v655_v48, 7  ;;  %v789_v9 = vrot.slane %v655_v48, 1  ;;  %v4338_v29 = vld [vmem:[%s6008_s5 + $0x20] sm:$0xff]   ;;  %v4340_v44 = vld [vmem:[%s6008_s5 + $0x58] sm:$0xff]  }
  0x52   : > { %3848 = vmatpush3.bf16.msra.mxu1 %v4333_v20  ;;  %v821_v20 = vsel %vm813_vm4, %v788_v58, %v804_v30  ;;  %v805_v13 = vrot.slane %v656_v21, 1  ;;  %v627_v58 = vadd.f32 %v4515_v18, %v595_v54  ;;  %v3689_v30 = vld [vmem:[%s4495_s30 + $0x58] sm:$0xff]   ;;  %v806_v27 = vrot.slane %v658_v46, 1 }
  0x53   : > { %3849 = vmatprep.subr.bf16.mxu1 %v4334_v49  ;;  %v702_v49 = vrot.slane %v656_v21, 7  ;;  %v790_v15 = vrot.slane %v4949_v39, 1  ;;  %v628_v3 = vadd.f32 %v4515_v18, %v596_v26  ;;  %v597_v62 = vmul.f32 %v3576_v14, %v4506_v12 }
  0x54   : > { %v4986_v2 = vpack.c.bf16 %v718_v8, %v734_v19  ;;  %v4988_v57 = vpack.c.bf16 %v836_v37, %v820_v31  ;;  %v4990_v36 = vpack.c.bf16 %v656_v21, %v655_v48  ;;  %v4992_v54 = vpack.c.bf16 %v837_v24, %v821_v20  ;;  %v4341_v8 = vld [vmem:[%s6008_s5 + $0x18] sm:$0xff]   ;;  %v4342_v21 = vld [vmem:[%s6008_s5 + $0x50] sm:$0xff]  }
  0x55   : > { %3088 = vmatmul.mubr.msk.bf16.gmra.mxu0 %vm4603_vm3, %v4934_v47  ;;  %4138 = vmatmul.mubr.msk.bf16.gmra.mxu1 %vm4815_vm6, %v4926_v42  ;;  %v735_v26 = vsel %vm710_vm1, %v702_v49, %v686_v32  ;;  %v822_v1 = vsel %vm813_vm4, %v789_v9, %v805_v13  ;;  %v3580_v14 = vunpack.c.l.bf16 %v3689_v30  ;;  %v687_v48 = vrot.slane %v4949_v39, 7 }
  0x56   : > { %1266 = vmatprep.mubr.bf16.mxu0 %v4939_v5  ;;  %4141 = vmatprep.mubr.msk.bf16.mxu1 %vm4815_vm6, %v4936_v0  ;;  %v703_v31 = vrot.slane %v658_v46, 7  ;;  %v629_v37 = vadd.f32 %v4515_v18, %v597_v62  ;;  %v838_v19 = vsel %vm813_vm4, %v805_v13, %v789_v9  ;;  %v5011_v20 = vmax.f32 %v627_v58, 0.0 }
  0x57   : > { %3850 = vmatpush3.bf16.msra.mxu1 %v4335_v33  ;;  %v598_v33 = vmul.f32 %v3577_v11, %v4506_v12  ;;  %v5013_v24 = vmax.f32 %v628_v3, 0.0  ;;  %v839_v9 = vsel %vm813_vm4, %v806_v27, %v790_v15  ;;  %v599_v58 = vmul.f32 %v3580_v14, %v4506_v12 }
  0x58   : > { %3851 = vmatprep.subr.bf16.mxu1 %v4337_v25  ;;  %v719_v25 = vsel %vm710_vm1, %v686_v32, %v702_v49  ;;  %v3581_v32 = vunpack.c.h.bf16 %v3689_v30  ;;  %v823_v49 = vsel %vm813_vm4, %v790_v15, %v806_v27  ;;  %v5025_v13 = vmax.f32 %v629_v37, 0.0  ;;  %v4343_v27 = vld [vmem:[%s6008_s5 + $0x10] sm:$0xff]  }
  0x59   : > { %v630_v11 = vadd.f32 %v4515_v18, %v598_v33  ;;  %v794_v3 = vrot.slane %v4548_v40, 1  ;;  %v5038_v62 = vpack.c.bf16 %v838_v19, %v822_v1  ;;  %v5041_v15 = vpack.c.bf16 %v658_v46, %v4949_v39  ;;  %v4345_v1 = vld [vmem:[%s6008_s5 + $0x48] sm:$0xff]  }
  0x5a   : > { %v600_v30 = vmul.f32 %v3581_v32, %v4506_v12  ;;  %v5046_v33 = vpack.c.bf16 %v839_v9, %v823_v49  ;;  %v720_v14 = vsel %vm710_vm1, %v687_v48, %v703_v31  ;;  %v736_v12 = vsel %vm710_vm1, %v703_v31, %v687_v48  ;;  %v4346_v31 = vld [vmem:[%s6008_s5 + $0x8] sm:$0xff]   ;;  %v4348_v49 = vld [vmem:[%s6008_s5 + $0x40] sm:$0xff]  }
  0x5b   : > { %3852 = vmatpush3.bf16.msra.mxu1 %v4338_v29  ;;  %v5027_v29 = vmax.f32 %v630_v11, 0.0  ;;  %v810_v40 = vrot.slane %v4550_v41, 1  ;;  %v791_v39 = vrot.slane %v5011_v20, 1  ;;  %v807_v46 = vrot.slane %v5013_v24, 1 }
  0x5c   : > { %3853 = vmatprep.subr.bf16.mxu1 %v4340_v44  ;;  %v5036_v44 = vpack.c.bf16 %v719_v25, %v735_v26  ;;  %v792_v25 = vrot.slane %v5025_v13, 1  ;;  %v632_v37 = vadd.f32 %v4515_v18, %v600_v30  ;;  %v5075_v11 = vpack.c.bf16 %v720_v14, %v736_v12  ;;  %v3527_v12 = vld [vmem:[%s426_s22] sm:$0xff]  }
  0x5d   : > { %3091 = vmatmul.mubr.msk.bf16.gmra.mxu0 %vm4603_vm3, %v4986_v2  ;;  %4142 = vmatmul.mubr.msk.bf16.gmra.mxu1 %vm4815_vm6, %v4988_v57  ;;  %v808_v26 = vrot.slane %v5027_v29, 1  ;;  %v843_v41 = vsel %vm813_vm4, %v810_v40, %v794_v3  ;;  %v795_v19 = vrot.slane %v4622_v23, 1  ;;  %v811_v32 = vrot.slane %v4634_v28, 1 }
  0x5e   : > { %1274 = vmatprep.mubr.bf16.mxu0 %v4990_v36  ;;  %4145 = vmatprep.mubr.msk.bf16.mxu1 %vm4815_vm6, %v4992_v54  ;;  %v824_v9 = vsel %vm813_vm4, %v791_v39, %v807_v46  ;;  %v840_v23 = vsel %vm813_vm4, %v807_v46, %v791_v39  ;;  %v796_v28 = vrot.slane %v4681_v60, 1  ;;  %v4349_v39 = vld [vmem:[%s6008_s5] sm:$0xff]   ;;  %v688_v46 = vrot.slane %v5011_v20, 7 }
  0x5f   : > { %3854 = vmatpush3.bf16.msra.mxu1 %v4341_v8  ;;  %v631_v8 = vadd.f32 %v4515_v18, %v599_v58  ;;  %v5079_v18 = vpack.c.bf16 %v5013_v24, %v5011_v20  ;;  %v812_v58 = vrot.slane %v4693_v6, 1  ;;  %v825_v30 = vsel %vm813_vm4, %v792_v25, %v808_v26 }
  0x60   : > { %3855 = vmatprep.subr.bf16.mxu1 %v4342_v21  ;;  %v827_v21 = vsel %vm813_vm4, %v794_v3, %v810_v40  ;;  %v828_v14 = vsel %vm813_vm4, %v795_v19, %v811_v32  ;;  %v841_v60 = vsel %vm813_vm4, %v808_v26, %v792_v25  ;;  %v844_v6 = vsel %vm813_vm4, %v811_v32, %v795_v19  ;;  %v5130_v26 = vld [vmem:[%s6008_s5 + $0x238] sm:$0xff]  }
  0x61   : > { %v5066_v48 = vpack.c.bf16 %v843_v41, %v827_v21  ;;  %v5104_v3 = vmax.f32 %v631_v8, 0.0  ;;  %v829_v40 = vsel %vm813_vm4, %v796_v28, %v812_v58  ;;  %v704_v8 = vrot.slane %v5013_v24, 7 }
  0x62   : > { %v5132_v21 = vpack.c.bf16 %v840_v23, %v824_v9  ;;  %v984_v41 = vrot.slane %v4737_v52, 1  ;;  %v3528_v19 = vunpack.c.l.bf16 %v3527_v12  ;;  %v5136_v20 = vpack.c.bf16 %v841_v60, %v825_v30  ;;  %v5147_v52 = vld [vmem:[%s6006_s3] ss:$0 sm:$0xff] }
  0x63   : > { %3856 = vmatpush3.bf16.msra.mxu1 %v4343_v27  ;;  %v5106_v27 = vmax.f32 %v632_v37, 0.0  ;;  %v5123_v37 = vpack.c.bf16 %v844_v6, %v828_v14  ;;  %v793_v24 = vrot.slane %v5104_v3, 1  ;;  %v721_v30 = vsel %vm710_vm1, %v688_v46, %v704_v8  ;;  %v5175_v6 = vld [vmem:[%s6007_s4] ss:$0 sm:$0xff] }
  0x64   : > { %3857 = vmatprep.subr.bf16.mxu1 %v4345_v1  ;;  %v845_v1 = vsel %vm813_vm4, %v812_v58, %v796_v28  ;;  %v3529_v28 = vunpack.c.h.bf16 %v3527_v12  ;;  %v737_v14 = vsel %vm710_vm1, %v704_v8, %v688_v46  ;;  %v5185_v46 = vpack.c.bf16 %v5027_v29, %v5025_v13 }
  0x65   : > { %3094 = vmatmul.mubr.msk.bf16.gmra.mxu0 %vm4603_vm3, %v5036_v44  ;;  %4146 = vmatmul.mubr.msk.bf16.gmra.mxu1 %vm4815_vm6, %v5038_v62  ;;  %v5125_v25 = vpack.c.bf16 %v845_v1, %v829_v40  ;;  %v809_v32 = vrot.slane %v5106_v27, 1  ;;  %v689_v8 = vrot.slane %v5025_v13, 7 }
  0x66   : > { %1282 = vmatprep.mubr.bf16.mxu0 %v5041_v15  ;;  %4149 = vmatprep.mubr.msk.bf16.mxu1 %vm4815_vm6, %v5046_v33  ;;  %v480_v23 = vmul.f32 %v5147_v52, %v3529_v28 }
  0x67   : > { %3858 = vmatpush3.bf16.msra.mxu1 %v4346_v31  ;;  %v985_v31 = vrot.slane %v4750_v63, 1  ;;  %v479_v63 = vmul.f32 %v5147_v52, %v3528_v19  ;;  %v826_v12 = vsel %vm813_vm4, %v793_v24, %v809_v32  ;;  %v842_v60 = vsel %vm813_vm4, %v809_v32, %v793_v24 }
  0x68   : > { %3859 = vmatprep.subr.bf16.mxu1 %v4348_v49  ;;  %v488_v1 = vadd.f32 %v5175_v6, %v480_v23  ;;  %v706_v23 = vrot.slane %v5106_v27, 7 }
  0x69   : > { %v986_v49 = vsel %vm813_vm4, %v984_v41, %v985_v31  ;;  %v987_v58 = vsel %vm813_vm4, %v985_v31, %v984_v41  ;;  %v487_v40 = vadd.f32 %v5175_v6, %v479_v63  ;;  %v5181_v41 = vpack.c.bf16 %v842_v60, %v826_v12 }
  0x6a   : > { %v5150_v9 = vpack.c.bf16 %v987_v58, %v986_v49  ;;  %v705_v31 = vrot.slane %v5027_v29, 7  ;;  %v490_v24 = vmax.f32 %v488_v1, 0.0  ;;  %v5207_v58 = vpack.c.bf16 %v5106_v27, %v5104_v3 }
  0x6b   : > { %3860 = vmatpush3.bf16.msra.mxu1 %v4349_v39  ;;  %v5179_v39 = vpack.c.bf16 %v721_v30, %v737_v14  ;;  %v489_v19 = vmax.f32 %v487_v40, 0.0  ;;  %v690_v63 = vrot.slane %v5104_v3, 7 }
  0x6c   : > { %4213 = vmatprep.subr.bf16.mxu1 %v5130_v26  ;;  %v722_v13 = vsel %vm710_vm1, %v689_v8, %v705_v31  ;;  %v738_v29 = vsel %vm710_vm1, %v705_v31, %v689_v8  ;;  %v496_v28 = vmul.f32 0.0, %v490_v24 }
  0x6d   : > { %3097 = vmatmul.mubr.msk.bf16.gmra.mxu0 %vm4603_vm3, %v5075_v11  ;;  %4150 = vmatmul.mubr.msk.bf16.gmra.mxu1 %vm4815_vm6, %v5132_v21  ;;  %v495_v32 = vmul.f32 0.0, %v489_v19  ;;  %v5203_v49 = vpack.c.bf16 %v722_v13, %v738_v29  ;;  %v723_v3 = vsel %vm710_vm1, %v690_v63, %v706_v23  ;;  %v739_v27 = vsel %vm710_vm1, %v706_v23, %v690_v63  ;;  %v4355_v63 = vld [vmem:[%s6008_s5 + $0x230] sm:$0xff]  }
  0x6e   : > { %1290 = vmatprep.mubr.bf16.mxu0 %v5079_v18  ;;  %4153 = vmatprep.mubr.msk.bf16.mxu1 %vm4815_vm6, %v5136_v20  ;;  %v797_v14 = vrot.slane %v496_v28, 1  ;;  %v5229_v40 = vpack.c.bf16 %v723_v3, %v739_v27  ;;  %v694_v8 = vrot.slane %v496_v28, 7  ;;  %v4354_v23 = vld [vmem:[%s6008_s5 + $0x1b0] sm:$0xff]   ;;  %v4359_v3 = vld [vmem:[%s6008_s5 + $0x1a0] sm:$0xff]   ;;  %v4370_v27 = vld [vmem:[%s6008_s5 + $0x218] sm:$0xff]  }
  0x6f   : > { %v781_v30 = vrot.slane %v495_v32, 1  ;;  %v678_v1 = vrot.slane %v495_v32, 7  ;;  %v883_v31 = vpack.c.bf16 %v496_v28, %v495_v32  ;;  %v4352_v32 = vld [vmem:[%s6008_s5 + $0x1b8] sm:$0xff]   ;;  %v4353_v28 = vld [vmem:[%s6008_s5 + $0x1f0] sm:$0xff]  }
  0x71   : > { %v814_v12 = vsel %vm813_vm4, %v781_v30, %v797_v14  ;;  %v830_v60 = vsel %vm813_vm4, %v797_v14, %v781_v30  ;;  %v711_v24 = vsel %vm710_vm1, %v678_v1, %v694_v8  ;;  %v727_v13 = vsel %vm710_vm1, %v694_v8, %v678_v1  ;;  %v4356_v30 = vld [vmem:[%s6008_s5 + $0x1e8] sm:$0xff]   ;;  %v4365_v14 = vld [vmem:[%s6008_s5 + $0x220] sm:$0xff]   ;;  %v4371_v1 = vld [vmem:[%s6008_s5 + $0x210] sm:$0xff]  }
  0x72   : > { %v3240_v19 = vpack.c.bf16 %v830_v60, %v814_v12  ;;  %v3192_v29 = vpack.c.bf16 %v711_v24, %v727_v13  ;;  %v4362_v12 = vld [vmem:[%s6008_s5 + $0x198] sm:$0xff]   ;;  %v4363_v60 = vld [vmem:[%s6008_s5 + $0x1d0] sm:$0xff]   ;;  %v4367_v24 = vld [vmem:[%s6008_s5 + $0x188] sm:$0xff]  }
  0x73   : > { %v4364_v8 = vld [vmem:[%s6008_s5 + $0x190] sm:$0xff]   ;;  %v4368_v13 = vld [vmem:[%s6008_s5 + $0x1c0] sm:$0xff]  }
  0x75   : > { %3100 = vmatmul.mubr.msk.bf16.gmra.mxu0 %vm4603_vm3, %v5179_v39  ;;  %4154 = vmatmul.mubr.msk.bf16.gmra.mxu1 %vm4815_vm6, %v5181_v41 }
  0x76   : > { %1298 = vmatprep.mubr.bf16.mxu0 %v5185_v46  ;;  %4157 = vmatprep.mubr.msk.bf16.mxu1 %vm4815_vm6, %v5066_v48 }
  0x7d   : > { %3103 = vmatmul.mubr.msk.bf16.gmra.mxu0 %vm4603_vm3, %v5203_v49  ;;  %4158 = vmatmul.mubr.msk.bf16.gmra.mxu1 %vm4815_vm6, %v5123_v37 }
  0x7e   : > { %1306 = vmatprep.mubr.bf16.mxu0 %v5207_v58  ;;  %4161 = vmatprep.mubr.msk.bf16.mxu1 %vm4815_vm6, %v5125_v25 }
  0x85   : > { %3106 = vmatmul.mubr.msk.bf16.gmra.mxu0 %vm4603_vm3, %v5229_v40  ;;  %4162 = vmatmul.mubr.msk.bf16.gmra.mxu1 %vm4815_vm6, %v5150_v9 }
  0x86   : > { %1684 = vmatprep.mubr.bf16.mxu1 %v883_v31  ;;  %4181 = vmatprep.mubr.msk.bf16.mxu0 %vm4815_vm6, %v3240_v19  ;;  %v4366_v31 = vld [vmem:[%s6008_s5 + $0x1c8] sm:$0xff]  }
  0x87   : > { %v4372_v19 = vld [vmem:[%s6008_s5 + $0x208] sm:$0xff]  }
  0x8d   : > { %3193 = vmatmul.mubr.msk.bf16.vlgmr.msra.gmra.mxu1 %vm4603_vm3, %v3192_v29  ;;  %4182 = vmatmul.mubr.msk.bf16.vlgmr.msra.gmra.mxu0 %vm4815_vm6, %v4824_v61  ;;  %v4360_v61 = vld [vmem:[%s6008_s5 + $0x228] sm:$0xff]   ;;  %v4373_v29 = vld [vmem:[%s6008_s5 + $0x200] sm:$0xff]  }
  0x8e   : > { %4214 = vmatpush3.bf16.msra.mxu1 %v5130_v26  ;;  %3982 = vmatpush3.bf16.msra.mxu0 %v4352_v32  ;;  %v4358_v26 = vld [vmem:[%s6008_s5 + $0x1e0] sm:$0xff]  }
  0x8f   : > { %1692 = vmatprep.mubr.bf16.mxu1 %v4562_v50  ;;  %4185 = vmatprep.mubr.msk.bf16.mxu0 %vm4815_vm6, %v4877_v56  ;;  %v4357_v50 = vld [vmem:[%s6008_s5 + $0x1a8] sm:$0xff]   ;;  %v4369_v32 = vld [vmem:[%s6008_s5 + $0x180] sm:$0xff]  }
  0x90   : > { %3983 = vmatprep.subr.bf16.mxu0 %v4353_v28  ;;  %4215 = vmatprep.subr.bf16.mxu1 %v4355_v63 }
  0x92   : > { %3984 = vmatpush3.bf16.msra.mxu0 %v4354_v23  ;;  %4216 = vmatpush3.bf16.msra.mxu1 %v4355_v63 }
  0x93   : > { %3985 = vmatprep.subr.bf16.mxu0 %v4356_v30  ;;  %4217 = vmatprep.subr.bf16.mxu1 %v4360_v61 }
  0x95   : > { %3196 = vmatmul.mubr.msk.bf16.gmra.mxu1 %vm4603_vm3, %v4576_v59  ;;  %4186 = vmatmul.mubr.msk.bf16.gmra.mxu0 %vm4815_vm6, %v4888_v16  ;;  %v4361_v59 = vld [vmem:[%s6008_s5 + $0x1d8] sm:$0xff]  }
  0x96   : > { %1700 = vmatprep.mubr.bf16.mxu1 %v4620_v22  ;;  %4189 = vmatprep.mubr.msk.bf16.mxu0 %vm4815_vm6, %v4926_v42 }
  0x97   : > { %3986 = vmatpush3.bf16.msra.mxu0 %v4357_v50  ;;  %4218 = vmatpush3.bf16.msra.mxu1 %v4360_v61  ;;  %v6034_v61 = vld [vmem:[#allocation2_spill] sm:$0xff] }
  0x98   : > { %3987 = vmatprep.subr.bf16.mxu0 %v4358_v26  ;;  %4219 = vmatprep.subr.bf16.mxu1 %v4365_v14 }
  0x9b   : > { %3988 = vmatpush3.bf16.msra.mxu0 %v4359_v3  ;;  %4220 = vmatpush3.bf16.msra.mxu1 %v4365_v14 }
  0x9c   : > { %3989 = vmatprep.subr.bf16.mxu0 %v4361_v59  ;;  %4221 = vmatprep.subr.bf16.mxu1 %v4370_v27 }
  0x9d   : > { %3199 = vmatmul.mubr.msk.bf16.gmra.mxu1 %vm4603_vm3, %v4663_v45  ;;  %4190 = vmatmul.mubr.msk.bf16.gmra.mxu0 %vm4815_vm6, %v4936_v0 }
  0x9e   : > { %1708 = vmatprep.mubr.bf16.mxu1 %v4658_v43  ;;  %4193 = vmatprep.mubr.msk.bf16.mxu0 %vm4815_vm6, %v4988_v57 }
  0x9f   : > { %3990 = vmatpush3.bf16.msra.mxu0 %v4362_v12  ;;  %4222 = vmatpush3.bf16.msra.mxu1 %v4370_v27 }
  0xa0   : > { %3991 = vmatprep.subr.bf16.mxu0 %v4363_v60  ;;  %4223 = vmatprep.subr.bf16.mxu1 %v4371_v1 }
  0xa3   : > { %3992 = vmatpush3.bf16.msra.mxu0 %v4364_v8  ;;  %4224 = vmatpush3.bf16.msra.mxu1 %v4371_v1 }
  0xa4   : > { %3993 = vmatprep.subr.bf16.mxu0 %v4366_v31  ;;  %4225 = vmatprep.subr.bf16.mxu1 %v4372_v19 }
  0xa5   : > { %3202 = vmatmul.mubr.msk.bf16.gmra.mxu1 %vm4603_vm3, %v4695_v7  ;;  %4194 = vmatmul.mubr.msk.bf16.gmra.mxu0 %vm4815_vm6, %v4992_v54 }
  0xa6   : > { %1716 = vmatprep.mubr.bf16.mxu1 %v4742_v55  ;;  %4197 = vmatprep.mubr.msk.bf16.mxu0 %vm4815_vm6, %v5038_v62 }
  0xa7   : > { %3994 = vmatpush3.bf16.msra.mxu0 %v4367_v24  ;;  %4226 = vmatpush3.bf16.msra.mxu1 %v4372_v19  ;;  %v6036_v24 = vld [vmem:[#allocation4_spill] sm:$0xff] }
  0xa8   : > { %3995 = vmatprep.subr.bf16.mxu0 %v4368_v13  ;;  %4227 = vmatprep.subr.bf16.mxu1 %v4373_v29 }
  0xab   : > { %3996 = vmatpush3.bf16.msra.mxu0 %v4369_v32  ;;  %4228 = vmatpush3.bf16.msra.mxu1 %v4373_v29 }
  0xad   : > { %3205 = vmatmul.mubr.msk.bf16.gmra.mxu1 %vm4603_vm3, %v4794_v34  ;;  %4198 = vmatmul.mubr.msk.bf16.gmra.mxu0 %vm4815_vm6, %v5046_v33 }
  0xae   : > { %1724 = vmatprep.mubr.bf16.mxu1 %v4798_v35  ;;  %4201 = vmatprep.mubr.msk.bf16.mxu0 %vm4815_vm6, %v5132_v21 }
  0xb5   : > { %3208 = vmatmul.mubr.msk.bf16.gmra.mxu1 %vm4603_vm3, %v4875_v53  ;;  %4202 = vmatmul.mubr.msk.bf16.gmra.mxu0 %vm4815_vm6, %v5136_v20 }
  0xb6   : > { %1732 = vmatprep.mubr.bf16.mxu1 %v4886_v4  ;;  %4205 = vmatprep.mubr.msk.bf16.mxu0 %vm4815_vm6, %v5181_v41 }
  0xbd   : > { %3211 = vmatmul.mubr.msk.bf16.gmra.mxu1 %vm4603_vm3, %v4934_v47  ;;  %4206 = vmatmul.mubr.msk.bf16.gmra.mxu0 %vm4815_vm6, %v5066_v48 }
  0xbe   : > { %1740 = vmatprep.mubr.bf16.mxu1 %v4939_v5  ;;  %4209 = vmatprep.mubr.msk.bf16.mxu0 %vm4815_vm6, %v5123_v37 }
  0xc5   : > { %3214 = vmatmul.mubr.msk.bf16.gmra.mxu1 %vm4603_vm3, %v4986_v2  ;;  %4210 = vmatmul.mubr.msk.bf16.gmra.mxu0 %vm4815_vm6, %v5125_v25 }
  0xc6   : > { %1748 = vmatprep.mubr.bf16.mxu1 %v4990_v36  ;;  %2214 = vmatprep.mubr.bf16.mxu0 %v4620_v22 }
  0xcd   : > { %3217 = vmatmul.mubr.msk.bf16.gmra.mxu1 %vm4603_vm3, %v5036_v44  ;;  %3361 = vmatmul.mubr.msk.bf16.vlgmr.msra.gmra.mxu0 %vm4603_vm3, %v4663_v45 }
  0xce   : > { %1756 = vmatprep.mubr.bf16.mxu1 %v5041_v15  ;;  %2222 = vmatprep.mubr.bf16.mxu0 %v4658_v43 }
  0xd5   : > { %3220 = vmatmul.mubr.msk.bf16.gmra.mxu1 %vm4603_vm3, %v5075_v11  ;;  %3364 = vmatmul.mubr.msk.bf16.gmra.mxu0 %vm4603_vm3, %v4695_v7 }
  0xd6   : > { %1764 = vmatprep.mubr.bf16.mxu1 %v5079_v18  ;;  %2230 = vmatprep.mubr.bf16.mxu0 %v4742_v55 }
  0xdd   : > { %3223 = vmatmul.mubr.msk.bf16.gmra.mxu1 %vm4603_vm3, %v5179_v39  ;;  %3367 = vmatmul.mubr.msk.bf16.gmra.mxu0 %vm4603_vm3, %v4794_v34 }
  0xde   : > { %1772 = vmatprep.mubr.bf16.mxu1 %v5185_v46  ;;  %2238 = vmatprep.mubr.bf16.mxu0 %v4798_v35 }
  0xe5   : > { %3226 = vmatmul.mubr.msk.bf16.gmra.mxu1 %vm4603_vm3, %v5203_v49  ;;  %3370 = vmatmul.mubr.msk.bf16.gmra.mxu0 %vm4603_vm3, %v4875_v53 }
  0xe6   : > { %1780 = vmatprep.mubr.bf16.mxu1 %v5207_v58  ;;  %2246 = vmatprep.mubr.bf16.mxu0 %v4886_v4 }
  0xed   : > { %v3725_v22 = vpop.f32.mrf.mxu0  ;;  %v3797_v43 = vpop.f32.mrf.mxu1  ;;  %3229 = vmatmul.mubr.msk.bf16.gmra.mxu1 %vm4603_vm3, %v5229_v40  ;;  %3373 = vmatmul.mubr.msk.bf16.gmra.mxu0 %vm4603_vm3, %v4934_v47 }
  0xee   : > { %1788 = vmatprep.mubr.bf16.mxu1 %v4566_v51  ;;  %2254 = vmatprep.mubr.bf16.mxu0 %v4939_v5  ;;  %v6035_v5 = vld [vmem:[#allocation3_spill] sm:$0xff] }
  0xef   : > { %v3726_v45 = vpop.f32.mrf.mxu0  ;;  %v3798_v7 = vpop.f32.mrf.mxu1 }
  0xf0   : > { %v5427_v55 = vadd.f32 %v3726_v45, %v3725_v22  ;;  %v5429_v34 = vadd.f32 %v3798_v7, %v3797_v43 }
  0xf1   : > { %v3728_v35 = vpop.f32.mrf.mxu0  ;;  %v3800_v53 = vpop.f32.mrf.mxu1 }
  0xf3   : > { %v3729_v4 = vpop.f32.mrf.mxu0  ;;  %v3801_v28 = vpop.f32.mrf.mxu1 }
  0xf4   : > { %v5431_v63 = vadd.f32 %v3729_v4, %v3728_v35  ;;  %v5433_v23 = vadd.f32 %v3801_v28, %v3800_v53 }
  0xf5   : > { %v3731_v30 = vpop.f32.mrf.mxu0  ;;  %v3803_v47 = vpop.f32.mrf.mxu1  ;;  %3232 = vmatmul.mubr.msk.bf16.gmra.mxu1 %vm4603_vm3, %v6034_v61  ;;  %3376 = vmatmul.mubr.msk.bf16.gmra.mxu0 %vm4603_vm3, %v4986_v2 }
  0xf6   : > { %1796 = vmatprep.mubr.bf16.mxu1 %v6035_v5  ;;  %2262 = vmatprep.mubr.bf16.mxu0 %v4990_v36  ;;  %v6037_v36 = vld [vmem:[#allocation5_spill] sm:$0xff] }
  0xf7   : > { %v3732_v50 = vpop.f32.mrf.mxu0  ;;  %v3804_v26 = vpop.f32.mrf.mxu1 }
  0xf8   : > { %v3733_v14 = vadd.f32 %v3732_v50, %v3731_v30  ;;  %v5443_v3 = vadd.f32 %v3804_v26, %v3803_v47  ;;  %v6038_v30 = vld [vmem:[#allocation6_spill] sm:$0xff] }
  0xf9   : > { %v3734_v59 = vpop.f32.mrf.mxu0  ;;  %v3806_v27 = vpop.f32.mrf.mxu1 }
  0xfb   : > { %v3735_v12 = vpop.f32.mrf.mxu0  ;;  %v3807_v60 = vpop.f32.mrf.mxu1 }
  0xfc   : > { %v3736_v1 = vadd.f32 %v3735_v12, %v3734_v59  ;;  %v5445_v8 = vadd.f32 %v3807_v60, %v3806_v27 }
  0xfd   : > { %v3737_v31 = vpop.f32.mrf.mxu0  ;;  %v3809_v19 = vpop.f32.mrf.mxu1  ;;  %3235 = vmatmul.mubr.msk.bf16.gmra.mxu1 %vm4603_vm3, %v6036_v24  ;;  %3379 = vmatmul.mubr.msk.bf16.gmra.mxu0 %vm4603_vm3, %v5036_v44 }
  0xfe   : > { %1804 = vmatprep.mubr.bf16.mxu1 %v6037_v36  ;;  %2270 = vmatprep.mubr.bf16.mxu0 %v5041_v15 }
  0xff   : > { %v3738_v2 = vpop.f32.mrf.mxu0  ;;  %v3810_v13 = vpop.f32.mrf.mxu1 }
 0x100   : > { %v3739_v29 = vadd.f32 %v3738_v2, %v3737_v31  ;;  %v5455_v32 = vadd.f32 %v3810_v13, %v3809_v19 }
 0x101   : > { %v3740_v22 = vpop.f32.mrf.mxu0  ;;  %v3812_v43 = vpop.f32.mrf.mxu1 }
 0x103   : > { %v3741_v45 = vpop.f32.mrf.mxu0  ;;  %v3813_v7 = vpop.f32.mrf.mxu1 }
 0x104   : > { %v3742_v35 = vadd.f32 %v3741_v45, %v3740_v22  ;;  %v5457_v53 = vadd.f32 %v3813_v7, %v3812_v43 }
 0x105   : > { %v3743_v4 = vpop.f32.mrf.mxu0  ;;  %v3815_v28 = vpop.f32.mrf.mxu1  ;;  %3238 = vmatmul.mubr.msk.bf16.gmra.mxu1 %vm4603_vm3, %v6038_v30  ;;  %3382 = vmatmul.mubr.msk.bf16.gmra.mxu0 %vm4603_vm3, %v5075_v11 }
 0x106   : > { %2278 = vmatprep.mubr.bf16.mxu0 %v5079_v18  ;;  %4229 = vmatprep.mubr.msk.bf16.mxu1 %vm4815_vm6, %v4877_v56 }
 0x107   : > { %v3744_v44 = vpop.f32.mrf.mxu0  ;;  %v3816_v15 = vpop.f32.mrf.mxu1 }
 0x108   : > { %v3745_v47 = vadd.f32 %v3744_v44, %v3743_v4  ;;  %v5469_v50 = vadd.f32 %v3816_v15, %v3815_v28 }
 0x109   : > { %v3746_v26 = vpop.f32.mrf.mxu0  ;;  %v3818_v59 = vpop.f32.mrf.mxu1 }
 0x10b   : > { %v3747_v27 = vpop.f32.mrf.mxu0  ;;  %v3819_v12 = vpop.f32.mrf.mxu1 }
 0x10c   : > { %v3748_v60 = vadd.f32 %v3747_v27, %v3746_v26  ;;  %v5471_v31 = vadd.f32 %v3819_v12, %v3818_v59 }
 0x10d   : > { %v3749_v19 = vpop.f32.mrf.mxu0  ;;  %v4135_v11 = vpop.f32.mrf.mxu1  ;;  %3385 = vmatmul.mubr.msk.bf16.gmra.mxu0 %vm4603_vm3, %v5179_v39  ;;  %4230 = vmatmul.mubr.msk.bf16.vlgmr.msra.gmra.mxu1 %vm4815_vm6, %v4888_v16 }
 0x10e   : > { %v5479_v56 = vadd.f32 %v4135_v11, %v3733_v14  ;;  %2286 = vmatprep.mubr.bf16.mxu0 %v5185_v46  ;;  %4233 = vmatprep.mubr.msk.bf16.mxu1 %vm4815_vm6, %v4926_v42 }
 0x10f   : > { %v3750_v18 = vpop.f32.mrf.mxu0  ;;  %v1381_v2 = vpop.f32.mrf.mxu1 }
 0x110   : > { %v3751_v13 = vadd.f32 %v3750_v18, %v3749_v19  ;;  %v5486_v22 = vadd.f32 %v5427_v55, %v1381_v2  ;;  %v3531_v18 = vld [vmem:[%s443_s8] sm:$0xff]  }
 0x111   : > { %v3752_v43 = vpop.f32.mrf.mxu0  ;;  %v4136_v39 = vpop.f32.mrf.mxu1 }
 0x112   : > { %v5488_v45 = vadd.f32 %v4136_v39, %v3736_v1 }
 0x113   : > { %v3753_v7 = vpop.f32.mrf.mxu0  ;;  %v1384_v16 = vpop.f32.mrf.mxu1 }
 0x114   : > { %v3754_v14 = vadd.f32 %v3753_v7, %v3752_v43  ;;  %v5491_v4 = vadd.f32 %v5431_v63, %v1384_v16  ;;  %v3533_v16 = vunpack.c.h.bf16 %v3531_v18 }
 0x115   : > { %v3755_v46 = vpop.f32.mrf.mxu0  ;;  %v4139_v28 = vpop.f32.mrf.mxu1  ;;  %3388 = vmatmul.mubr.msk.bf16.gmra.mxu0 %vm4603_vm3, %v5203_v49  ;;  %4234 = vmatmul.mubr.msk.bf16.gmra.mxu1 %vm4815_vm6, %v4936_v0 }
 0x116   : > { %v5499_v42 = vadd.f32 %v4139_v28, %v3745_v47  ;;  %2294 = vmatprep.mubr.bf16.mxu0 %v5207_v58  ;;  %4237 = vmatprep.mubr.msk.bf16.mxu1 %vm4815_vm6, %v4988_v57 }
 0x117   : > { %v3756_v55 = vpop.f32.mrf.mxu0  ;;  %v1397_v63 = vpop.f32.mrf.mxu1 }
 0x118   : > { %v3757_v1 = vadd.f32 %v3756_v55, %v3755_v46  ;;  %v5505_v44 = vadd.f32 %v3739_v29, %v1397_v63 }
 0x119   : > { %v3758_v15 = vpop.f32.mrf.mxu0  ;;  %v4140_v49 = vpop.f32.mrf.mxu1 }
 0x11a   : > { %v5507_v26 = vadd.f32 %v4140_v49, %v3748_v60 }
 0x11b   : > { %v3759_v59 = vpop.f32.mrf.mxu0  ;;  %v1400_v27 = vpop.f32.mrf.mxu1 }
 0x11c   : > { %v3760_v0 = vadd.f32 %v3759_v59, %v3758_v15  ;;  %v5509_v47 = vadd.f32 %v3742_v35, %v1400_v27  ;;  %v502_v15 = vmul.f32 %v5147_v52, %v3533_v16 }
 0x11d   : > { %v3761_v58 = vpop.f32.mrf.mxu0  ;;  %v4143_v12 = vpop.f32.mrf.mxu1  ;;  %3391 = vmatmul.mubr.msk.bf16.gmra.mxu0 %vm4603_vm3, %v5229_v40  ;;  %4238 = vmatmul.mubr.msk.bf16.gmra.mxu1 %vm4815_vm6, %v4992_v54 }
 0x11e   : > { %v5518_v57 = vadd.f32 %v4143_v12, %v3757_v1  ;;  %2302 = vmatprep.mubr.bf16.mxu0 %v4566_v51  ;;  %4241 = vmatprep.mubr.msk.bf16.mxu1 %vm4815_vm6, %v5038_v62 }
 0x11f   : > { %v3762_v29 = vpop.f32.mrf.mxu0  ;;  %v1413_v35 = vpop.f32.mrf.mxu1 }
 0x120   : > { %v3763_v60 = vadd.f32 %v3762_v29, %v3761_v58  ;;  %v5527_v40 = vadd.f32 %v3751_v13, %v1413_v35  ;;  %v3532_v13 = vunpack.c.l.bf16 %v3531_v18 }
 0x121   : > { %v3764_v19 = vpop.f32.mrf.mxu0  ;;  %v4144_v11 = vpop.f32.mrf.mxu1 }
 0x122   : > { %v5529_v54 = vadd.f32 %v4144_v11, %v3760_v0 }
 0x123   : > { %v3765_v2 = vpop.f32.mrf.mxu0  ;;  %v1416_v51 = vpop.f32.mrf.mxu1 }
 0x124   : > { %v3766_v43 = vadd.f32 %v3765_v2, %v3764_v19  ;;  %v5531_v39 = vadd.f32 %v3754_v14, %v1416_v51 }
 0x125   : > { %v3767_v62 = vpop.f32.mrf.mxu0  ;;  %v4147_v7 = vpop.f32.mrf.mxu1  ;;  %3394 = vmatmul.mubr.msk.bf16.gmra.mxu0 %vm4603_vm3, %v6034_v61  ;;  %4242 = vmatmul.mubr.msk.bf16.gmra.mxu1 %vm4815_vm6, %v5046_v33  ;;  %v501_v61 = vmul.f32 %v5147_v52, %v3532_v13  ;;  %v504_v52 = vadd.f32 %v5175_v6, %v502_v15  ;;  %v6039_v13 = vld [vmem:[#allocation7_spill] sm:$0xff] }
 0x126   : > { %2310 = vmatprep.mubr.bf16.mxu0 %v6035_v5  ;;  %4245 = vmatprep.mubr.msk.bf16.mxu1 %vm4815_vm6, %v5132_v21 }
 0x127   : > { %v3768_v14 = vpop.f32.mrf.mxu0  ;;  %v1429_v46 = vpop.f32.mrf.mxu1  ;;  %v503_v58 = vadd.f32 %v5175_v6, %v501_v61  ;;  %v506_v18 = vmax.f32 %v504_v52, 0.0 }
 0x128   : > { %v3769_v28 = vadd.f32 %v3768_v14, %v3767_v62  ;;  %v5543_v55 = vadd.f32 %v3763_v60, %v1429_v46 }
 0x129   : > { %v3770_v63 = vpop.f32.mrf.mxu0  ;;  %v4148_v1 = vpop.f32.mrf.mxu1  ;;  %v505_v11 = vmax.f32 %v503_v58, 0.0 }
 0x12a   : > { %v5547_v33 = vadd.f32 %v4147_v7, %v3769_v28 }
 0x12b   : > { %v3771_v49 = vpop.f32.mrf.mxu0  ;;  %v1432_v59 = vpop.f32.mrf.mxu1 }
 0x12c   : > { %v3772_v5 = vadd.f32 %v3771_v49, %v3770_v63  ;;  %v5549_v27 = vadd.f32 %v3766_v43, %v1432_v59 }
 0x12d   : > { %v3773_v0 = vpop.f32.mrf.mxu0  ;;  %v4151_v21 = vpop.f32.mrf.mxu1  ;;  %3397 = vmatmul.mubr.msk.bf16.gmra.mxu0 %vm4603_vm3, %v6036_v24  ;;  %4246 = vmatmul.mubr.msk.bf16.gmra.mxu1 %vm4815_vm6, %v5136_v20 }
 0x12e   : > { %v5559_v12 = vadd.f32 %v4148_v1, %v3772_v5  ;;  %2318 = vmatprep.mubr.bf16.mxu0 %v6037_v36  ;;  %4249 = vmatprep.mubr.msk.bf16.mxu1 %vm4815_vm6, %v5181_v41  ;;  %v511_v41 = vmul.f32 0.0, %v505_v11  ;;  %v512_v36 = vmul.f32 0.0, %v506_v18 }
 0x12f   : > { %v3774_v29 = vpop.f32.mrf.mxu0  ;;  %v1445_v35 = vpop.f32.mrf.mxu1 }
 0x130   : > { %v3775_v60 = vadd.f32 %v3774_v29, %v3773_v0  ;;  %v1975_v1 = vrot.slane %v512_v36, 7  ;;  %v1980_v61 = vrot.slane %v511_v41, 1  ;;  %v1981_v15 = vrot.slane %v512_v36, 1  ;;  %v6040_v29 = vld [vmem:[#allocation8_spill] sm:$0xff] }
 0x131   : > { %v3776_v24 = vpop.f32.mrf.mxu0  ;;  %v4152_v19 = vpop.f32.mrf.mxu1  ;;  %v1987_v49 = vpack.c.bf16 %v512_v36, %v511_v41 }
 0x132   : > { %v5565_v20 = vadd.f32 %v3775_v60, %v1445_v35  ;;  %v1982_v35 = vsel %vm813_vm4, %v1980_v61, %v1981_v15 }
 0x133   : > { %v3777_v2 = vpop.f32.mrf.mxu0  ;;  %v1448_v51 = vpop.f32.mrf.mxu1 }
 0x134   : > { %v3778_v6 = vadd.f32 %v3777_v2, %v3776_v24 }
 0x135   : > { %v3779_v43 = vpop.f32.mrf.mxu0  ;;  %v4155_v62 = vpop.f32.mrf.mxu1  ;;  %3400 = vmatmul.mubr.msk.bf16.gmra.mxu0 %vm4603_vm3, %v6038_v30  ;;  %4250 = vmatmul.mubr.msk.bf16.gmra.mxu1 %vm4815_vm6, %v5066_v48  ;;  %v1974_v30 = vrot.slane %v511_v41, 7 }
 0x136   : > { %v5573_v7 = vadd.f32 %v3778_v6, %v1448_v51  ;;  %2326 = vmatprep.mubr.bf16.mxu0 %v6039_v13  ;;  %4253 = vmatprep.mubr.msk.bf16.mxu1 %vm4815_vm6, %v5123_v37 }
 0x137   : > { %v3780_v16 = vpop.f32.mrf.mxu0  ;;  %v1461_v14 = vpop.f32.mrf.mxu1  ;;  %v1976_v37 = vsel %vm710_vm1, %v1974_v30, %v1975_v1 }
 0x138   : > { %v3781_v46 = vadd.f32 %v3780_v16, %v3779_v43 }
 0x139   : > { %v3782_v28 = vpop.f32.mrf.mxu0  ;;  %v4156_v63 = vpop.f32.mrf.mxu1 }
 0x13a   : > { %v5579_v48 = vadd.f32 %v4151_v21, %v3781_v46  ;;  %v1977_v21 = vsel %vm710_vm1, %v1975_v1, %v1974_v30 }
 0x13b   : > { %v3783_v59 = vpop.f32.mrf.mxu0  ;;  %v1464_v5 = vpop.f32.mrf.mxu1  ;;  %v3405_v43 = vpack.c.bf16 %v1976_v37, %v1977_v21 }
 0x13c   : > { %v3784_v0 = vadd.f32 %v3783_v59, %v3782_v28 }
 0x13d   : > { %v3785_v58 = vpop.f32.mrf.mxu0  ;;  %v4159_v52 = vpop.f32.mrf.mxu1  ;;  %3403 = vmatmul.mubr.msk.bf16.gmra.mxu0 %vm4603_vm3, %v6040_v29  ;;  %4254 = vmatmul.mubr.msk.bf16.gmra.mxu1 %vm4815_vm6, %v5125_v25  ;;  %v1983_v25 = vsel %vm813_vm4, %v1981_v15, %v1980_v61 }
 0x13e   : > { %v5593_v60 = vadd.f32 %v4152_v19, %v3784_v0  ;;  %v5596_v24 = vadd.f32 %v4159_v52, %v5443_v3  ;;  %2334 = vmatprep.mubr.bf16.mxu0 %v1987_v49  ;;  %4257 = vmatprep.mubr.msk.bf16.mxu1 %vm4815_vm6, %v5150_v9  ;;  %v3453_v41 = vpack.c.bf16 %v1983_v25, %v1982_v35 }
 0x13f   : > { %v3786_v11 = vpop.f32.mrf.mxu0  ;;  %v1477_v18 = vpop.f32.mrf.mxu1 }
 0x140   : > { %v3787_v2 = vadd.f32 %v3786_v11, %v3785_v58  ;;  %v5604_v51 = vadd.f32 %v5429_v34, %v1477_v18 }
 0x141   : > { %v3788_v6 = vpop.f32.mrf.mxu0  ;;  %v4160_v19 = vpop.f32.mrf.mxu1 }
 0x142   : > { %v5606_v3 = vadd.f32 %v3787_v2, %v1461_v14  ;;  %v5609_v36 = vadd.f32 %v4160_v19, %v5445_v8 }
 0x143   : > { %v3789_v13 = vpop.f32.mrf.mxu0  ;;  %v1480_v9 = vpop.f32.mrf.mxu1 }
 0x144   : > { %v3790_v16 = vadd.f32 %v3789_v13, %v3788_v6  ;;  %v5612_v17 = vadd.f32 %v5433_v23, %v1480_v9 }
 0x145   : > { %v3791_v46 = vpop.f32.mrf.mxu0  ;;  %v4163_v28 = vpop.f32.mrf.mxu1  ;;  %3406 = vmatmul.mubr.msk.bf16.gmra.mxu0 %vm4603_vm3, %v3405_v43  ;;  %4258 = vmatmul.mubr.msk.bf16.gmra.mxu1 %vm4815_vm6, %v3453_v41 }
 0x146   : > { %v5618_v34 = vadd.f32 %v3790_v16, %v1464_v5  ;;  %v5621_v14 = vadd.f32 %v4163_v28, %v5469_v50 }
 0x147   : > { %v3792_v8 = vpop.f32.mrf.mxu0  ;;  %v1493_v30 = vpop.f32.mrf.mxu1 }
 0x148   : > { %v3793_v1 = vadd.f32 %v3792_v8, %v3791_v46  ;;  %v5624_v61 = vadd.f32 %v5455_v32, %v1493_v30 }
 0x149   : > { %v3794_v23 = vpop.f32.mrf.mxu0  ;;  %v4164_v15 = vpop.f32.mrf.mxu1 }
 0x14a   : > { %v5626_v49 = vadd.f32 %v4155_v62, %v3793_v1  ;;  %v5629_v10 = vadd.f32 %v4164_v15, %v5471_v31 }
 0x14b   : > { %v3795_v38 = vpop.f32.mrf.mxu0  ;;  %v1496_v59 = vpop.f32.mrf.mxu1 }
 0x14c   : > { %v3796_v5 = vadd.f32 %v3795_v38, %v3794_v23  ;;  %v5632_v0 = vadd.f32 %v5457_v53, %v1496_v59 }
 0x14d   : > { %v3861_v50 = vpop.f32.mrf.mxu1  ;;  %v4183_v58 = vpop.f32.mrf.mxu0 }
 0x14e   : > { %v5634_v52 = vadd.f32 %v4156_v63, %v3796_v5 }
 0x14f   : > { %v3862_v29 = vpop.f32.mrf.mxu1  ;;  %v1847_v32 = vpop.f32.mrf.mxu0 }
 0x150   : > { %v3863_v37 = vadd.f32 %v3862_v29, %v3861_v50 }
 0x151   : > { %v3864_v21 = vpop.f32.mrf.mxu1  ;;  %v4184_v35 = vpop.f32.mrf.mxu0 }
 0x152   : > { %v1687_v62 = vadd.f32 %v3863_v37, %v5486_v22 }
 0x153   : > { %v3865_v25 = vpop.f32.mrf.mxu1  ;;  %v1850_v31 = vpop.f32.mrf.mxu0 }
 0x154   : > { %v5637_v11 = vadd.f32 %v1847_v32, %v1687_v62  ;;  %v3866_v18 = vadd.f32 %v3865_v25, %v3864_v21 }
 0x155   : > { %v3867_v2 = vpop.f32.mrf.mxu1  ;;  %v4187_v6 = vpop.f32.mrf.mxu0 }
 0x156   : > { %v1690_v53 = vadd.f32 %v3866_v18, %v5491_v4 }
 0x157   : > { %v3868_v19 = vpop.f32.mrf.mxu1  ;;  %v1863_v43 = vpop.f32.mrf.mxu0 }
 0x158   : > { %v5640_v63 = vadd.f32 %v1850_v31, %v1690_v53  ;;  %v3869_v41 = vadd.f32 %v3868_v19, %v3867_v2 }
 0x159   : > { %v3870_v13 = vpop.f32.mrf.mxu1  ;;  %v4188_v9 = vpop.f32.mrf.mxu0 }
 0x15a   : > { %v1695_v16 = vadd.f32 %v3869_v41, %v5479_v56 }
 0x15b   : > { %v3871_v46 = vpop.f32.mrf.mxu1  ;;  %v1866_v22 = vpop.f32.mrf.mxu0 }
 0x15c   : > { %v3872_v28 = vadd.f32 %v3871_v46, %v3870_v13  ;;  %v5643_v8 = vadd.f32 %v4183_v58, %v1695_v16 }
 0x15d   : > { %v3873_v30 = vpop.f32.mrf.mxu1  ;;  %v4191_v1 = vpop.f32.mrf.mxu0 }
 0x15e   : > { %v1698_v23 = vadd.f32 %v3872_v28, %v5488_v45 }
 0x15f   : > { %v3874_v15 = vpop.f32.mrf.mxu1  ;;  %v1879_v4 = vpop.f32.mrf.mxu0 }
 0x160   : > { %v3875_v38 = vadd.f32 %v3874_v15, %v3873_v30  ;;  %v5646_v59 = vadd.f32 %v4184_v35, %v1698_v23 }
 0x161   : > { %v3876_v5 = vpop.f32.mrf.mxu1  ;;  %v4192_v50 = vpop.f32.mrf.mxu0 }
 0x162   : > { %v1703_v29 = vadd.f32 %v3875_v38, %v5505_v44 }
 0x163   : > { %v3877_v32 = vpop.f32.mrf.mxu1  ;;  %v1882_v56 = vpop.f32.mrf.mxu0 }
 0x164   : > { %v3878_v37 = vadd.f32 %v3877_v32, %v3876_v5  ;;  %v5649_v21 = vadd.f32 %v1863_v43, %v1703_v29 }
 0x165   : > { %v3879_v58 = vpop.f32.mrf.mxu1  ;;  %v5651_v62 = vpop.f32.mrf.mxu0 }
 0x166   : > { %v1706_v25 = vadd.f32 %v3878_v37, %v5509_v47 }
 0x167   : > { %v3880_v45 = vpop.f32.mrf.mxu1  ;;  %v1895_v31 = vpop.f32.mrf.mxu0 }
 0x168   : > { %v3881_v18 = vadd.f32 %v3880_v45, %v3879_v58  ;;  %v5654_v2 = vadd.f32 %v1866_v22, %v1706_v25 }
 0x169   : > { %v3882_v35 = vpop.f32.mrf.mxu1  ;;  %v5656_v53 = vpop.f32.mrf.mxu0 }
 0x16a   : > { %v1711_v44 = vadd.f32 %v3881_v18, %v5499_v42 }
 0x16b   : > { %v3883_v19 = vpop.f32.mrf.mxu1  ;;  %v1898_v41 = vpop.f32.mrf.mxu0 }
 0x16c   : > { %v3884_v13 = vadd.f32 %v3883_v19, %v3882_v35  ;;  %v5659_v43 = vadd.f32 %v4187_v6, %v1711_v44 }
 0x16d   : > { %v3885_v16 = vpop.f32.mrf.mxu1  ;;  %v5661_v46 = vpop.f32.mrf.mxu0 }
 0x16e   : > { %v1714_v47 = vadd.f32 %v3884_v13, %v5507_v26 }
 0x16f   : > { %v3886_v28 = vpop.f32.mrf.mxu1  ;;  %v5664_v30 = vpop.f32.mrf.mxu0 }
 0x170   : > { %v3887_v22 = vadd.f32 %v3886_v28, %v3885_v16  ;;  %v5666_v23 = vadd.f32 %v4188_v9, %v1714_v47 }
 0x171   : > { %v3888_v15 = vpop.f32.mrf.mxu1  ;;  %v5668_v38 = vpop.f32.mrf.mxu0 }
 0x172   : > { %v1719_v42 = vadd.f32 %v3887_v22, %v5527_v40 }
 0x173   : > { %v3889_v5 = vpop.f32.mrf.mxu1  ;;  %v5671_v29 = vpop.f32.mrf.mxu0 }
 0x174   : > { %v3890_v6 = vadd.f32 %v3889_v5, %v3888_v15  ;;  %v5673_v32 = vadd.f32 %v1879_v4, %v1719_v42 }
 0x175   : > { %v3891_v37 = vpop.f32.mrf.mxu1  ;;  %v5675_v58 = vpop.f32.mrf.mxu0 }
 0x176   : > { %v1722_v26 = vadd.f32 %v3890_v6, %v5531_v39 }
 0x177   : > { %v3892_v25 = vpop.f32.mrf.mxu1  ;;  %v5678_v45 = vpop.f32.mrf.mxu0 }
 0x178   : > { %v3893_v9 = vadd.f32 %v3892_v25, %v3891_v37  ;;  %v5680_v18 = vadd.f32 %v1882_v56, %v1722_v26 }
 0x179   : > { %v3894_v35 = vpop.f32.mrf.mxu1  ;;  %v5682_v44 = vpop.f32.mrf.mxu0 }
 0x17a   : > { %v1727_v40 = vadd.f32 %v3893_v9, %v5518_v57 }
 0x17b   : > { %v3895_v19 = vpop.f32.mrf.mxu1  ;;  %v5685_v13 = vpop.f32.mrf.mxu0 }
 0x17c   : > { %v3896_v4 = vadd.f32 %v3895_v19, %v3894_v35  ;;  %v5687_v16 = vadd.f32 %v4191_v1, %v1727_v40 }
 0x17d   : > { %v3897_v47 = vpop.f32.mrf.mxu1  ;;  %v5689_v28 = vpop.f32.mrf.mxu0 }
 0x17e   : > { %v1730_v39 = vadd.f32 %v3896_v4, %v5529_v54 }
 0x17f   : > { %v3898_v22 = vpop.f32.mrf.mxu1  ;;  %v5692_v15 = vpop.f32.mrf.mxu0 }
 0x180   : > { %v3899_v56 = vadd.f32 %v3898_v22, %v3897_v47  ;;  %v5694_v42 = vadd.f32 %v4192_v50, %v1730_v39 }
 0x181   : > { %v3900_v5 = vpop.f32.mrf.mxu1  ;;  %v5696_v6 = vpop.f32.mrf.mxu0 }
 0x182   : > { %v1735_v57 = vadd.f32 %v3899_v56, %v5543_v55 }
 0x183   : > { %v3901_v37 = vpop.f32.mrf.mxu1  ;;  %v5699_v26 = vpop.f32.mrf.mxu0 }
 0x184   : > { %v3902_v1 = vadd.f32 %v3901_v37, %v3900_v5  ;;  %v5701_v25 = vadd.f32 %v1895_v31, %v1735_v57 }
 0x185   : > { %v3903_v9 = vpop.f32.mrf.mxu1  ;;  %v5703_v35 = vpop.f32.mrf.mxu0 }
 0x186   : > { %6041 = vst [vmem:[#allocation2_spill] sm:$0xff] %v5703_v35  ;;  %v1738_v54 = vadd.f32 %v3902_v1, %v5549_v27 }
 0x187   : > { %v3904_v40 = vpop.f32.mrf.mxu1  ;;  %v5706_v19 = vpop.f32.mrf.mxu0 }
 0x188   : > { %v3905_v50 = vadd.f32 %v3904_v40, %v3903_v9  ;;  %v5708_v4 = vadd.f32 %v1898_v41, %v1738_v54 }
 0x189   : > { %v3906_v47 = vpop.f32.mrf.mxu1  ;;  %v5710_v39 = vpop.f32.mrf.mxu0 }
 0x18a   : > { %6042 = vst [vmem:[#allocation3_spill] sm:$0xff] %v5710_v39  ;;  %v1743_v55 = vadd.f32 %v3905_v50, %v5547_v33 }
 0x18b   : > { %v3907_v22 = vpop.f32.mrf.mxu1  ;;  %v5713_v56 = vpop.f32.mrf.mxu0 }
 0x18c   : > { %v3908_v31 = vadd.f32 %v3907_v22, %v3906_v47  ;;  %v5716_v5 = vadd.f32 %v5651_v62, %v1743_v55 }
 0x18d   : > { %v3909_v57 = vpop.f32.mrf.mxu1  ;;  %v3997_v27 = vpop.f32.mrf.mxu0 }
 0x18e   : > { %v1746_v37 = vadd.f32 %v3908_v31, %v5559_v12 }
 0x18f   : > { %v3910_v1 = vpop.f32.mrf.mxu1  ;;  %v3998_v9 = vpop.f32.mrf.mxu0 }
 0x190   : > { %v3911_v41 = vadd.f32 %v3910_v1, %v3909_v57  ;;  %v5719_v54 = vadd.f32 %v3998_v9, %v3997_v27  ;;  %v5722_v40 = vadd.f32 %v5656_v53, %v1746_v37 }
 0x191   : > { %v3912_v33 = vpop.f32.mrf.mxu1  ;;  %v5724_v50 = vpop.f32.mrf.mxu0 }
 0x192   : > { %v1751_v47 = vadd.f32 %v3911_v41, %v5565_v20 }
 0x193   : > { %v3913_v22 = vpop.f32.mrf.mxu1  ;;  %v5727_v62 = vpop.f32.mrf.mxu0 }
 0x194   : > { %v3914_v55 = vadd.f32 %v3913_v22, %v3912_v33  ;;  %v5730_v39 = vadd.f32 %v5664_v30, %v1751_v47 }
 0x195   : > { %v3915_v12 = vpop.f32.mrf.mxu1  ;;  %v5732_v31 = vpop.f32.mrf.mxu0 }
 0x196   : > { %v1754_v57 = vadd.f32 %v3914_v55, %v5573_v7 }
 0x197   : > { %v3916_v27 = vpop.f32.mrf.mxu1  ;;  %v5735_v53 = vpop.f32.mrf.mxu0 }
 0x198   : > { %v3917_v37 = vadd.f32 %v3916_v27, %v3915_v12  ;;  %v5738_v1 = vadd.f32 %v5671_v29, %v1754_v57 }
 0x199   : > { %v3918_v20 = vpop.f32.mrf.mxu1  ;;  %v5740_v9 = vpop.f32.mrf.mxu0 }
 0x19a   : > { %6043 = vst [vmem:[#allocation4_spill] sm:$0xff] %v5738_v1  ;;  %v1759_v41 = vadd.f32 %v3917_v37, %v5579_v48 }
 0x19b   : > { %v3919_v33 = vpop.f32.mrf.mxu1  ;;  %v5743_v30 = vpop.f32.mrf.mxu0 }
 0x19c   : > { %v3920_v47 = vadd.f32 %v3919_v33, %v3918_v20  ;;  %v5746_v22 = vadd.f32 %v5661_v46, %v1759_v41 }
 0x19d   : > { %v3921_v7 = vpop.f32.mrf.mxu1  ;;  %v5748_v55 = vpop.f32.mrf.mxu0 }
 0x19e   : > { %v1762_v12 = vadd.f32 %v3920_v47, %v5593_v60 }
 0x19f   : > { %v3922_v27 = vpop.f32.mrf.mxu1  ;;  %v5751_v29 = vpop.f32.mrf.mxu0 }
 0x1a0   : > { %v3923_v57 = vadd.f32 %v3922_v27, %v3921_v7  ;;  %v5754_v35 = vadd.f32 %v5668_v38, %v1762_v12 }
 0x1a1   : > { %v3924_v48 = vpop.f32.mrf.mxu1  ;;  %v5756_v37 = vpop.f32.mrf.mxu0 }
 0x1a2   : > { %6044 = vst [vmem:[#allocation5_spill] sm:$0xff] %v5754_v35  ;;  %v1767_v20 = vadd.f32 %v3923_v57, %v5606_v3 }
 0x1a3   : > { %v3925_v33 = vpop.f32.mrf.mxu1  ;;  %v5759_v46 = vpop.f32.mrf.mxu0 }
 0x1a4   : > { %v3926_v41 = vadd.f32 %v3925_v33, %v3924_v48  ;;  %v5762_v1 = vadd.f32 %v5678_v45, %v1767_v20 }
 0x1a5   : > { %v3927_v60 = vpop.f32.mrf.mxu1  ;;  %v5764_v47 = vpop.f32.mrf.mxu0 }
 0x1a6   : > { %6045 = vst [vmem:[#allocation6_spill] sm:$0xff] %v5762_v1  ;;  %v1770_v7 = vadd.f32 %v3926_v41, %v5618_v34 }
 0x1a7   : > { %v3928_v27 = vpop.f32.mrf.mxu1  ;;  %v5767_v38 = vpop.f32.mrf.mxu0 }
 0x1a8   : > { %v3929_v12 = vadd.f32 %v3928_v27, %v3927_v60  ;;  %v5770_v35 = vadd.f32 %v5685_v13, %v1770_v7 }
 0x1a9   : > { %v3930_v3 = vpop.f32.mrf.mxu1  ;;  %v5772_v57 = vpop.f32.mrf.mxu0 }
 0x1aa   : > { %6046 = vst [vmem:[#allocation7_spill] sm:$0xff] %v5770_v35  ;;  %v1775_v48 = vadd.f32 %v3929_v12, %v5626_v49 }
 0x1ab   : > { %v3931_v33 = vpop.f32.mrf.mxu1  ;;  %v5775_v45 = vpop.f32.mrf.mxu0 }
 0x1ac   : > { %v3932_v20 = vadd.f32 %v3931_v33, %v3930_v3  ;;  %v5778_v1 = vadd.f32 %v5675_v58, %v1775_v48 }
 0x1ad   : > { %v3933_v34 = vpop.f32.mrf.mxu1  ;;  %v5780_v41 = vpop.f32.mrf.mxu0 }
 0x1ae   : > { %6047 = vst [vmem:[#allocation8_spill] sm:$0xff] %v5778_v1  ;;  %v1778_v60 = vadd.f32 %v3932_v20, %v5634_v52 }
 0x1af   : > { %v3934_v27 = vpop.f32.mrf.mxu1  ;;  %v5783_v13 = vpop.f32.mrf.mxu0 }
 0x1b0   : > { %v3935_v7 = vadd.f32 %v3934_v27, %v3933_v34  ;;  %v5786_v35 = vadd.f32 %v5682_v44, %v1778_v60 }
 0x1b1   : > { %v3936_v49 = vpop.f32.mrf.mxu1  ;;  %v5788_v12 = vpop.f32.mrf.mxu0 }
 0x1b2   : > { %6048 = vst [vmem:[#allocation9_spill] sm:$0xff] %v5786_v35  ;;  %v1783_v3 = vadd.f32 %v3935_v7, %v5604_v51 }
 0x1b3   : > { %v3937_v33 = vpop.f32.mrf.mxu1  ;;  %v5791_v58 = vpop.f32.mrf.mxu0 }
 0x1b4   : > { %v3938_v48 = vadd.f32 %v3937_v33, %v3936_v49  ;;  %v5794_v1 = vadd.f32 %v5692_v15, %v1783_v3 }
 0x1b5   : > { %v3939_v52 = vpop.f32.mrf.mxu1  ;;  %v5796_v20 = vpop.f32.mrf.mxu0 }
 0x1b6   : > { %6049 = vst [vmem:[#allocation10_spill] sm:$0xff] %v5794_v1  ;;  %v1786_v34 = vadd.f32 %v3938_v48, %v5612_v17 }
 0x1b7   : > { %v3940_v27 = vpop.f32.mrf.mxu1  ;;  %v5799_v44 = vpop.f32.mrf.mxu0 }
 0x1b8   : > { %v3941_v60 = vadd.f32 %v3940_v27, %v3939_v52  ;;  %v5802_v35 = vadd.f32 %v5699_v26, %v1786_v34 }
 0x1b9   : > { %v3942_v51 = vpop.f32.mrf.mxu1  ;;  %v5804_v7 = vpop.f32.mrf.mxu0 }
 0x1ba   : > { %6050 = vst [vmem:[#allocation11_spill] sm:$0xff] %v5802_v35  ;;  %v1791_v49 = vadd.f32 %v3941_v60, %v5596_v24 }
 0x1bb   : > { %v3943_v33 = vpop.f32.mrf.mxu1  ;;  %v5807_v15 = vpop.f32.mrf.mxu0 }
 0x1bc   : > { %v3944_v3 = vadd.f32 %v3943_v33, %v3942_v51  ;;  %v5810_v1 = vadd.f32 %v5689_v28, %v1791_v49 }
 0x1bd   : > { %v3945_v17 = vpop.f32.mrf.mxu1  ;;  %v5812_v48 = vpop.f32.mrf.mxu0 }
 0x1be   : > { %6051 = vst [vmem:[#allocation12_spill] sm:$0xff] %v5810_v1  ;;  %v1794_v52 = vadd.f32 %v3944_v3, %v5609_v36 }
 0x1bf   : > { %v3946_v27 = vpop.f32.mrf.mxu1  ;;  %v5815_v26 = vpop.f32.mrf.mxu0 }
 0x1c0   : > { %v3947_v34 = vadd.f32 %v3946_v27, %v3945_v17  ;;  %v5818_v35 = vadd.f32 %v5696_v6, %v1794_v52 }
 0x1c1   : > { %v3948_v24 = vpop.f32.mrf.mxu1  ;;  %v5820_v60 = vpop.f32.mrf.mxu0 }
 0x1c2   : > { %6052 = vst [vmem:[#allocation13_spill] sm:$0xff] %v5818_v35  ;;  %v1799_v51 = vadd.f32 %v3947_v34, %v5624_v61 }
 0x1c3   : > { %v3949_v33 = vpop.f32.mrf.mxu1  ;;  %v5823_v28 = vpop.f32.mrf.mxu0 }
 0x1c4   : > { %v3950_v49 = vadd.f32 %v3949_v33, %v3948_v24  ;;  %v5826_v1 = vadd.f32 %v5706_v19, %v1799_v51 }
 0x1c5   : > { %v3951_v36 = vpop.f32.mrf.mxu1  ;;  %v5828_v3 = vpop.f32.mrf.mxu0 }
 0x1c6   : > { %6053 = vst [vmem:[#allocation14_spill] sm:$0xff] %v5826_v1  ;;  %v1802_v17 = vadd.f32 %v3950_v49, %v5632_v0  ;;  %v4005_v49 = vadd.f32 %v5735_v53, %v5732_v31 }
 0x1c7   : > { %v3952_v27 = vpop.f32.mrf.mxu1  ;;  %v5831_v6 = vpop.f32.mrf.mxu0 }
 0x1c8   : > { %v3953_v52 = vadd.f32 %v3952_v27, %v3951_v36  ;;  %v5834_v35 = vadd.f32 %v5713_v56, %v1802_v17 }
 0x1c9   : > { %v3954_v61 = vpop.f32.mrf.mxu1  ;;  %v5836_v34 = vpop.f32.mrf.mxu0 }
 0x1ca   : > { %6054 = vst [vmem:[#allocation15_spill] sm:$0xff] %v5834_v35  ;;  %v5839_v24 = vadd.f32 %v3953_v52, %v5621_v14  ;;  %v4008_v14 = vadd.f32 %v5743_v30, %v5740_v9  ;;  %v4002_v35 = vadd.f32 %v5727_v62, %v5724_v50 }
 0x1cb   : > { %v3955_v19 = vpop.f32.mrf.mxu1  ;;  %v5841_v51 = vpop.f32.mrf.mxu0 }
 0x1cc   : > { %6055 = vst [vmem:[#allocation16_spill] sm:$0xff] %v5839_v24  ;;  %v3956_v33 = vadd.f32 %v3955_v19, %v3954_v61 }
 0x1cd   : > { %v5843_v1 = vpop.f32.mrf.mxu0  ;;  %v4231_v0 = vpop.f32.mrf.mxu1 }
 0x1ce   : > { %v5848_v36 = vadd.f32 %v3956_v33, %v5629_v10  ;;  %v2386_v27 = vadd.f32 %v4231_v0, %v4005_v49 }
 0x1cf   : > { %v5850_v56 = vpop.f32.mrf.mxu0  ;;  %v2377_v17 = vpop.f32.mrf.mxu1 }
 0x1d0   : > { %6056 = vst [vmem:[#allocation17_spill] sm:$0xff] %v5848_v36  ;;  %v2378_v52 = vadd.f32 %v5719_v54, %v2377_v17  ;;  %v2506_v36 = vadd.f32 %v2386_v27, %v5643_v8  ;;  %v4011_v8 = vadd.f32 %v5751_v29, %v5748_v55 }
 0x1d1   : > { %v5855_v61 = vpop.f32.mrf.mxu0  ;;  %v4232_v19 = vpop.f32.mrf.mxu1 }
 0x1d2   : > { %v2504_v31 = vadd.f32 %v2378_v52, %v5637_v11  ;;  %v2389_v10 = vadd.f32 %v4232_v19, %v4008_v14  ;;  %v4017_v11 = vadd.f32 %v5767_v38, %v5764_v47  ;;  %v2576_v19 = vmul.f32 %v2506_v36, %v2506_v36 }
 0x1d3   : > { %v5860_v53 = vpop.f32.mrf.mxu0  ;;  %v2380_v33 = vpop.f32.mrf.mxu1 }
 0x1d4   : > { %v2507_v24 = vadd.f32 %v2389_v10, %v5646_v59  ;;  %v2381_v9 = vadd.f32 %v4002_v35, %v2380_v33  ;;  %v4020_v59 = vadd.f32 %v5775_v45, %v5772_v57  ;;  %v2574_v35 = vmul.f32 %v2504_v31, %v2504_v31 }
 0x1d5   : > { %v5870_v54 = vpop.f32.mrf.mxu0  ;;  %v4235_v50 = vpop.f32.mrf.mxu1  ;;  %v4014_v57 = vadd.f32 %v5759_v46, %v5756_v37 }
 0x1d6   : > { %v3606_v62 = vpack.c.bf16 %v2507_v24, %v2506_v36  ;;  %v2505_v30 = vadd.f32 %v2381_v9, %v5640_v63  ;;  %v2402_v52 = vadd.f32 %v4235_v50, %v4017_v11  ;;  %v2577_v45 = vmul.f32 %v2507_v24, %v2507_v24 }
 0x1d7   : > { %v5879_v0 = vpop.f32.mrf.mxu0  ;;  %v2393_v49 = vpop.f32.mrf.mxu1 }
 0x1d8   : > { %3694 = vst [vmem:[%s5868_s10 + $0x8] sm:$0xff] %v3606_v62   ;;  %v2536_v17 = vadd.f32 %v2505_v30, %v2504_v31  ;;  %v2575_v14 = vmul.f32 %v2505_v30, %v2505_v30  ;;  %v3601_v27 = vpack.c.bf16 %v2505_v30, %v2504_v31  ;;  %v2394_v47 = vadd.f32 %v4011_v8, %v2393_v49 }
 0x1d9   : > { %v5882_v38 = vpop.f32.mrf.mxu0  ;;  %v4236_v63 = vpop.f32.mrf.mxu1  ;;  %v2510_v50 = vadd.f32 %v2402_v52, %v5659_v43  ;;  %v4029_v8 = vadd.f32 %v5799_v44, %v5796_v20 }
 0x1da   : > { %v2537_v10 = vadd.f32 %v2536_v17, %v2506_v36  ;;  %v2606_v55 = vadd.f32 %v2575_v14, %v2574_v35  ;;  %3602 = vst [vmem:[%s5868_s10] sm:$0xff] %v3601_v27   ;;  %v2405_v29 = vadd.f32 %v4236_v63, %v4020_v59  ;;  %v2508_v33 = vadd.f32 %v2394_v47, %v5649_v21 }
 0x1db   : > { %v5888_v9 = vpop.f32.mrf.mxu0  ;;  %v2396_v62 = vpop.f32.mrf.mxu1  ;;  %v4023_v36 = vadd.f32 %v5783_v13, %v5780_v41 }
 0x1dc   : > { %v2607_v31 = vadd.f32 %v2606_v55, %v2576_v19  ;;  %v2538_v11 = vadd.f32 %v2537_v10, %v2507_v24  ;;  %v2511_v30 = vadd.f32 %v2405_v29, %v5666_v23  ;;  %v2397_v37 = vadd.f32 %v4014_v57, %v2396_v62 }
 0x1dd   : > { %v5896_v46 = vpop.f32.mrf.mxu0  ;;  %v4239_v21 = vpop.f32.mrf.mxu1  ;;  %v2578_v35 = vmul.f32 %v2508_v33, %v2508_v33  ;;  %v4032_v23 = vadd.f32 %v5807_v15, %v5804_v7  ;;  %v2580_v10 = vmul.f32 %v2510_v50, %v2510_v50 }
 0x1de   : > { %v2539_v59 = vadd.f32 %v2538_v11, %v2508_v33  ;;  %v2608_v49 = vadd.f32 %v2607_v31, %v2577_v45  ;;  %v3616_v17 = vpack.c.bf16 %v2511_v30, %v2510_v50  ;;  %v2509_v43 = vadd.f32 %v2397_v37, %v5654_v2 }
 0x1df   : > { %v5899_v24 = vpop.f32.mrf.mxu0  ;;  %v2409_v14 = vpop.f32.mrf.mxu1  ;;  %v2418_v13 = vadd.f32 %v4239_v21, %v4029_v8  ;;  %v4026_v2 = vadd.f32 %v5791_v58, %v5788_v12  ;;  %v2581_v31 = vmul.f32 %v2511_v30, %v2511_v30  ;;  %v4035_v37 = vadd.f32 %v5815_v26, %v5812_v48 }
 0x1e0   : > { %v2609_v41 = vadd.f32 %v2608_v49, %v2578_v35  ;;  %3696 = vst [vmem:[%s5868_s10 + $0x18] sm:$0xff] %v3616_v17   ;;  %v2410_v20 = vadd.f32 %v4023_v36, %v2409_v14  ;;  %v2540_v44 = vadd.f32 %v2539_v59, %v2509_v43  ;;  %v2579_v27 = vmul.f32 %v2509_v43, %v2509_v43 }
 0x1e1   : > { %v3611_v52 = vpack.c.bf16 %v2509_v43, %v2508_v33  ;;  %v5904_v47 = vpop.f32.mrf.mxu0  ;;  %v4240_v63 = vpop.f32.mrf.mxu1  ;;  %v2514_v45 = vadd.f32 %v2418_v13, %v5687_v16  ;;  %v4038_v26 = vadd.f32 %v5823_v28, %v5820_v60  ;;  %v4053_v28 = vadd.f32 %v5879_v0, %v5870_v54 }
 0x1e2   : > { %v2421_v19 = vadd.f32 %v4240_v63, %v4032_v23  ;;  %v2541_v55 = vadd.f32 %v2540_v44, %v2510_v50  ;;  %v2610_v29 = vadd.f32 %v2609_v41, %v2579_v27  ;;  %v2512_v7 = vadd.f32 %v2410_v20, %v5673_v32 }
 0x1e3   : > { %3695 = vst [vmem:[%s5868_s10 + $0x10] sm:$0xff] %v3611_v52   ;;  %v5910_v15 = vpop.f32.mrf.mxu0  ;;  %v2412_v57 = vpop.f32.mrf.mxu1  ;;  %v4041_v50 = vadd.f32 %v5831_v6, %v5828_v3  ;;  %v2584_v41 = vmul.f32 %v2514_v45, %v2514_v45 }
 0x1e4   : > { %v2515_v33 = vadd.f32 %v2421_v19, %v5694_v42  ;;  %v2413_v62 = vadd.f32 %v4026_v2, %v2412_v57  ;;  %v2611_v11 = vadd.f32 %v2610_v29, %v2580_v10  ;;  %v2542_v36 = vadd.f32 %v2541_v55, %v2511_v30 }
 0x1e5   : > { %v5914_v12 = vpop.f32.mrf.mxu0  ;;  %v4243_v58 = vpop.f32.mrf.mxu1  ;;  %v2582_v42 = vmul.f32 %v2512_v7, %v2512_v7  ;;  %v4044_v30 = vadd.f32 %v5841_v51, %v5836_v34 }
 0x1e6   : > { %v3626_v8 = vpack.c.bf16 %v2515_v33, %v2514_v45  ;;  %v2513_v32 = vadd.f32 %v2413_v62, %v5680_v18  ;;  %v2543_v16 = vadd.f32 %v2542_v36, %v2512_v7  ;;  %v2612_v21 = vadd.f32 %v2611_v11, %v2581_v31 }
 0x1e7   : > { %v5921_v59 = vpop.f32.mrf.mxu0  ;;  %v2425_v35 = vpop.f32.mrf.mxu1  ;;  %v2434_v3 = vadd.f32 %v4243_v58, %v4041_v50  ;;  %v2585_v2 = vmul.f32 %v2515_v33, %v2515_v33 }
 0x1e8   : > { %3698 = vst [vmem:[%s5868_s10 + $0x28] sm:$0xff] %v3626_v8   ;;  %v2583_v49 = vmul.f32 %v2513_v32, %v2513_v32  ;;  %v3621_v17 = vpack.c.bf16 %v2513_v32, %v2512_v7  ;;  %v2613_v6 = vadd.f32 %v2612_v21, %v2582_v42  ;;  %v2544_v43 = vadd.f32 %v2543_v16, %v2513_v32  ;;  %v6057_v21 = vld [vmem:[#allocation5_spill] sm:$0xff] }
 0x1e9   : > { %v2426_v18 = vadd.f32 %v4035_v37, %v2425_v35  ;;  %v5926_v14 = vpop.f32.mrf.mxu0  ;;  %v4244_v48 = vpop.f32.mrf.mxu1  ;;  %v2518_v27 = vadd.f32 %v2434_v3, %v5716_v5  ;;  %v4047_v7 = vadd.f32 %v5850_v56, %v5843_v1  ;;  %v4050_v56 = vadd.f32 %v5860_v53, %v5855_v61 }
 0x1ea   : > { %3697 = vst [vmem:[%s5868_s10 + $0x20] sm:$0xff] %v3621_v17   ;;  %v2437_v23 = vadd.f32 %v4244_v48, %v4044_v30  ;;  %v2545_v13 = vadd.f32 %v2544_v43, %v2514_v45  ;;  %v2614_v20 = vadd.f32 %v2613_v6, %v2583_v49  ;;  %v4065_v6 = vadd.f32 %v5921_v59, %v5914_v12 }
 0x1eb   : > { %v2516_v34 = vadd.f32 %v2426_v18, %v5701_v25  ;;  %v4067_v51 = vpop.f32.mrf.mxu0  ;;  %v2428_v44 = vpop.f32.mrf.mxu1  ;;  %v2588_v8 = vmul.f32 %v2518_v27, %v2518_v27  ;;  %v6058_v18 = vld [vmem:[#allocation4_spill] sm:$0xff]  ;;  %v4059_v48 = vadd.f32 %v5899_v24, %v5896_v46  ;;  %v4062_v46 = vadd.f32 %v5910_v15, %v5904_v47 }
 0x1ec   : > { %v2519_v52 = vadd.f32 %v2437_v23, %v5722_v40  ;;  %v2429_v63 = vadd.f32 %v4038_v26, %v2428_v44  ;;  %v2615_v19 = vadd.f32 %v2614_v20, %v2584_v41  ;;  %v2546_v10 = vadd.f32 %v2545_v13, %v2515_v33 }
 0x1ed   : > { %v5934_v55 = vpop.f32.mrf.mxu0  ;;  %v4247_v60 = vpop.f32.mrf.mxu1  ;;  %v2586_v40 = vmul.f32 %v2516_v34, %v2516_v34  ;;  %v4056_v33 = vadd.f32 %v5888_v9, %v5882_v38  ;;  %v4068_v20 = vadd.f32 %v4067_v51, %v5926_v14 }
 0x1ee   : > { %v3636_v29 = vpack.c.bf16 %v2519_v52, %v2518_v27  ;;  %v2517_v25 = vadd.f32 %v2429_v63, %v5708_v4  ;;  %v2547_v5 = vadd.f32 %v2546_v10, %v2516_v34  ;;  %v2616_v57 = vadd.f32 %v2615_v19, %v2585_v2 }
 0x1ef   : > { %v5941_v45 = vpop.f32.mrf.mxu0  ;;  %v2441_v62 = vpop.f32.mrf.mxu1  ;;  %v2450_v54 = vadd.f32 %v4247_v60, %v4053_v28  ;;  %v2589_v49 = vmul.f32 %v2519_v52, %v2519_v52  ;;  %v6059_v28 = vld [vmem:[#allocation6_spill] sm:$0xff] }
 0x1f0   : > { %3700 = vst [vmem:[%s5868_s10 + $0x38] sm:$0xff] %v3636_v29   ;;  %v2587_v31 = vmul.f32 %v2517_v25, %v2517_v25  ;;  %v3631_v11 = vpack.c.bf16 %v2517_v25, %v2516_v34  ;;  %v2617_v0 = vadd.f32 %v2616_v57, %v2586_v40  ;;  %v2548_v36 = vadd.f32 %v2547_v5, %v2517_v25  ;;  %v6060_v25 = vld [vmem:[#allocation8_spill] sm:$0xff]  ;;  %v6061_v5 = vld [vmem:[#allocation9_spill] sm:$0xff] }
 0x1f1   : > { %v2442_v4 = vadd.f32 %v4047_v7, %v2441_v62  ;;  %v5946_v58 = vpop.f32.mrf.mxu0  ;;  %v4248_v1 = vpop.f32.mrf.mxu1  ;;  %v2522_v42 = vadd.f32 %v2450_v54, %v5746_v22 }
 0x1f2   : > { %3699 = vst [vmem:[%s5868_s10 + $0x30] sm:$0xff] %v3631_v11   ;;  %v2453_v50 = vadd.f32 %v4248_v1, %v4056_v33  ;;  %v2549_v32 = vadd.f32 %v2548_v36, %v2518_v27  ;;  %v2618_v37 = vadd.f32 %v2617_v0, %v2587_v31  ;;  %v6062_v0 = vld [vmem:[#allocation7_spill] sm:$0xff] }
 0x1f3   : > { %v2520_v38 = vadd.f32 %v2442_v4, %v5730_v39  ;;  %v5952_v9 = vpop.f32.mrf.mxu0  ;;  %v2444_v16 = vpop.f32.mrf.mxu1  ;;  %v2592_v19 = vmul.f32 %v2522_v42, %v2522_v42  ;;  %v4071_v4 = vadd.f32 %v5941_v45, %v5934_v55 }
 0x1f4   : > { %v2523_v35 = vadd.f32 %v2453_v50, %v6057_v21  ;;  %v2445_v30 = vadd.f32 %v4050_v56, %v2444_v16  ;;  %v2619_v17 = vadd.f32 %v2618_v37, %v2588_v8  ;;  %v2550_v3 = vadd.f32 %v2549_v32, %v2519_v52 }
 0x1f5   : > { %v4075_v61 = vpop.f32.mrf.mxu0  ;;  %v4251_v53 = vpop.f32.mrf.mxu1  ;;  %v2590_v22 = vmul.f32 %v2520_v38, %v2520_v38 }
 0x1f6   : > { %v3646_v43 = vpack.c.bf16 %v2523_v35, %v2522_v42  ;;  %v2521_v39 = vadd.f32 %v2445_v30, %v6058_v18  ;;  %v2551_v26 = vadd.f32 %v2550_v3, %v2520_v38  ;;  %v2620_v23 = vadd.f32 %v2619_v17, %v2589_v49 }
 0x1f7   : > { %v4076_v41 = vpop.f32.mrf.mxu0  ;;  %v2457_v13 = vpop.f32.mrf.mxu1  ;;  %v2466_v27 = vadd.f32 %v4251_v53, %v4065_v6  ;;  %v2593_v62 = vmul.f32 %v2523_v35, %v2523_v35  ;;  %v4074_v3 = vadd.f32 %v5952_v9, %v5946_v58  ;;  %v6063_v6 = vld [vmem:[#allocation10_spill] sm:$0xff] }
 0x1f8   : > { %3702 = vst [vmem:[%s5868_s10 + $0x48] sm:$0xff] %v3646_v43   ;;  %v2591_v34 = vmul.f32 %v2521_v39, %v2521_v39  ;;  %v3641_v44 = vpack.c.bf16 %v2521_v39, %v2520_v38  ;;  %v2621_v52 = vadd.f32 %v2620_v23, %v2590_v22  ;;  %v2552_v12 = vadd.f32 %v2551_v26, %v2521_v39  ;;  %v6065_v22 = vld [vmem:[#allocation13_spill] sm:$0xff] }
 0x1f9   : > { %v2458_v59 = vadd.f32 %v4059_v48, %v2457_v13  ;;  %v4078_v63 = vpop.f32.mrf.mxu0  ;;  %v4252_v2 = vpop.f32.mrf.mxu1  ;;  %v2526_v7 = vadd.f32 %v2466_v27, %v6060_v25  ;;  %v4077_v15 = vadd.f32 %v4076_v41, %v4075_v61  ;;  %v6064_v48 = vld [vmem:[#allocation12_spill] sm:$0xff] }
 0x1fa   : > { %3701 = vst [vmem:[%s5868_s10 + $0x40] sm:$0xff] %v3641_v44   ;;  %v2469_v24 = vadd.f32 %v4252_v2, %v4068_v20  ;;  %v2553_v10 = vadd.f32 %v2552_v12, %v2522_v42  ;;  %v2622_v60 = vadd.f32 %v2621_v52, %v2591_v34  ;;  %v6066_v52 = vld [vmem:[#allocation11_spill] sm:$0xff] }
 0x1fb   : > { %v2524_v29 = vadd.f32 %v2458_v59, %v6059_v28  ;;  %v4079_v14 = vpop.f32.mrf.mxu0  ;;  %v2460_v51 = vpop.f32.mrf.mxu1  ;;  %v2596_v45 = vmul.f32 %v2526_v7, %v2526_v7 }
 0x1fc   : > { %v2527_v40 = vadd.f32 %v2469_v24, %v6061_v5  ;;  %v2461_v57 = vadd.f32 %v4062_v46, %v2460_v51  ;;  %v2623_v33 = vadd.f32 %v2622_v60, %v2592_v19  ;;  %v2554_v31 = vadd.f32 %v2553_v10, %v2523_v35 }
 0x1fd   : > { %v4081_v11 = vpop.f32.mrf.mxu0  ;;  %v4255_v47 = vpop.f32.mrf.mxu1  ;;  %v2594_v56 = vmul.f32 %v2524_v29, %v2524_v29  ;;  %v4080_v37 = vadd.f32 %v4079_v14, %v4078_v63 }
 0x1fe   : > { %v3656_v54 = vpack.c.bf16 %v2527_v40, %v2526_v7  ;;  %v2525_v36 = vadd.f32 %v2461_v57, %v6062_v0  ;;  %v2555_v1 = vadd.f32 %v2554_v31, %v2524_v29  ;;  %v2624_v50 = vadd.f32 %v2623_v33, %v2593_v62  ;;  %v6067_v33 = vld [vmem:[#allocation14_spill] sm:$0xff]  ;;  %v6068_v0 = vld [vmem:[#allocation16_spill] sm:$0xff] }
 0x1ff   : > { %v4082_v8 = vpop.f32.mrf.mxu0  ;;  %v2473_v32 = vpop.f32.mrf.mxu1  ;;  %v2482_v42 = vadd.f32 %v4255_v47, %v4077_v15  ;;  %v2597_v13 = vmul.f32 %v2527_v40, %v2527_v40 }
 0x200   : > { %3704 = vst [vmem:[%s5868_s10 + $0x58] sm:$0xff] %v3656_v54   ;;  %v2595_v38 = vmul.f32 %v2525_v36, %v2525_v36  ;;  %v3651_v16 = vpack.c.bf16 %v2525_v36, %v2524_v29  ;;  %v2625_v21 = vadd.f32 %v2624_v50, %v2594_v56  ;;  %v2556_v35 = vadd.f32 %v2555_v1, %v2525_v36  ;;  %v6069_v36 = vld [vmem:[#allocation2_spill] sm:$0xff] }
 0x201   : > { %v2474_v30 = vadd.f32 %v4071_v4, %v2473_v32  ;;  %v4084_v49 = vpop.f32.mrf.mxu0  ;;  %v4256_v17 = vpop.f32.mrf.mxu1  ;;  %v2530_v26 = vadd.f32 %v2482_v42, %v6064_v48  ;;  %v4083_v9 = vadd.f32 %v4082_v8, %v4081_v11  ;;  %v1968_v4 = vadd.f32 %v6069_v36, %v6068_v0  ;;  %v6070_v8 = vld [vmem:[#allocation17_spill] sm:$0xff]  ;;  %v6071_v32 = vld [vmem:[#allocation3_spill] sm:$0xff] }
 0x202   : > { %3703 = vst [vmem:[%s5868_s10 + $0x50] sm:$0xff] %v3651_v16   ;;  %v2485_v55 = vadd.f32 %v4256_v17, %v4080_v37  ;;  %v2557_v61 = vadd.f32 %v2556_v35, %v2526_v7  ;;  %v2626_v53 = vadd.f32 %v2625_v21, %v2595_v38  ;;  %v1971_v37 = vadd.f32 %v6071_v32, %v6070_v8  ;;  %v6072_v16 = vld [vmem:[#allocation15_spill] sm:$0xff] }
 0x203   : > { %v2528_v43 = vadd.f32 %v2474_v30, %v6063_v6  ;;  %v4085_v18 = vpop.f32.mrf.mxu0  ;;  %v2476_v39 = vpop.f32.mrf.mxu1  ;;  %v2600_v7 = vmul.f32 %v2530_v26, %v2530_v26 }
 0x204   : > { %v2531_v23 = vadd.f32 %v2485_v55, %v6065_v22  ;;  %v2477_v41 = vadd.f32 %v4074_v3, %v2476_v39  ;;  %v2627_v20 = vadd.f32 %v2626_v53, %v2596_v45  ;;  %v2558_v34 = vadd.f32 %v2557_v61, %v2527_v40 }
 0x205   : > { %v4087_v44 = vpop.f32.mrf.mxu0  ;;  %v4259_v58 = vpop.f32.mrf.mxu1  ;;  %v2598_v63 = vmul.f32 %v2528_v43, %v2528_v43  ;;  %v4086_v5 = vadd.f32 %v4085_v18, %v4084_v49 }
 0x206   : > { %v3666_v27 = vpack.c.bf16 %v2531_v23, %v2530_v26  ;;  %v2529_v12 = vadd.f32 %v2477_v41, %v6066_v52  ;;  %v2559_v59 = vadd.f32 %v2558_v34, %v2528_v43  ;;  %v2628_v2 = vadd.f32 %v2627_v20, %v2597_v13 }
 0x207   : > { %v4088_v46 = vpop.f32.mrf.mxu0  ;;  %v2489_v24 = vpop.f32.mrf.mxu1  ;;  %v2601_v1 = vmul.f32 %v2531_v23, %v2531_v23 }
 0x208   : > { %3706 = vst [vmem:[%s5868_s10 + $0x68] sm:$0xff] %v3666_v27   ;;  %v2599_v19 = vmul.f32 %v2529_v12, %v2529_v12  ;;  %v3661_v10 = vpack.c.bf16 %v2529_v12, %v2528_v43  ;;  %v4089_v60 = vadd.f32 %v4088_v46, %v4087_v44  ;;  %v2490_v28 = vadd.f32 %v4083_v9, %v2489_v24 }
 0x209   : > { %v2629_v29 = vadd.f32 %v2628_v2, %v2598_v63  ;;  %v2560_v14 = vadd.f32 %v2559_v59, %v2529_v12  ;;  %v4090_v51 = vpop.f32.mrf.mxu0  ;;  %v4260_v25 = vpop.f32.mrf.mxu1 }
 0x20a   : > { %3705 = vst [vmem:[%s5868_s10 + $0x60] sm:$0xff] %v3661_v10   ;;  %v2498_v62 = vadd.f32 %v4259_v58, %v4089_v60  ;;  %v2532_v31 = vadd.f32 %v2490_v28, %v6067_v33 }
 0x20b   : > { %v2561_v40 = vadd.f32 %v2560_v14, %v2530_v26  ;;  %v2630_v57 = vadd.f32 %v2629_v29, %v2599_v19  ;;  %v4091_v11 = vpop.f32.mrf.mxu0  ;;  %v2492_v47 = vpop.f32.mrf.mxu1 }
 0x20c   : > { %v4092_v15 = vadd.f32 %v4091_v11, %v4090_v51  ;;  %v2493_v54 = vadd.f32 %v4086_v5, %v2492_v47  ;;  %v2534_v21 = vadd.f32 %v2498_v62, %v1968_v4  ;;  %v2602_v30 = vmul.f32 %v2532_v31, %v2532_v31 }
 0x20d   : > { %v2631_v56 = vadd.f32 %v2630_v57, %v2600_v7  ;;  %v2562_v50 = vadd.f32 %v2561_v40, %v2531_v23 }
 0x20e   : > { %v2501_v38 = vadd.f32 %v4260_v25, %v4092_v15  ;;  %v2533_v42 = vadd.f32 %v2493_v54, %v6072_v16  ;;  %v2604_v6 = vmul.f32 %v2534_v21, %v2534_v21 }
 0x20f   : > { %v2563_v35 = vadd.f32 %v2562_v50, %v2532_v31  ;;  %v2632_v49 = vadd.f32 %v2631_v56, %v2601_v1 }
 0x210   : > { %v2535_v17 = vadd.f32 %v2501_v38, %v1971_v37  ;;  %v2603_v3 = vmul.f32 %v2533_v42, %v2533_v42  ;;  %v3671_v55 = vpack.c.bf16 %v2533_v42, %v2532_v31 }
 0x211   : > { %v2633_v45 = vadd.f32 %v2632_v49, %v2602_v30  ;;  %v2564_v61 = vadd.f32 %v2563_v35, %v2533_v42 }
 0x212   : > { %v3676_v53 = vpack.c.bf16 %v2535_v17, %v2534_v21  ;;  %3707 = vst [vmem:[%s5868_s10 + $0x70] sm:$0xff] %v3671_v55   ;;  %v2605_v39 = vmul.f32 %v2535_v17, %v2535_v17 }
 0x213   : > { %v2565_v43 = vadd.f32 %v2564_v61, %v2534_v21  ;;  %v2634_v18 = vadd.f32 %v2633_v45, %v2603_v3 }
 0x214   : > { %3708 = vst [vmem:[%s5868_s10 + $0x78] sm:$0xff] %v3676_v53  }
 0x215   : > { %v2566_v48 = vadd.f32 %v2565_v43, %v2535_v17  ;;  %v2635_v26 = vadd.f32 %v2634_v18, %v2604_v6 }
 0x217   : > { %v2567_v22 = vrot.slane %v2566_v48, 4  ;;  %v2636_v23 = vadd.f32 %v2635_v26, %v2605_v39 }
 0x219   : > { %v2568_v41 = vadd.f32 %v2567_v22, %v2566_v48  ;;  %v2637_v13 = vrot.slane %v2636_v23, 4 }
 0x21b   : > { %v2569_v20 = vrot.slane %v2568_v41, 2  ;;  %v2638_v34 = vadd.f32 %v2637_v13, %v2636_v23 }
 0x21d   : > { %v2570_v44 = vadd.f32 %v2569_v20, %v2568_v41  ;;  %v2639_v58 = vrot.slane %v2638_v34, 2 }
 0x21f   : > { %v2571_v9 = vrot.slane %v2570_v44, 1  ;;  %v2640_v27 = vadd.f32 %v2639_v58, %v2638_v34 }
 0x221   : > { %v2572_v52 = vadd.f32 %v2571_v9, %v2570_v44  ;;  %v2641_v12 = vrot.slane %v2640_v27, 1 }
 0x223   : > { %2573 = vst [vmem:[%s465_s13] sm:$0x1] %v2572_v52  ;;  %v2642_v59 = vadd.f32 %v2641_v12, %v2640_v27 }
 0x225   : > { %2643 = vst [vmem:[%s465_s13 + $0x1] sm:$0x1] %v2642_v59 }
 0x226 PF: > { %s18_s26 = sadd.s32 1, %s4398_s26   ;;  %s6073_s24 = smov %s4394_s25 }
 0x227   : > { %p15_p5 = scmp.ge.s32.totalorder %s18_s26, 4   ;;  %s6074_s25 = smov %s6076_s27 }
 0x229   :  { %17 = sbr.rel (!%p15_p5) target bundleno = 2 (0x2), region = 94 }

</bundles_post_ra>
